<compile_context>
chip_gen: v6e
topology: v6e:2x2x1
jax: 0.10.0
libtpu: 0.0.40
codegen_flags: <defaults>
</compile_context>

<pallas_src>
import functools

import jax
import jax.numpy as jnp
from jax.experimental import pallas as pl
from jax.experimental.pallas import tpu as pltpu


def _vmem_limit_bytes():
    # Per-generation VMEM budget: v7x has 64 MiB physical per TC vs 128 MiB on
    # v5e/v6e.  Use ~3/4 of the reported capacity, conservative fallback 48 MiB.
    try:
        cap = pltpu.get_tpu_info().vmem_capacity_bytes
        return int(min(cap * 3 // 4, 96 * 1024 * 1024))
    except Exception:
        return 48 * 1024 * 1024


VMEM_LIMIT = _vmem_limit_bytes()
TILE_M = 512          # row tile (multiple of 8) for matmul / bias kernels
TILE_K = 512          # reduction tile (multiple of 256 for v6e/v7x MXU)
LSTM_CHUNK = 8        # time-steps per LSTM grid step (amortizes launch cost)


# ----------------------------------------------------------------------------
# Pallas kernels
# ----------------------------------------------------------------------------
def _mm_kernel(*refs, act, has_bias):
    """acc += a @ b over K tiles; on the last K tile: +bias, act, cast, store.

    act in {"none", "relu", "glu"} (glu halves the output columns).
    """
    if has_bias:
        a_ref, b_ref, bias_ref, o_ref, acc_ref = refs
    else:
        a_ref, b_ref, o_ref, acc_ref = refs

    @pl.when(pl.program_id(1) == 0)
    def _():
        acc_ref[...] = jnp.zeros_like(acc_ref)

    acc_ref[...] += jnp.dot(a_ref[...], b_ref[...],
                            preferred_element_type=jnp.float32)

    @pl.when(pl.program_id(1) == pl.num_programs(1) - 1)
    def _():
        y = acc_ref[...]
        if has_bias:
            y = y + bias_ref[...]
        if act == "relu":
            y = jnp.maximum(y, 0.0)
        elif act == "glu":
            n = y.shape[-1] // 2
            y = y[:, :n] * jax.nn.sigmoid(y[:, n:])
        o_ref[...] = y.astype(o_ref.dtype)


def mm_bias(a, b, bias=None, act="none", out_dtype=jnp.bfloat16,
            tile_m=TILE_M, tile_k=TILE_K):
    """a: (M, K), b: (K, N) bf16 weights, bias: (N,) fp32 or None.

    Grid = (M tiles [parallel], K tiles [arbitrary]); fp32 VMEM accumulator.
    """
    a = a.astype(jnp.bfloat16)
    b = b.astype(jnp.bfloat16)
    M, K = a.shape
    N = b.shape[1]
    out_n = N // 2 if act == "glu" else N
    tm = M if M <= tile_m else tile_m

    if K <= tile_k:
        tk = K
    else:
        tk = tile_k
        pad = (-K) % tk
        if pad:  # zero-pad the reduction axis so ragged K tiles stay exact
            a = jnp.pad(a, ((0, 0), (0, pad)))
            b = jnp.pad(b, ((0, pad), (0, 0)))
            K += pad
    nk = K // tk

    in_specs = [pl.BlockSpec((tm, tk), lambda i, k: (i, k)),
                pl.BlockSpec((tk, N), lambda i, k: (k, 0))]
    args = [a, b]
    if bias is not None:
        in_specs.append(pl.BlockSpec((1, N), lambda i, k: (0, 0)))
        args.append(bias.astype(jnp.float32).reshape(1, N))

    cost = pl.CostEstimate(
        flops=2 * M * K * N,
        transcendentals=(M * out_n) if act == "glu" else 0,
        bytes_accessed=2 * (M * K + K * N) + 2 * M * out_n)

    return pl.pallas_call(
        functools.partial(_mm_kernel, act=act, has_bias=bias is not None),
        out_shape=jax.ShapeDtypeStruct((M, out_n), out_dtype),
        grid=(pl.cdiv(M, tm), nk),
        in_specs=in_specs,
        out_specs=pl.BlockSpec((tm, out_n), lambda i, k: (i, 0)),
        scratch_shapes=[pltpu.VMEM((tm, N), jnp.float32)],
        compiler_params=pltpu.CompilerParams(
            dimension_semantics=("parallel", "arbitrary"),
            vmem_limit_bytes=VMEM_LIMIT),
        cost_estimate=cost,
    )(*args)


def _bias_act_kernel(x_ref, b_ref, o_ref, *, act):
    y = x_ref[...].astype(jnp.float32) + b_ref[...]
    if act == "relu":
        y = jnp.maximum(y, 0.0)
    o_ref[...] = y.astype(o_ref.dtype)


def bias_act(x, bias, act="none", tile_m=2 * TILE_M):
    M, N = x.shape
    x = x.astype(jnp.bfloat16)
    tm = M if M <= tile_m else tile_m
    return pl.pallas_call(
        functools.partial(_bias_act_kernel, act=act),
        out_shape=jax.ShapeDtypeStruct((M, N), jnp.bfloat16),
        grid=(pl.cdiv(M, tm),),
        in_specs=[pl.BlockSpec((tm, N), lambda i: (i, 0)),
                  pl.BlockSpec((1, N), lambda i: (0, 0))],
        out_specs=pl.BlockSpec((tm, N), lambda i: (i, 0)),
        compiler_params=pltpu.CompilerParams(
            dimension_semantics=("parallel",),
            vmem_limit_bytes=VMEM_LIMIT),
    )(x, bias.astype(jnp.float32).reshape(1, N))


def _bilstm_chunk_kernel(xf_ref, xb_ref, whh_ref, of_ref, ob_ref, h_ref, c_ref):
    """Tc LSTM time-steps for BOTH directions per grid step.

    xf_ref : (Tc, B, 4H) fp32  fwd gate pre-activations (x@Wih + b), natural time
    xb_ref : (Tc, B, 4H) fp32  bwd gate pre-activations, block index reversed
                               by the BlockSpec; reversed within the chunk here
    whh_ref: (2, H, 4H)  bf16  resident recurrent weights (fwd, bwd)
    of/ob  : (Tc, B, H)  bf16  hidden states in natural time order
    h_ref/c_ref: (2, B, H) fp32 VMEM scratch carried across grid steps
    """
    tc = xf_ref.shape[0]
    H = h_ref.shape[-1]

    @pl.when(pl.program_id(0) == 0)
    def _():
        h_ref[...] = jnp.zeros_like(h_ref)
        c_ref[...] = jnp.zeros_like(c_ref)

    def cell(x_gates, d):
        gates = x_gates + jnp.dot(h_ref[d].astype(jnp.bfloat16), whh_ref[d],
                                  preferred_element_type=jnp.float32)
        i = jax.nn.sigmoid(gates[:, 0:H])
        f = jax.nn.sigmoid(gates[:, H:2 * H])
        g = jnp.tanh(gates[:, 2 * H:3 * H])
        o = jax.nn.sigmoid(gates[:, 3 * H:4 * H])
        c_new = f * c_ref[d] + i * g
        h_new = o * jnp.tanh(c_new)
        h_ref[d] = h_new
        c_ref[d] = c_new
        return h_new

    for j in range(tc):                                   # static unroll
        hf = cell(xf_ref[j].astype(jnp.float32), 0)        # fwd: time i*Tc + j
        of_ref[j] = hf.astype(of_ref.dtype)
        hb = cell(xb_ref[tc - 1 - j].astype(jnp.float32), 1)  # bwd: reversed
        ob_ref[tc - 1 - j] = hb.astype(ob_ref.dtype)


def bilstm_pass(xf, xb, whh, chunk):
    """xf/xb: (Tp, B, 4H) fp32 (Tp multiple of chunk); whh: (2, H, 4H) bf16.

    Returns (h_fwd, h_bwd), each (Tp, B, H) bf16, in natural time order; the
    time reversal of the backward direction is expressed with index_maps only.
    """
    Tp, B, G = xf.shape
    H = G // 4
    nb = Tp // chunk
    out_sds = jax.ShapeDtypeStruct((Tp, B, H), jnp.bfloat16)
    return pl.pallas_call(
        _bilstm_chunk_kernel,
        out_shape=(out_sds, out_sds),
        grid=(nb,),
        in_specs=[pl.BlockSpec((chunk, B, G), lambda i: (i, 0, 0)),
                  pl.BlockSpec((chunk, B, G), lambda i, nb=nb: (nb - 1 - i, 0, 0)),
                  pl.BlockSpec((2, H, G), lambda i: (0, 0, 0))],
        out_specs=(pl.BlockSpec((chunk, B, H), lambda i: (i, 0, 0)),
                   pl.BlockSpec((chunk, B, H), lambda i, nb=nb: (nb - 1 - i, 0, 0))),
        scratch_shapes=[pltpu.VMEM((2, B, H), jnp.float32),
                        pltpu.VMEM((2, B, H), jnp.float32)],
        compiler_params=pltpu.CompilerParams(
            dimension_semantics=("arbitrary",),      # sequential recurrence
            vmem_limit_bytes=VMEM_LIMIT),
    )(xf, xb, whh)


# ----------------------------------------------------------------------------
# Conv / ConvTranspose / LSTM wrappers (channels-last glue + Pallas hot path)
# ----------------------------------------------------------------------------
def conv1d_cl(x, wmat, b, kernel, stride, act="none"):
    """x: (B, L, C) channels-last; wmat: (kernel*C, O) with row index k*C + c."""
    B, L, C = x.shape
    Lout = (L - kernel) // stride + 1
    if kernel == 1 and stride == 1:
        a = x.reshape(B * L, C)
    else:
        # K cheap strided slices concatenated channel-wise (no Lout-wise gather).
        a = jnp.concatenate(
            [x[:, k:k + (Lout - 1) * stride + 1:stride, :] for k in range(kernel)],
            axis=-1).reshape(B * Lout, kernel * C)
    y = mm_bias(a, wmat, b, act=act)          # bias + ReLU/GLU fused in-kernel
    return y.reshape(B, Lout, -1)


def conv_transpose1d_cl(x, wmat, b, kernel, stride, act="none"):
    """x: (B, L, C); wmat: (C, O*kernel) with column index o*kernel + k."""
    B, L, C = x.shape
    OK = wmat.shape[1]
    O = OK // kernel
    T = (L - 1) * stride + kernel
    z = mm_bias(x.reshape(B * L, C), wmat)            # (B*L, O*K), no bias
    z = z.reshape(B, L, O, kernel)

    if kernel % stride == 0:
        # Scatter-free phase-interleaved overlap-add.
        m = kernel // stride
        phases = []
        for p in range(stride):
            acc = None
            for j in range(m):
                zp = jnp.pad(z[:, :, :, j * stride + p],
                             ((0, 0), (j, m - 1 - j), (0, 0)))
                acc = zp if acc is None else acc + zp
            phases.append(acc)                         # (B, L+m-1, O)
        out = jnp.stack(phases, axis=2).reshape(B, (L + m - 1) * stride, O)
    else:
        out = jnp.zeros((B, T, O), z.dtype)
        for k in range(kernel):
            out = out.at[:, k:k + (L - 1) * stride + 1:stride, :].add(z[:, :, :, k])

    y = bias_act(out.reshape(B * T, O), b, act=act)
    return y.reshape(B, T, O)


def lstm_forward(x, lstm_params, H, chunk=LSTM_CHUNK):
    """Bidirectional multi-layer LSTM.  x: (T, B, I) bf16 -> (T, B, 2H) bf16."""
    T, B, _ = x.shape
    Tp = ((T + chunk - 1) // chunk) * chunk
    inp = x
    for lp in lstm_params:
        # Single fused input projection for both directions: (T*B, I) @ (I, 8H).
        xp = mm_bias(inp.reshape(T * B, -1), lp['wih_t'], lp['bias'],
                     out_dtype=jnp.float32)
        xp = xp.reshape(T, B, 8 * H)
        if Tp != T:
            # Zero gate pre-activations keep h=c=0 through padded steps, so the
            # backward direction (which sees the padding first) stays exact.
            xp = jnp.pad(xp, ((0, Tp - T), (0, 0), (0, 0)))
        hf, hb = bilstm_pass(xp[:, :, :4 * H], xp[:, :, 4 * H:],
                             lp['whh_t'], chunk)          # (Tp, B, H) each
        inp = jnp.concatenate([hf[:T], hb[:T]], axis=-1)   # (T, B, 2H) bf16
    return inp


def center_trim_time(tensor, ref_len):
    """Trim the time axis (axis 1, channels-last) to ref_len."""
    diff = tensor.shape[1] - ref_len
    if diff < 0:
        raise ValueError("tensor must be larger than reference")
    if diff:
        tensor = tensor[:, diff // 2: tensor.shape[1] - (diff - diff // 2), :]
    return tensor


# ----------------------------------------------------------------------------
# Parameter init (deterministic; weights pre-transposed, stored bf16)
# ----------------------------------------------------------------------------
def _rescale_conv(w, b, ref):
    std = jnp.std(w, ddof=1)
    scale = jnp.sqrt(std / ref)
    return w / scale, b / scale


def init_demucs_params(key, *, sources, n_audio_channels, kernel_size, stride,
                       context, depth, channels, growth, lstm_layers,
                       rescale_ref=0.1):
    keys = iter(jax.random.split(key, 512))

    def u(shape, bound):
        return jax.random.uniform(next(keys), shape, jnp.float32, -bound, bound)

    def conv_init(cin, cout, k):
        bound = 1.0 / (cin * k) ** 0.5
        w, b = _rescale_conv(u((cout, cin, k), bound), u((cout,), bound),
                             rescale_ref)
        # (O, Cin, K) -> (K*Cin, O); row index k*Cin + c matches the im2col order.
        wmat = w.transpose(2, 1, 0).reshape(k * cin, cout)
        return wmat.astype(jnp.bfloat16), b.astype(jnp.float32)

    def convT_init(cin, cout, k):
        bound = 1.0 / (cin * k) ** 0.5
        w, b = _rescale_conv(u((cin, cout, k), bound), u((cout,), bound),
                             rescale_ref)
        # (Cin, O, K) -> (Cin, O*K); column index o*K + k.
        return w.reshape(cin, cout * k).astype(jnp.bfloat16), b.astype(jnp.float32)

    enc, dec, loc_dec = [], [], []
    in_ch = n_audio_channels
    ch = channels
    for index in range(depth):
        e = {}
        e['wm1'], e['b1'] = conv_init(in_ch, ch, kernel_size)
        e['wm2'], e['b2'] = conv_init(ch, 2 * ch, 1)
        enc.append(e)

        if index > 0:
            out_ch, out_loc = in_ch, 3
        else:
            out_ch, out_loc = sources * n_audio_channels, sources * 3
        d = {}
        d['cwm'], d['cb'] = conv_init(ch, 2 * ch, context)
        d['twm'], d['tb'] = convT_init(ch, out_ch, kernel_size)
        d['relu'] = index > 0
        dec.insert(0, d)

        ld = {}
        ld['twm'], ld['tb'] = convT_init(3, out_loc, kernel_size)
        ld['relu'] = index > 0
        loc_dec.insert(0, ld)

        in_ch = ch
        ch = int(growth * ch)

    H = in_ch  # hidden size = channels after encoder
    lstm = []
    for layer in range(lstm_layers):
        in_size = H if layer == 0 else 2 * H
        bound = 1.0 / H ** 0.5
        wih_t, biases, whh_t = [], [], []
        for _direction in range(2):
            Wih = u((4 * H, in_size), bound)
            Whh = u((4 * H, H), bound)
            bih = u((4 * H,), bound)
            bhh = u((4 * H,), bound)
            wih_t.append(Wih.T)                 # (in, 4H)
            biases.append(bih + bhh)
            whh_t.append(Whh.T)                 # (H, 4H)
        lstm.append(dict(
            wih_t=jnp.concatenate(wih_t, axis=1).astype(jnp.bfloat16),  # (in, 8H)
            bias=jnp.concatenate(biases, axis=0).astype(jnp.float32),   # (8H,)
            whh_t=jnp.stack(whh_t, axis=0).astype(jnp.bfloat16)))       # (2, H, 4H)

    bound = 1.0 / (2 * H) ** 0.5
    lin_w = u((H, 2 * H), bound)
    lin_b = u((H,), bound)
    loc_w = u((3, 2 * H), bound)
    loc_b = u((3,), bound)
    # Fused lstm_linear + loc_prediction head (shared (T*B, 2H) input).
    head_w = jnp.concatenate([lin_w.T, loc_w.T], axis=1).astype(jnp.bfloat16)
    head_b = jnp.concatenate([lin_b, loc_b], axis=0).astype(jnp.float32)

    return dict(enc=enc, dec=dec, loc_dec=loc_dec, lstm=lstm, H=H,
                head_w=head_w, head_b=head_b)


# ----------------------------------------------------------------------------
# Demucs forward (upsample=False path), channels-last bf16 activations
# ----------------------------------------------------------------------------
def demucs_forward(params, mix, *, sources, n_audio_channels, kernel_size,
                   stride, context):
    x = mix.astype(jnp.bfloat16).transpose(0, 2, 1)        # (B, L, C)
    saved = [x]
    for e in params['enc']:
        x = conv1d_cl(x, e['wm1'], e['b1'], kernel_size, stride, act="relu")
        x = conv1d_cl(x, e['wm2'], e['b2'], 1, 1, act="glu")
        saved.append(x)

    # LSTM (time-major): (B, T, C) -> (T, B, C)
    x = x.transpose(1, 0, 2)
    x = lstm_forward(x, params['lstm'], params['H'])        # (T, B, 2H) bf16
    T, B, _ = x.shape
    H = params['H']

    heads = mm_bias(x.reshape(T * B, 2 * H), params['head_w'], params['head_b'])
    heads = heads.reshape(T, B, H + 3)
    x = heads[:, :, :H].transpose(1, 0, 2)                  # (B, T, H)
    locs = heads[:, :, H:].transpose(1, 0, 2)               # (B, T, 3)

    for d in params['dec']:
        skip = center_trim_time(saved.pop(-1), x.shape[1])
        x = x + skip
        x = conv1d_cl(x, d['cwm'], d['cb'], context, 1, act="glu")
        x = conv_transpose1d_cl(x, d['twm'], d['tb'], kernel_size, stride,
                                act="relu" if d['relu'] else "none")

    for ld in params['loc_dec']:
        locs = conv_transpose1d_cl(locs, ld['twm'], ld['tb'], kernel_size, stride,
                                   act="relu" if ld['relu'] else "none")

    Bsz, Tout, _ = x.shape
    x = x.transpose(0, 2, 1).reshape(Bsz, sources, n_audio_channels, Tout)
    Tl = locs.shape[1]
    locs = locs.transpose(0, 2, 1).reshape(Bsz, sources, 3, Tl)
    return x.astype(jnp.float32), locs.astype(jnp.float32)


# ----------------------------------------------------------------------------
if __name__ == "__main__":
    cfg = dict(sources=2, n_audio_channels=2, kernel_size=8, stride=4,
               context=3, depth=2, channels=8, growth=2.0, lstm_layers=2)

    key = jax.random.PRNGKey(0)
    pkey, xkey = jax.random.split(key)
    params = init_demucs_params(pkey, **cfg, rescale_ref=0.1)

    # time = valid_length(16) for this config (depth=2, k=8, s=4, context=3) = 68
    B, time = 2, 68
    mix = jax.random.normal(xkey, (B, cfg['n_audio_channels'], time), jnp.float32)

    fwd = jax.jit(lambda m: demucs_forward(
        params, m, sources=cfg['sources'],
        n_audio_channels=cfg['n_audio_channels'],
        kernel_size=cfg['kernel_size'], stride=cfg['stride'],
        context=cfg['context']))

    x_out, locs_out = fwd(mix)
    jax.block_until_ready((x_out, locs_out))

    assert x_out.shape == (B, cfg['sources'], cfg['n_audio_channels'], 28), x_out.shape
    assert locs_out.shape == (B, cfg['sources'], 3, 68), locs_out.shape
    assert bool(jnp.all(jnp.isfinite(x_out))) and bool(jnp.all(jnp.isfinite(locs_out)))
    print("KERNEL_OK")
</pallas_src>

<mosaic_0001>
module attributes {stable_mosaic.version = 11 : i64} {
  func.func @_mm_kernel(%arg0: i32, %arg1: i32, %arg2: memref<32x16xbf16, #tpu.memory_space<vmem>>, %arg3: memref<16x8xbf16, #tpu.memory_space<vmem>>, %arg4: memref<1x8xf32, #tpu.memory_space<vmem>>, %arg5: memref<32x8xbf16, #tpu.memory_space<vmem>>, %arg6: memref<32x8xf32, #tpu.memory_space<vmem>>) attributes {dimension_semantics = [#tpu.dimension_semantics<parallel>, #tpu.dimension_semantics<arbitrary>], iteration_bounds = array<i64: 1, 1>, scalar_prefetch = 0 : i64, scratch_operands = 1 : i64, tpu.core_type = #tpu.core_type<tc>, window_params = [{transform_indices = @transform_0, window_bounds = array<i64: 32, 16>}, {transform_indices = @transform_1, window_bounds = array<i64: 16, 8>}, {pipeline_mode = #tpu.pipeline_mode<synchronous>, transform_indices = @transform_2, window_bounds = array<i64: 1, 8>}, {transform_indices = @transform_3, window_bounds = array<i64: 32, 8>}]} {
    %c0_i32 = arith.constant 0 : i32
    %0 = arith.cmpi eq, %arg1, %c0_i32 : i32
    %1 = arith.extui %0 : i1 to i32
    %c0_i32_0 = arith.constant 0 : i32
    %2 = arith.cmpi ne, %1, %c0_i32_0 : i32
    scf.if %2 {
      %cst_10 = arith.constant 0.000000e+00 : f32
      %12 = vector.broadcast %cst_10 : f32 to vector<32x8xf32>
      %c0_11 = arith.constant 0 : index
      %c0_12 = arith.constant 0 : index
      %13 = vector.load %arg6[%c0_11, %c0_12] : memref<32x8xf32, #tpu.memory_space<vmem>>, vector<32x8xf32>
      tpu.vector_store %arg6[%c0_11, %c0_12], %12 {strides = array<i32>} : memref<32x8xf32, #tpu.memory_space<vmem>>, vector<32x8xf32>,
    } else {
    }
    %c0 = arith.constant 0 : index
    %c0_1 = arith.constant 0 : index
    %3 = vector.load %arg6[%c0, %c0_1] : memref<32x8xf32, #tpu.memory_space<vmem>>, vector<32x8xf32>
    %c0_2 = arith.constant 0 : index
    %c0_3 = arith.constant 0 : index
    %4 = vector.load %arg2[%c0_2, %c0_3] : memref<32x16xbf16, #tpu.memory_space<vmem>>, vector<32x16xbf16>
    %c0_4 = arith.constant 0 : index
    %c0_5 = arith.constant 0 : index
    %5 = vector.load %arg3[%c0_4, %c0_5] : memref<16x8xbf16, #tpu.memory_space<vmem>>, vector<16x8xbf16>
    %cst = arith.constant dense<0.000000e+00> : vector<32x8xf32>
    %6 = tpu.matmul %4, %5, %cst {dimension_numbers = #tpu.dot_dimension_numbers<[1], [0], [0], [1], [0, 0, 1, 1], [], []>} : vector<32x16xbf16>, vector<16x8xbf16>, vector<32x8xf32> -> vector<32x8xf32>
    %7 = arith.addf %3, %6 : vector<32x8xf32>
    %c0_6 = arith.constant 0 : index
    %c0_7 = arith.constant 0 : index
    %8 = vector.load %arg6[%c0_6, %c0_7] : memref<32x8xf32, #tpu.memory_space<vmem>>, vector<32x8xf32>
    tpu.vector_store %arg6[%c0_6, %c0_7], %7 {strides = array<i32>} : memref<32x8xf32, #tpu.memory_space<vmem>>, vector<32x8xf32>,
    %c0_i32_8 = arith.constant 0 : i32
    %9 = arith.cmpi eq, %arg1, %c0_i32_8 : i32
    %10 = arith.extui %9 : i1 to i32
    %c0_i32_9 = arith.constant 0 : i32
    %11 = arith.cmpi ne, %10, %c0_i32_9 : i32
    scf.if %11 {
      %c0_10 = arith.constant 0 : index
      %c0_11 = arith.constant 0 : index
      %12 = vector.load %arg6[%c0_10, %c0_11] : memref<32x8xf32, #tpu.memory_space<vmem>>, vector<32x8xf32>
      %c0_12 = arith.constant 0 : index
      %c0_13 = arith.constant 0 : index
      %13 = vector.load %arg4[%c0_12, %c0_13] : memref<1x8xf32, #tpu.memory_space<vmem>>, vector<1x8xf32>
      %14 = vector.broadcast %13 : vector<1x8xf32> to vector<32x8xf32>
      %15 = arith.addf %12, %14 : vector<32x8xf32>
      %cst_14 = arith.constant 0.000000e+00 : f32
      %16 = vector.broadcast %cst_14 : f32 to vector<32x8xf32>
      %17 = arith.maximumf %15, %16 : vector<32x8xf32>
      %18 = arith.truncf %17 : vector<32x8xf32> to vector<32x8xbf16>
      %c0_15 = arith.constant 0 : index
      %c0_16 = arith.constant 0 : index
      %19 = vector.load %arg5[%c0_15, %c0_16] : memref<32x8xbf16, #tpu.memory_space<vmem>>, vector<32x8xbf16>
      tpu.vector_store %arg5[%c0_15, %c0_16], %18 {strides = array<i32>} : memref<32x8xbf16, #tpu.memory_space<vmem>>, vector<32x8xbf16>,
    } else {
    }
    return
  }
  func.func @transform_0(%arg0: i32, %arg1: i32) -> (i32, i32) {
    %c0_i32 = arith.constant 0 : i32
    return %arg0, %arg1 : i32, i32
  }
  func.func @transform_1(%arg0: i32, %arg1: i32) -> (i32, i32) {
    %c0_i32 = arith.constant 0 : i32
    %c0_i32_0 = arith.constant 0 : i32
    return %arg1, %c0_i32 : i32, i32
  }
  func.func @transform_2(%arg0: i32, %arg1: i32) -> (i32, i32) {
    %c0_i32 = arith.constant 0 : i32
    %c0_i32_0 = arith.constant 0 : i32
    %c0_i32_1 = arith.constant 0 : i32
    return %c0_i32, %c0_i32_0 : i32, i32
  }
  func.func @transform_3(%arg0: i32, %arg1: i32) -> (i32, i32) {
    %c0_i32 = arith.constant 0 : i32
    %c0_i32_0 = arith.constant 0 : i32
    return %arg0, %c0_i32 : i32, i32
  }
}

module attributes {stable_mosaic.version = 11 : i64} {
  func.func @_mm_kernel(%arg0: i32, %arg1: i32, %arg2: memref<32x8xbf16, #tpu.memory_space<vmem>>, %arg3: memref<8x16xbf16, #tpu.memory_space<vmem>>, %arg4: memref<1x16xf32, #tpu.memory_space<vmem>>, %arg5: memref<32x8xbf16, #tpu.memory_space<vmem>>, %arg6: memref<32x16xf32, #tpu.memory_space<vmem>>) attributes {dimension_semantics = [#tpu.dimension_semantics<parallel>, #tpu.dimension_semantics<arbitrary>], iteration_bounds = array<i64: 1, 1>, scalar_prefetch = 0 : i64, scratch_operands = 1 : i64, tpu.core_type = #tpu.core_type<tc>, window_params = [{transform_indices = @transform_0, window_bounds = array<i64: 32, 8>}, {transform_indices = @transform_1, window_bounds = array<i64: 8, 16>}, {pipeline_mode = #tpu.pipeline_mode<synchronous>, transform_indices = @transform_2, window_bounds = array<i64: 1, 16>}, {transform_indices = @transform_3, window_bounds = array<i64: 32, 8>}]} {
    %c0_i32 = arith.constant 0 : i32
    %0 = arith.cmpi eq, %arg1, %c0_i32 : i32
    %1 = arith.extui %0 : i1 to i32
    %c0_i32_0 = arith.constant 0 : i32
    %2 = arith.cmpi ne, %1, %c0_i32_0 : i32
    scf.if %2 {
      %cst_10 = arith.constant 0.000000e+00 : f32
      %12 = vector.broadcast %cst_10 : f32 to vector<32x16xf32>
      %c0_11 = arith.constant 0 : index
      %c0_12 = arith.constant 0 : index
      %13 = vector.load %arg6[%c0_11, %c0_12] : memref<32x16xf32, #tpu.memory_space<vmem>>, vector<32x16xf32>
      tpu.vector_store %arg6[%c0_11, %c0_12], %12 {strides = array<i32>} : memref<32x16xf32, #tpu.memory_space<vmem>>, vector<32x16xf32>,
    } else {
    }
    %c0 = arith.constant 0 : index
    %c0_1 = arith.constant 0 : index
    %3 = vector.load %arg6[%c0, %c0_1] : memref<32x16xf32, #tpu.memory_space<vmem>>, vector<32x16xf32>
    %c0_2 = arith.constant 0 : index
    %c0_3 = arith.constant 0 : index
    %4 = vector.load %arg2[%c0_2, %c0_3] : memref<32x8xbf16, #tpu.memory_space<vmem>>, vector<32x8xbf16>
    %c0_4 = arith.constant 0 : index
    %c0_5 = arith.constant 0 : index
    %5 = vector.load %arg3[%c0_4, %c0_5] : memref<8x16xbf16, #tpu.memory_space<vmem>>, vector<8x16xbf16>
    %cst = arith.constant dense<0.000000e+00> : vector<32x16xf32>
    %6 = tpu.matmul %4, %5, %cst {dimension_numbers = #tpu.dot_dimension_numbers<[1], [0], [0], [1], [0, 0, 1, 1], [], []>} : vector<32x8xbf16>, vector<8x16xbf16>, vector<32x16xf32> -> vector<32x16xf32>
    %7 = arith.addf %3, %6 : vector<32x16xf32>
    %c0_6 = arith.constant 0 : index
    %c0_7 = arith.constant 0 : index
    %8 = vector.load %arg6[%c0_6, %c0_7] : memref<32x16xf32, #tpu.memory_space<vmem>>, vector<32x16xf32>
    tpu.vector_store %arg6[%c0_6, %c0_7], %7 {strides = array<i32>} : memref<32x16xf32, #tpu.memory_space<vmem>>, vector<32x16xf32>,
    %c0_i32_8 = arith.constant 0 : i32
    %9 = arith.cmpi eq, %arg1, %c0_i32_8 : i32
    %10 = arith.extui %9 : i1 to i32
    %c0_i32_9 = arith.constant 0 : i32
    %11 = arith.cmpi ne, %10, %c0_i32_9 : i32
    scf.if %11 {
      %c0_10 = arith.constant 0 : index
      %c0_11 = arith.constant 0 : index
      %12 = vector.load %arg6[%c0_10, %c0_11] : memref<32x16xf32, #tpu.memory_space<vmem>>, vector<32x16xf32>
      %c0_12 = arith.constant 0 : index
      %c0_13 = arith.constant 0 : index
      %13 = vector.load %arg4[%c0_12, %c0_13] : memref<1x16xf32, #tpu.memory_space<vmem>>, vector<1x16xf32>
      %14 = vector.broadcast %13 : vector<1x16xf32> to vector<32x16xf32>
      %15 = arith.addf %12, %14 : vector<32x16xf32>
      %16 = vector.extract_strided_slice %15 {offsets = [0, 0], sizes = [32, 8], strides = [1, 1]} : vector<32x16xf32> to vector<32x8xf32>
      %17 = vector.extract_strided_slice %15 {offsets = [0, 8], sizes = [32, 8], strides = [1, 1]} : vector<32x16xf32> to vector<32x8xf32>
      %18 = arith.negf %17 : vector<32x8xf32>
      %19 = math.exp %18 : vector<32x8xf32>
      %cst_14 = arith.constant 1.000000e+00 : f32
      %20 = vector.broadcast %cst_14 : f32 to vector<32x8xf32>
      %21 = arith.addf %20, %19 : vector<32x8xf32>
      %22 = arith.divf %20, %21 : vector<32x8xf32>
      %23 = arith.mulf %16, %22 : vector<32x8xf32>
      %24 = arith.truncf %23 : vector<32x8xf32> to vector<32x8xbf16>
      %c0_15 = arith.constant 0 : index
      %c0_16 = arith.constant 0 : index
      %25 = vector.load %arg5[%c0_15, %c0_16] : memref<32x8xbf16, #tpu.memory_space<vmem>>, vector<32x8xbf16>
      tpu.vector_store %arg5[%c0_15, %c0_16], %24 {strides = array<i32>} : memref<32x8xbf16, #tpu.memory_space<vmem>>, vector<32x8xbf16>,
    } else {
    }
    return
  }
  func.func @transform_0(%arg0: i32, %arg1: i32) -> (i32, i32) {
    %c0_i32 = arith.constant 0 : i32
    return %arg0, %arg1 : i32, i32
  }
  func.func @transform_1(%arg0: i32, %arg1: i32) -> (i32, i32) {
    %c0_i32 = arith.constant 0 : i32
    %c0_i32_0 = arith.constant 0 : i32
    return %arg1, %c0_i32 : i32, i32
  }
  func.func @transform_2(%arg0: i32, %arg1: i32) -> (i32, i32) {
    %c0_i32 = arith.constant 0 : i32
    %c0_i32_0 = arith.constant 0 : i32
    %c0_i32_1 = arith.constant 0 : i32
    return %c0_i32, %c0_i32_0 : i32, i32
  }
  func.func @transform_3(%arg0: i32, %arg1: i32) -> (i32, i32) {
    %c0_i32 = arith.constant 0 : i32
    %c0_i32_0 = arith.constant 0 : i32
    return %arg0, %c0_i32 : i32, i32
  }
}

module attributes {stable_mosaic.version = 11 : i64} {
  func.func @_mm_kernel(%arg0: i32, %arg1: i32, %arg2: memref<6x64xbf16, #tpu.memory_space<vmem>>, %arg3: memref<64x16xbf16, #tpu.memory_space<vmem>>, %arg4: memref<1x16xf32, #tpu.memory_space<vmem>>, %arg5: memref<6x16xbf16, #tpu.memory_space<vmem>>, %arg6: memref<6x16xf32, #tpu.memory_space<vmem>>) attributes {dimension_semantics = [#tpu.dimension_semantics<parallel>, #tpu.dimension_semantics<arbitrary>], iteration_bounds = array<i64: 1, 1>, scalar_prefetch = 0 : i64, scratch_operands = 1 : i64, tpu.core_type = #tpu.core_type<tc>, window_params = [{transform_indices = @transform_0, window_bounds = array<i64: 6, 64>}, {transform_indices = @transform_1, window_bounds = array<i64: 64, 16>}, {pipeline_mode = #tpu.pipeline_mode<synchronous>, transform_indices = @transform_2, window_bounds = array<i64: 1, 16>}, {transform_indices = @transform_3, window_bounds = array<i64: 6, 16>}]} {
    %c0_i32 = arith.constant 0 : i32
    %0 = arith.cmpi eq, %arg1, %c0_i32 : i32
    %1 = arith.extui %0 : i1 to i32
    %c0_i32_0 = arith.constant 0 : i32
    %2 = arith.cmpi ne, %1, %c0_i32_0 : i32
    scf.if %2 {
      %cst_10 = arith.constant 0.000000e+00 : f32
      %12 = vector.broadcast %cst_10 : f32 to vector<6x16xf32>
      %c0_11 = arith.constant 0 : index
      %c0_12 = arith.constant 0 : index
      %13 = vector.load %arg6[%c0_11, %c0_12] : memref<6x16xf32, #tpu.memory_space<vmem>>, vector<6x16xf32>
      tpu.vector_store %arg6[%c0_11, %c0_12], %12 {strides = array<i32>} : memref<6x16xf32, #tpu.memory_space<vmem>>, vector<6x16xf32>,
    } else {
    }
    %c0 = arith.constant 0 : index
    %c0_1 = arith.constant 0 : index
    %3 = vector.load %arg6[%c0, %c0_1] : memref<6x16xf32, #tpu.memory_space<vmem>>, vector<6x16xf32>
    %c0_2 = arith.constant 0 : index
    %c0_3 = arith.constant 0 : index
    %4 = vector.load %arg2[%c0_2, %c0_3] : memref<6x64xbf16, #tpu.memory_space<vmem>>, vector<6x64xbf16>
    %c0_4 = arith.constant 0 : index
    %c0_5 = arith.constant 0 : index
    %5 = vector.load %arg3[%c0_4, %c0_5] : memref<64x16xbf16, #tpu.memory_space<vmem>>, vector<64x16xbf16>
    %cst = arith.constant dense<0.000000e+00> : vector<6x16xf32>
    %6 = tpu.matmul %4, %5, %cst {dimension_numbers = #tpu.dot_dimension_numbers<[1], [0], [0], [1], [0, 0, 1, 1], [], []>} : vector<6x64xbf16>, vector<64x16xbf16>, vector<6x16xf32> -> vector<6x16xf32>
    %7 = arith.addf %3, %6 : vector<6x16xf32>
    %c0_6 = arith.constant 0 : index
    %c0_7 = arith.constant 0 : index
    %8 = vector.load %arg6[%c0_6, %c0_7] : memref<6x16xf32, #tpu.memory_space<vmem>>, vector<6x16xf32>
    tpu.vector_store %arg6[%c0_6, %c0_7], %7 {strides = array<i32>} : memref<6x16xf32, #tpu.memory_space<vmem>>, vector<6x16xf32>,
    %c0_i32_8 = arith.constant 0 : i32
    %9 = arith.cmpi eq, %arg1, %c0_i32_8 : i32
    %10 = arith.extui %9 : i1 to i32
    %c0_i32_9 = arith.constant 0 : i32
    %11 = arith.cmpi ne, %10, %c0_i32_9 : i32
    scf.if %11 {
      %c0_10 = arith.constant 0 : index
      %c0_11 = arith.constant 0 : index
      %12 = vector.load %arg6[%c0_10, %c0_11] : memref<6x16xf32, #tpu.memory_space<vmem>>, vector<6x16xf32>
      %c0_12 = arith.constant 0 : index
      %c0_13 = arith.constant 0 : index
      %13 = vector.load %arg4[%c0_12, %c0_13] : memref<1x16xf32, #tpu.memory_space<vmem>>, vector<1x16xf32>
      %14 = vector.broadcast %13 : vector<1x16xf32> to vector<6x16xf32>
      %15 = arith.addf %12, %14 : vector<6x16xf32>
      %cst_14 = arith.constant 0.000000e+00 : f32
      %16 = vector.broadcast %cst_14 : f32 to vector<6x16xf32>
      %17 = arith.maximumf %15, %16 : vector<6x16xf32>
      %18 = arith.truncf %17 : vector<6x16xf32> to vector<6x16xbf16>
      %c0_15 = arith.constant 0 : index
      %c0_16 = arith.constant 0 : index
      %19 = vector.load %arg5[%c0_15, %c0_16] : memref<6x16xbf16, #tpu.memory_space<vmem>>, vector<6x16xbf16>
      tpu.vector_store %arg5[%c0_15, %c0_16], %18 {strides = array<i32>} : memref<6x16xbf16, #tpu.memory_space<vmem>>, vector<6x16xbf16>,
    } else {
    }
    return
  }
  func.func @transform_0(%arg0: i32, %arg1: i32) -> (i32, i32) {
    %c0_i32 = arith.constant 0 : i32
    return %arg0, %arg1 : i32, i32
  }
  func.func @transform_1(%arg0: i32, %arg1: i32) -> (i32, i32) {
    %c0_i32 = arith.constant 0 : i32
    %c0_i32_0 = arith.constant 0 : i32
    return %arg1, %c0_i32 : i32, i32
  }
  func.func @transform_2(%arg0: i32, %arg1: i32) -> (i32, i32) {
    %c0_i32 = arith.constant 0 : i32
    %c0_i32_0 = arith.constant 0 : i32
    %c0_i32_1 = arith.constant 0 : i32
    return %c0_i32, %c0_i32_0 : i32, i32
  }
  func.func @transform_3(%arg0: i32, %arg1: i32) -> (i32, i32) {
    %c0_i32 = arith.constant 0 : i32
    %c0_i32_0 = arith.constant 0 : i32
    return %arg0, %c0_i32 : i32, i32
  }
}

module attributes {stable_mosaic.version = 11 : i64} {
  func.func @_mm_kernel(%arg0: i32, %arg1: i32, %arg2: memref<6x16xbf16, #tpu.memory_space<vmem>>, %arg3: memref<16x32xbf16, #tpu.memory_space<vmem>>, %arg4: memref<1x32xf32, #tpu.memory_space<vmem>>, %arg5: memref<6x16xbf16, #tpu.memory_space<vmem>>, %arg6: memref<6x32xf32, #tpu.memory_space<vmem>>) attributes {dimension_semantics = [#tpu.dimension_semantics<parallel>, #tpu.dimension_semantics<arbitrary>], iteration_bounds = array<i64: 1, 1>, scalar_prefetch = 0 : i64, scratch_operands = 1 : i64, tpu.core_type = #tpu.core_type<tc>, window_params = [{transform_indices = @transform_0, window_bounds = array<i64: 6, 16>}, {transform_indices = @transform_1, window_bounds = array<i64: 16, 32>}, {pipeline_mode = #tpu.pipeline_mode<synchronous>, transform_indices = @transform_2, window_bounds = array<i64: 1, 32>}, {transform_indices = @transform_3, window_bounds = array<i64: 6, 16>}]} {
    %c0_i32 = arith.constant 0 : i32
    %0 = arith.cmpi eq, %arg1, %c0_i32 : i32
    %1 = arith.extui %0 : i1 to i32
    %c0_i32_0 = arith.constant 0 : i32
    %2 = arith.cmpi ne, %1, %c0_i32_0 : i32
    scf.if %2 {
      %cst_10 = arith.constant 0.000000e+00 : f32
      %12 = vector.broadcast %cst_10 : f32 to vector<6x32xf32>
      %c0_11 = arith.constant 0 : index
      %c0_12 = arith.constant 0 : index
      %13 = vector.load %arg6[%c0_11, %c0_12] : memref<6x32xf32, #tpu.memory_space<vmem>>, vector<6x32xf32>
      tpu.vector_store %arg6[%c0_11, %c0_12], %12 {strides = array<i32>} : memref<6x32xf32, #tpu.memory_space<vmem>>, vector<6x32xf32>,
    } else {
    }
    %c0 = arith.constant 0 : index
    %c0_1 = arith.constant 0 : index
    %3 = vector.load %arg6[%c0, %c0_1] : memref<6x32xf32, #tpu.memory_space<vmem>>, vector<6x32xf32>
    %c0_2 = arith.constant 0 : index
    %c0_3 = arith.constant 0 : index
    %4 = vector.load %arg2[%c0_2, %c0_3] : memref<6x16xbf16, #tpu.memory_space<vmem>>, vector<6x16xbf16>
    %c0_4 = arith.constant 0 : index
    %c0_5 = arith.constant 0 : index
    %5 = vector.load %arg3[%c0_4, %c0_5] : memref<16x32xbf16, #tpu.memory_space<vmem>>, vector<16x32xbf16>
    %cst = arith.constant dense<0.000000e+00> : vector<6x32xf32>
    %6 = tpu.matmul %4, %5, %cst {dimension_numbers = #tpu.dot_dimension_numbers<[1], [0], [0], [1], [0, 0, 1, 1], [], []>} : vector<6x16xbf16>, vector<16x32xbf16>, vector<6x32xf32> -> vector<6x32xf32>
    %7 = arith.addf %3, %6 : vector<6x32xf32>
    %c0_6 = arith.constant 0 : index
    %c0_7 = arith.constant 0 : index
    %8 = vector.load %arg6[%c0_6, %c0_7] : memref<6x32xf32, #tpu.memory_space<vmem>>, vector<6x32xf32>
    tpu.vector_store %arg6[%c0_6, %c0_7], %7 {strides = array<i32>} : memref<6x32xf32, #tpu.memory_space<vmem>>, vector<6x32xf32>,
    %c0_i32_8 = arith.constant 0 : i32
    %9 = arith.cmpi eq, %arg1, %c0_i32_8 : i32
    %10 = arith.extui %9 : i1 to i32
    %c0_i32_9 = arith.constant 0 : i32
    %11 = arith.cmpi ne, %10, %c0_i32_9 : i32
    scf.if %11 {
      %c0_10 = arith.constant 0 : index
      %c0_11 = arith.constant 0 : index
      %12 = vector.load %arg6[%c0_10, %c0_11] : memref<6x32xf32, #tpu.memory_space<vmem>>, vector<6x32xf32>
      %c0_12 = arith.constant 0 : index
      %c0_13 = arith.constant 0 : index
      %13 = vector.load %arg4[%c0_12, %c0_13] : memref<1x32xf32, #tpu.memory_space<vmem>>, vector<1x32xf32>
      %14 = vector.broadcast %13 : vector<1x32xf32> to vector<6x32xf32>
      %15 = arith.addf %12, %14 : vector<6x32xf32>
      %16 = vector.extract_strided_slice %15 {offsets = [0, 0], sizes = [6, 16], strides = [1, 1]} : vector<6x32xf32> to vector<6x16xf32>
      %17 = vector.extract_strided_slice %15 {offsets = [0, 16], sizes = [6, 16], strides = [1, 1]} : vector<6x32xf32> to vector<6x16xf32>
      %18 = arith.negf %17 : vector<6x16xf32>
      %19 = math.exp %18 : vector<6x16xf32>
      %cst_14 = arith.constant 1.000000e+00 : f32
      %20 = vector.broadcast %cst_14 : f32 to vector<6x16xf32>
      %21 = arith.addf %20, %19 : vector<6x16xf32>
      %22 = arith.divf %20, %21 : vector<6x16xf32>
      %23 = arith.mulf %16, %22 : vector<6x16xf32>
      %24 = arith.truncf %23 : vector<6x16xf32> to vector<6x16xbf16>
      %c0_15 = arith.constant 0 : index
      %c0_16 = arith.constant 0 : index
      %25 = vector.load %arg5[%c0_15, %c0_16] : memref<6x16xbf16, #tpu.memory_space<vmem>>, vector<6x16xbf16>
      tpu.vector_store %arg5[%c0_15, %c0_16], %24 {strides = array<i32>} : memref<6x16xbf16, #tpu.memory_space<vmem>>, vector<6x16xbf16>,
    } else {
    }
    return
  }
  func.func @transform_0(%arg0: i32, %arg1: i32) -> (i32, i32) {
    %c0_i32 = arith.constant 0 : i32
    return %arg0, %arg1 : i32, i32
  }
  func.func @transform_1(%arg0: i32, %arg1: i32) -> (i32, i32) {
    %c0_i32 = arith.constant 0 : i32
    %c0_i32_0 = arith.constant 0 : i32
    return %arg1, %c0_i32 : i32, i32
  }
  func.func @transform_2(%arg0: i32, %arg1: i32) -> (i32, i32) {
    %c0_i32 = arith.constant 0 : i32
    %c0_i32_0 = arith.constant 0 : i32
    %c0_i32_1 = arith.constant 0 : i32
    return %c0_i32, %c0_i32_0 : i32, i32
  }
  func.func @transform_3(%arg0: i32, %arg1: i32) -> (i32, i32) {
    %c0_i32 = arith.constant 0 : i32
    %c0_i32_0 = arith.constant 0 : i32
    return %arg0, %c0_i32 : i32, i32
  }
}

module attributes {stable_mosaic.version = 11 : i64} {
  func.func @_mm_kernel(%arg0: i32, %arg1: i32, %arg2: memref<6x16xbf16, #tpu.memory_space<vmem>>, %arg3: memref<16x128xbf16, #tpu.memory_space<vmem>>, %arg4: memref<1x128xf32, #tpu.memory_space<vmem>>, %arg5: memref<6x128xf32, #tpu.memory_space<vmem>>, %arg6: memref<6x128xf32, #tpu.memory_space<vmem>>) attributes {dimension_semantics = [#tpu.dimension_semantics<parallel>, #tpu.dimension_semantics<arbitrary>], iteration_bounds = array<i64: 1, 1>, scalar_prefetch = 0 : i64, scratch_operands = 1 : i64, tpu.core_type = #tpu.core_type<tc>, window_params = [{transform_indices = @transform_0, window_bounds = array<i64: 6, 16>}, {transform_indices = @transform_1, window_bounds = array<i64: 16, 128>}, {pipeline_mode = #tpu.pipeline_mode<synchronous>, transform_indices = @transform_2, window_bounds = array<i64: 1, 128>}, {transform_indices = @transform_3, window_bounds = array<i64: 6, 128>}]} {
    %c0_i32 = arith.constant 0 : i32
    %0 = arith.cmpi eq, %arg1, %c0_i32 : i32
    %1 = arith.extui %0 : i1 to i32
    %c0_i32_0 = arith.constant 0 : i32
    %2 = arith.cmpi ne, %1, %c0_i32_0 : i32
    scf.if %2 {
      %cst_10 = arith.constant 0.000000e+00 : f32
      %12 = vector.broadcast %cst_10 : f32 to vector<6x128xf32>
      %c0_11 = arith.constant 0 : index
      %c0_12 = arith.constant 0 : index
      %13 = vector.load %arg6[%c0_11, %c0_12] : memref<6x128xf32, #tpu.memory_space<vmem>>, vector<6x128xf32>
      tpu.vector_store %arg6[%c0_11, %c0_12], %12 {strides = array<i32>} : memref<6x128xf32, #tpu.memory_space<vmem>>, vector<6x128xf32>,
    } else {
    }
    %c0 = arith.constant 0 : index
    %c0_1 = arith.constant 0 : index
    %3 = vector.load %arg6[%c0, %c0_1] : memref<6x128xf32, #tpu.memory_space<vmem>>, vector<6x128xf32>
    %c0_2 = arith.constant 0 : index
    %c0_3 = arith.constant 0 : index
    %4 = vector.load %arg2[%c0_2, %c0_3] : memref<6x16xbf16, #tpu.memory_space<vmem>>, vector<6x16xbf16>
    %c0_4 = arith.constant 0 : index
    %c0_5 = arith.constant 0 : index
    %5 = vector.load %arg3[%c0_4, %c0_5] : memref<16x128xbf16, #tpu.memory_space<vmem>>, vector<16x128xbf16>
    %cst = arith.constant dense<0.000000e+00> : vector<6x128xf32>
    %6 = tpu.matmul %4, %5, %cst {dimension_numbers = #tpu.dot_dimension_numbers<[1], [0], [0], [1], [0, 0, 1, 1], [], []>} : vector<6x16xbf16>, vector<16x128xbf16>, vector<6x128xf32> -> vector<6x128xf32>
    %7 = arith.addf %3, %6 : vector<6x128xf32>
    %c0_6 = arith.constant 0 : index
    %c0_7 = arith.constant 0 : index
    %8 = vector.load %arg6[%c0_6, %c0_7] : memref<6x128xf32, #tpu.memory_space<vmem>>, vector<6x128xf32>
    tpu.vector_store %arg6[%c0_6, %c0_7], %7 {strides = array<i32>} : memref<6x128xf32, #tpu.memory_space<vmem>>, vector<6x128xf32>,
    %c0_i32_8 = arith.constant 0 : i32
    %9 = arith.cmpi eq, %arg1, %c0_i32_8 : i32
    %10 = arith.extui %9 : i1 to i32
    %c0_i32_9 = arith.constant 0 : i32
    %11 = arith.cmpi ne, %10, %c0_i32_9 : i32
    scf.if %11 {
      %c0_10 = arith.constant 0 : index
      %c0_11 = arith.constant 0 : index
      %12 = vector.load %arg6[%c0_10, %c0_11] : memref<6x128xf32, #tpu.memory_space<vmem>>, vector<6x128xf32>
      %c0_12 = arith.constant 0 : index
      %c0_13 = arith.constant 0 : index
      %13 = vector.load %arg4[%c0_12, %c0_13] : memref<1x128xf32, #tpu.memory_space<vmem>>, vector<1x128xf32>
      %14 = vector.broadcast %13 : vector<1x128xf32> to vector<6x128xf32>
      %15 = arith.addf %12, %14 : vector<6x128xf32>
      %c0_14 = arith.constant 0 : index
      %c0_15 = arith.constant 0 : index
      %16 = vector.load %arg5[%c0_14, %c0_15] : memref<6x128xf32, #tpu.memory_space<vmem>>, vector<6x128xf32>
      tpu.vector_store %arg5[%c0_14, %c0_15], %15 {strides = array<i32>} : memref<6x128xf32, #tpu.memory_space<vmem>>, vector<6x128xf32>,
    } else {
    }
    return
  }
  func.func @transform_0(%arg0: i32, %arg1: i32) -> (i32, i32) {
    %c0_i32 = arith.constant 0 : i32
    return %arg0, %arg1 : i32, i32
  }
  func.func @transform_1(%arg0: i32, %arg1: i32) -> (i32, i32) {
    %c0_i32 = arith.constant 0 : i32
    %c0_i32_0 = arith.constant 0 : i32
    return %arg1, %c0_i32 : i32, i32
  }
  func.func @transform_2(%arg0: i32, %arg1: i32) -> (i32, i32) {
    %c0_i32 = arith.constant 0 : i32
    %c0_i32_0 = arith.constant 0 : i32
    %c0_i32_1 = arith.constant 0 : i32
    return %c0_i32, %c0_i32_0 : i32, i32
  }
  func.func @transform_3(%arg0: i32, %arg1: i32) -> (i32, i32) {
    %c0_i32 = arith.constant 0 : i32
    %c0_i32_0 = arith.constant 0 : i32
    return %arg0, %c0_i32 : i32, i32
  }
}

module attributes {stable_mosaic.version = 11 : i64} {
  func.func @_mm_kernel(%arg0: i32, %arg1: i32, %arg2: memref<6x32xbf16, #tpu.memory_space<vmem>>, %arg3: memref<32x128xbf16, #tpu.memory_space<vmem>>, %arg4: memref<1x128xf32, #tpu.memory_space<vmem>>, %arg5: memref<6x128xf32, #tpu.memory_space<vmem>>, %arg6: memref<6x128xf32, #tpu.memory_space<vmem>>) attributes {dimension_semantics = [#tpu.dimension_semantics<parallel>, #tpu.dimension_semantics<arbitrary>], iteration_bounds = array<i64: 1, 1>, scalar_prefetch = 0 : i64, scratch_operands = 1 : i64, tpu.core_type = #tpu.core_type<tc>, window_params = [{transform_indices = @transform_0, window_bounds = array<i64: 6, 32>}, {transform_indices = @transform_1, window_bounds = array<i64: 32, 128>}, {pipeline_mode = #tpu.pipeline_mode<synchronous>, transform_indices = @transform_2, window_bounds = array<i64: 1, 128>}, {transform_indices = @transform_3, window_bounds = array<i64: 6, 128>}]} {
    %c0_i32 = arith.constant 0 : i32
    %0 = arith.cmpi eq, %arg1, %c0_i32 : i32
    %1 = arith.extui %0 : i1 to i32
    %c0_i32_0 = arith.constant 0 : i32
    %2 = arith.cmpi ne, %1, %c0_i32_0 : i32
    scf.if %2 {
      %cst_10 = arith.constant 0.000000e+00 : f32
      %12 = vector.broadcast %cst_10 : f32 to vector<6x128xf32>
      %c0_11 = arith.constant 0 : index
      %c0_12 = arith.constant 0 : index
      %13 = vector.load %arg6[%c0_11, %c0_12] : memref<6x128xf32, #tpu.memory_space<vmem>>, vector<6x128xf32>
      tpu.vector_store %arg6[%c0_11, %c0_12], %12 {strides = array<i32>} : memref<6x128xf32, #tpu.memory_space<vmem>>, vector<6x128xf32>,
    } else {
    }
    %c0 = arith.constant 0 : index
    %c0_1 = arith.constant 0 : index
    %3 = vector.load %arg6[%c0, %c0_1] : memref<6x128xf32, #tpu.memory_space<vmem>>, vector<6x128xf32>
    %c0_2 = arith.constant 0 : index
    %c0_3 = arith.constant 0 : index
    %4 = vector.load %arg2[%c0_2, %c0_3] : memref<6x32xbf16, #tpu.memory_space<vmem>>, vector<6x32xbf16>
    %c0_4 = arith.constant 0 : index
    %c0_5 = arith.constant 0 : index
    %5 = vector.load %arg3[%c0_4, %c0_5] : memref<32x128xbf16, #tpu.memory_space<vmem>>, vector<32x128xbf16>
    %cst = arith.constant dense<0.000000e+00> : vector<6x128xf32>
    %6 = tpu.matmul %4, %5, %cst {dimension_numbers = #tpu.dot_dimension_numbers<[1], [0], [0], [1], [0, 0, 1, 1], [], []>} : vector<6x32xbf16>, vector<32x128xbf16>, vector<6x128xf32> -> vector<6x128xf32>
    %7 = arith.addf %3, %6 : vector<6x128xf32>
    %c0_6 = arith.constant 0 : index
    %c0_7 = arith.constant 0 : index
    %8 = vector.load %arg6[%c0_6, %c0_7] : memref<6x128xf32, #tpu.memory_space<vmem>>, vector<6x128xf32>
    tpu.vector_store %arg6[%c0_6, %c0_7], %7 {strides = array<i32>} : memref<6x128xf32, #tpu.memory_space<vmem>>, vector<6x128xf32>,
    %c0_i32_8 = arith.constant 0 : i32
    %9 = arith.cmpi eq, %arg1, %c0_i32_8 : i32
    %10 = arith.extui %9 : i1 to i32
    %c0_i32_9 = arith.constant 0 : i32
    %11 = arith.cmpi ne, %10, %c0_i32_9 : i32
    scf.if %11 {
      %c0_10 = arith.constant 0 : index
      %c0_11 = arith.constant 0 : index
      %12 = vector.load %arg6[%c0_10, %c0_11] : memref<6x128xf32, #tpu.memory_space<vmem>>, vector<6x128xf32>
      %c0_12 = arith.constant 0 : index
      %c0_13 = arith.constant 0 : index
      %13 = vector.load %arg4[%c0_12, %c0_13] : memref<1x128xf32, #tpu.memory_space<vmem>>, vector<1x128xf32>
      %14 = vector.broadcast %13 : vector<1x128xf32> to vector<6x128xf32>
      %15 = arith.addf %12, %14 : vector<6x128xf32>
      %c0_14 = arith.constant 0 : index
      %c0_15 = arith.constant 0 : index
      %16 = vector.load %arg5[%c0_14, %c0_15] : memref<6x128xf32, #tpu.memory_space<vmem>>, vector<6x128xf32>
      tpu.vector_store %arg5[%c0_14, %c0_15], %15 {strides = array<i32>} : memref<6x128xf32, #tpu.memory_space<vmem>>, vector<6x128xf32>,
    } else {
    }
    return
  }
  func.func @transform_0(%arg0: i32, %arg1: i32) -> (i32, i32) {
    %c0_i32 = arith.constant 0 : i32
    return %arg0, %arg1 : i32, i32
  }
  func.func @transform_1(%arg0: i32, %arg1: i32) -> (i32, i32) {
    %c0_i32 = arith.constant 0 : i32
    %c0_i32_0 = arith.constant 0 : i32
    return %arg1, %c0_i32 : i32, i32
  }
  func.func @transform_2(%arg0: i32, %arg1: i32) -> (i32, i32) {
    %c0_i32 = arith.constant 0 : i32
    %c0_i32_0 = arith.constant 0 : i32
    %c0_i32_1 = arith.constant 0 : i32
    return %c0_i32, %c0_i32_0 : i32, i32
  }
  func.func @transform_3(%arg0: i32, %arg1: i32) -> (i32, i32) {
    %c0_i32 = arith.constant 0 : i32
    %c0_i32_0 = arith.constant 0 : i32
    return %arg0, %c0_i32 : i32, i32
  }
}

module attributes {stable_mosaic.version = 11 : i64} {
  func.func @_bilstm_chunk_kernel(%arg0: i32, %arg1: memref<8x2x64xf32, #tpu.memory_space<vmem>>, %arg2: memref<8x2x64xf32, #tpu.memory_space<vmem>>, %arg3: memref<2x16x64xbf16, #tpu.memory_space<vmem>>, %arg4: memref<8x2x16xbf16, #tpu.memory_space<vmem>>, %arg5: memref<8x2x16xbf16, #tpu.memory_space<vmem>>, %arg6: memref<2x2x16xf32, #tpu.memory_space<vmem>>, %arg7: memref<2x2x16xf32, #tpu.memory_space<vmem>>) attributes {dimension_semantics = [#tpu.dimension_semantics<arbitrary>], iteration_bounds = array<i64: 1>, scalar_prefetch = 0 : i64, scratch_operands = 2 : i64, tpu.core_type = #tpu.core_type<tc>, window_params = [{transform_indices = @transform_0, window_bounds = array<i64: 8, 2, 64>}, {transform_indices = @transform_1, window_bounds = array<i64: 8, 2, 64>}, {pipeline_mode = #tpu.pipeline_mode<synchronous>, transform_indices = @transform_2, window_bounds = array<i64: 2, 16, 64>}, {transform_indices = @transform_3, window_bounds = array<i64: 8, 2, 16>}, {transform_indices = @transform_4, window_bounds = array<i64: 8, 2, 16>}]} {
    %c0_i32 = arith.constant 0 : i32
    %0 = arith.cmpi eq, %arg0, %c0_i32 : i32
    %1 = arith.extui %0 : i1 to i32
    %c0_i32_0 = arith.constant 0 : i32
    %2 = arith.cmpi ne, %1, %c0_i32_0 : i32
    scf.if %2 {
      %cst_392 = arith.constant 0.000000e+00 : f32
      %739 = vector.broadcast %cst_392 : f32 to vector<2x2x16xf32>
      %c0_393 = arith.constant 0 : index
      %c0_394 = arith.constant 0 : index
      %c0_395 = arith.constant 0 : index
      %740 = vector.load %arg6[%c0_393, %c0_394, %c0_395] : memref<2x2x16xf32, #tpu.memory_space<vmem>>, vector<2x2x16xf32>
      tpu.vector_store %arg6[%c0_393, %c0_394, %c0_395], %739 {strides = array<i32>} : memref<2x2x16xf32, #tpu.memory_space<vmem>>, vector<2x2x16xf32>,
      %cst_396 = arith.constant 0.000000e+00 : f32
      %741 = vector.broadcast %cst_396 : f32 to vector<2x2x16xf32>
      %c0_397 = arith.constant 0 : index
      %c0_398 = arith.constant 0 : index
      %c0_399 = arith.constant 0 : index
      %742 = vector.load %arg7[%c0_397, %c0_398, %c0_399] : memref<2x2x16xf32, #tpu.memory_space<vmem>>, vector<2x2x16xf32>
      tpu.vector_store %arg7[%c0_397, %c0_398, %c0_399], %741 {strides = array<i32>} : memref<2x2x16xf32, #tpu.memory_space<vmem>>, vector<2x2x16xf32>,
    } else {
    }
    %c0 = arith.constant 0 : index
    %c0_1 = arith.constant 0 : index
    %c0_2 = arith.constant 0 : index
    %3 = vector.load %arg1[%c0, %c0_1, %c0_2] : memref<8x2x64xf32, #tpu.memory_space<vmem>>, vector<1x2x64xf32>
    %4 = vector.shape_cast %3 : vector<1x2x64xf32> to vector<2x64xf32>
    %c0_3 = arith.constant 0 : index
    %c0_4 = arith.constant 0 : index
    %c0_5 = arith.constant 0 : index
    %5 = vector.load %arg6[%c0_3, %c0_4, %c0_5] : memref<2x2x16xf32, #tpu.memory_space<vmem>>, vector<1x2x16xf32>
    %6 = vector.shape_cast %5 : vector<1x2x16xf32> to vector<2x16xf32>
    %7 = arith.truncf %6 : vector<2x16xf32> to vector<2x16xbf16>
    %c0_6 = arith.constant 0 : index
    %c0_7 = arith.constant 0 : index
    %c0_8 = arith.constant 0 : index
    %8 = vector.load %arg3[%c0_6, %c0_7, %c0_8] : memref<2x16x64xbf16, #tpu.memory_space<vmem>>, vector<1x16x64xbf16>
    %9 = vector.shape_cast %8 : vector<1x16x64xbf16> to vector<16x64xbf16>
    %cst = arith.constant dense<0.000000e+00> : vector<2x64xf32>
    %10 = tpu.matmul %7, %9, %cst {dimension_numbers = #tpu.dot_dimension_numbers<[1], [0], [0], [1], [0, 0, 1, 1], [], []>} : vector<2x16xbf16>, vector<16x64xbf16>, vector<2x64xf32> -> vector<2x64xf32>
    %11 = arith.addf %4, %10 : vector<2x64xf32>
    %12 = vector.extract_strided_slice %11 {offsets = [0, 0], sizes = [2, 16], strides = [1, 1]} : vector<2x64xf32> to vector<2x16xf32>
    %13 = arith.negf %12 : vector<2x16xf32>
    %14 = math.exp %13 : vector<2x16xf32>
    %cst_9 = arith.constant 1.000000e+00 : f32
    %15 = vector.broadcast %cst_9 : f32 to vector<2x16xf32>
    %16 = arith.addf %15, %14 : vector<2x16xf32>
    %17 = arith.divf %15, %16 : vector<2x16xf32>
    %18 = vector.extract_strided_slice %11 {offsets = [0, 16], sizes = [2, 16], strides = [1, 1]} : vector<2x64xf32> to vector<2x16xf32>
    %19 = arith.negf %18 : vector<2x16xf32>
    %20 = math.exp %19 : vector<2x16xf32>
    %cst_10 = arith.constant 1.000000e+00 : f32
    %21 = vector.broadcast %cst_10 : f32 to vector<2x16xf32>
    %22 = arith.addf %21, %20 : vector<2x16xf32>
    %23 = arith.divf %21, %22 : vector<2x16xf32>
    %24 = vector.extract_strided_slice %11 {offsets = [0, 32], sizes = [2, 16], strides = [1, 1]} : vector<2x64xf32> to vector<2x16xf32>
    %25 = math.tanh %24 : vector<2x16xf32>
    %26 = vector.extract_strided_slice %11 {offsets = [0, 48], sizes = [2, 16], strides = [1, 1]} : vector<2x64xf32> to vector<2x16xf32>
    %27 = arith.negf %26 : vector<2x16xf32>
    %28 = math.exp %27 : vector<2x16xf32>
    %cst_11 = arith.constant 1.000000e+00 : f32
    %29 = vector.broadcast %cst_11 : f32 to vector<2x16xf32>
    %30 = arith.addf %29, %28 : vector<2x16xf32>
    %31 = arith.divf %29, %30 : vector<2x16xf32>
    %c0_12 = arith.constant 0 : index
    %c0_13 = arith.constant 0 : index
    %c0_14 = arith.constant 0 : index
    %32 = vector.load %arg7[%c0_12, %c0_13, %c0_14] : memref<2x2x16xf32, #tpu.memory_space<vmem>>, vector<1x2x16xf32>
    %33 = vector.shape_cast %32 : vector<1x2x16xf32> to vector<2x16xf32>
    %34 = arith.mulf %23, %33 : vector<2x16xf32>
    %35 = arith.mulf %17, %25 : vector<2x16xf32>
    %36 = arith.addf %34, %35 : vector<2x16xf32>
    %37 = math.tanh %36 : vector<2x16xf32>
    %38 = arith.mulf %31, %37 : vector<2x16xf32>
    %c0_15 = arith.constant 0 : index
    %c0_16 = arith.constant 0 : index
    %c0_17 = arith.constant 0 : index
    %39 = vector.load %arg6[%c0_15, %c0_16, %c0_17] : memref<2x2x16xf32, #tpu.memory_space<vmem>>, vector<1x2x16xf32>
    %40 = vector.shape_cast %39 : vector<1x2x16xf32> to vector<2x16xf32>
    %41 = vector.shape_cast %38 : vector<2x16xf32> to vector<1x2x16xf32>
    tpu.vector_store %arg6[%c0_15, %c0_16, %c0_17], %41 {strides = array<i32>} : memref<2x2x16xf32, #tpu.memory_space<vmem>>, vector<1x2x16xf32>,
    %c0_18 = arith.constant 0 : index
    %c0_19 = arith.constant 0 : index
    %c0_20 = arith.constant 0 : index
    %42 = vector.load %arg7[%c0_18, %c0_19, %c0_20] : memref<2x2x16xf32, #tpu.memory_space<vmem>>, vector<1x2x16xf32>
    %43 = vector.shape_cast %42 : vector<1x2x16xf32> to vector<2x16xf32>
    %44 = vector.shape_cast %36 : vector<2x16xf32> to vector<1x2x16xf32>
    tpu.vector_store %arg7[%c0_18, %c0_19, %c0_20], %44 {strides = array<i32>} : memref<2x2x16xf32, #tpu.memory_space<vmem>>, vector<1x2x16xf32>,
    %45 = arith.truncf %38 : vector<2x16xf32> to vector<2x16xbf16>
    %c0_21 = arith.constant 0 : index
    %c0_22 = arith.constant 0 : index
    %c0_23 = arith.constant 0 : index
    %46 = vector.load %arg4[%c0_21, %c0_22, %c0_23] : memref<8x2x16xbf16, #tpu.memory_space<vmem>>, vector<1x2x16xbf16>
    %47 = vector.shape_cast %46 : vector<1x2x16xbf16> to vector<2x16xbf16>
    %48 = vector.shape_cast %45 : vector<2x16xbf16> to vector<1x2x16xbf16>
    tpu.vector_store %arg4[%c0_21, %c0_22, %c0_23], %48 {strides = array<i32>} : memref<8x2x16xbf16, #tpu.memory_space<vmem>>, vector<1x2x16xbf16>,
    %c7 = arith.constant 7 : index
    %c0_24 = arith.constant 0 : index
    %c0_25 = arith.constant 0 : index
    %49 = vector.load %arg2[%c7, %c0_24, %c0_25] : memref<8x2x64xf32, #tpu.memory_space<vmem>>, vector<1x2x64xf32>
    %50 = vector.shape_cast %49 : vector<1x2x64xf32> to vector<2x64xf32>
    %c1 = arith.constant 1 : index
    %c0_26 = arith.constant 0 : index
    %c0_27 = arith.constant 0 : index
    %51 = vector.load %arg6[%c1, %c0_26, %c0_27] : memref<2x2x16xf32, #tpu.memory_space<vmem>>, vector<1x2x16xf32>
    %52 = vector.shape_cast %51 : vector<1x2x16xf32> to vector<2x16xf32>
    %53 = arith.truncf %52 : vector<2x16xf32> to vector<2x16xbf16>
    %c1_28 = arith.constant 1 : index
    %c0_29 = arith.constant 0 : index
    %c0_30 = arith.constant 0 : index
    %54 = vector.load %arg3[%c1_28, %c0_29, %c0_30] : memref<2x16x64xbf16, #tpu.memory_space<vmem>>, vector<1x16x64xbf16>
    %55 = vector.shape_cast %54 : vector<1x16x64xbf16> to vector<16x64xbf16>
    %cst_31 = arith.constant dense<0.000000e+00> : vector<2x64xf32>
    %56 = tpu.matmul %53, %55, %cst_31 {dimension_numbers = #tpu.dot_dimension_numbers<[1], [0], [0], [1], [0, 0, 1, 1], [], []>} : vector<2x16xbf16>, vector<16x64xbf16>, vector<2x64xf32> -> vector<2x64xf32>
    %57 = arith.addf %50, %56 : vector<2x64xf32>
    %58 = vector.extract_strided_slice %57 {offsets = [0, 0], sizes = [2, 16], strides = [1, 1]} : vector<2x64xf32> to vector<2x16xf32>
    %59 = arith.negf %58 : vector<2x16xf32>
    %60 = math.exp %59 : vector<2x16xf32>
    %cst_32 = arith.constant 1.000000e+00 : f32
    %61 = vector.broadcast %cst_32 : f32 to vector<2x16xf32>
    %62 = arith.addf %61, %60 : vector<2x16xf32>
    %63 = arith.divf %61, %62 : vector<2x16xf32>
    %64 = vector.extract_strided_slice %57 {offsets = [0, 16], sizes = [2, 16], strides = [1, 1]} : vector<2x64xf32> to vector<2x16xf32>
    %65 = arith.negf %64 : vector<2x16xf32>
    %66 = math.exp %65 : vector<2x16xf32>
    %cst_33 = arith.constant 1.000000e+00 : f32
    %67 = vector.broadcast %cst_33 : f32 to vector<2x16xf32>
    %68 = arith.addf %67, %66 : vector<2x16xf32>
    %69 = arith.divf %67, %68 : vector<2x16xf32>
    %70 = vector.extract_strided_slice %57 {offsets = [0, 32], sizes = [2, 16], strides = [1, 1]} : vector<2x64xf32> to vector<2x16xf32>
    %71 = math.tanh %70 : vector<2x16xf32>
    %72 = vector.extract_strided_slice %57 {offsets = [0, 48], sizes = [2, 16], strides = [1, 1]} : vector<2x64xf32> to vector<2x16xf32>
    %73 = arith.negf %72 : vector<2x16xf32>
    %74 = math.exp %73 : vector<2x16xf32>
    %cst_34 = arith.constant 1.000000e+00 : f32
    %75 = vector.broadcast %cst_34 : f32 to vector<2x16xf32>
    %76 = arith.addf %75, %74 : vector<2x16xf32>
    %77 = arith.divf %75, %76 : vector<2x16xf32>
    %c1_35 = arith.constant 1 : index
    %c0_36 = arith.constant 0 : index
    %c0_37 = arith.constant 0 : index
    %78 = vector.load %arg7[%c1_35, %c0_36, %c0_37] : memref<2x2x16xf32, #tpu.memory_space<vmem>>, vector<1x2x16xf32>
    %79 = vector.shape_cast %78 : vector<1x2x16xf32> to vector<2x16xf32>
    %80 = arith.mulf %69, %79 : vector<2x16xf32>
    %81 = arith.mulf %63, %71 : vector<2x16xf32>
    %82 = arith.addf %80, %81 : vector<2x16xf32>
    %83 = math.tanh %82 : vector<2x16xf32>
    %84 = arith.mulf %77, %83 : vector<2x16xf32>
    %c1_38 = arith.constant 1 : index
    %c0_39 = arith.constant 0 : index
    %c0_40 = arith.constant 0 : index
    %85 = vector.load %arg6[%c1_38, %c0_39, %c0_40] : memref<2x2x16xf32, #tpu.memory_space<vmem>>, vector<1x2x16xf32>
    %86 = vector.shape_cast %85 : vector<1x2x16xf32> to vector<2x16xf32>
    %87 = vector.shape_cast %84 : vector<2x16xf32> to vector<1x2x16xf32>
    tpu.vector_store %arg6[%c1_38, %c0_39, %c0_40], %87 {strides = array<i32>} : memref<2x2x16xf32, #tpu.memory_space<vmem>>, vector<1x2x16xf32>,
    %c1_41 = arith.constant 1 : index
    %c0_42 = arith.constant 0 : index
    %c0_43 = arith.constant 0 : index
    %88 = vector.load %arg7[%c1_41, %c0_42, %c0_43] : memref<2x2x16xf32, #tpu.memory_space<vmem>>, vector<1x2x16xf32>
    %89 = vector.shape_cast %88 : vector<1x2x16xf32> to vector<2x16xf32>
    %90 = vector.shape_cast %82 : vector<2x16xf32> to vector<1x2x16xf32>
    tpu.vector_store %arg7[%c1_41, %c0_42, %c0_43], %90 {strides = array<i32>} : memref<2x2x16xf32, #tpu.memory_space<vmem>>, vector<1x2x16xf32>,
    %91 = arith.truncf %84 : vector<2x16xf32> to vector<2x16xbf16>
    %c7_44 = arith.constant 7 : index
    %c0_45 = arith.constant 0 : index
    %c0_46 = arith.constant 0 : index
    %92 = vector.load %arg5[%c7_44, %c0_45, %c0_46] : memref<8x2x16xbf16, #tpu.memory_space<vmem>>, vector<1x2x16xbf16>
    %93 = vector.shape_cast %92 : vector<1x2x16xbf16> to vector<2x16xbf16>
    %94 = vector.shape_cast %91 : vector<2x16xbf16> to vector<1x2x16xbf16>
    tpu.vector_store %arg5[%c7_44, %c0_45, %c0_46], %94 {strides = array<i32>} : memref<8x2x16xbf16, #tpu.memory_space<vmem>>, vector<1x2x16xbf16>,
    %c1_47 = arith.constant 1 : index
    %c0_48 = arith.constant 0 : index
    %c0_49 = arith.constant 0 : index
    %95 = vector.load %arg1[%c1_47, %c0_48, %c0_49] : memref<8x2x64xf32, #tpu.memory_space<vmem>>, vector<1x2x64xf32>
    %96 = vector.shape_cast %95 : vector<1x2x64xf32> to vector<2x64xf32>
    %c0_50 = arith.constant 0 : index
    %c0_51 = arith.constant 0 : index
    %c0_52 = arith.constant 0 : index
    %97 = vector.load %arg6[%c0_50, %c0_51, %c0_52] : memref<2x2x16xf32, #tpu.memory_space<vmem>>, vector<1x2x16xf32>
    %98 = vector.shape_cast %97 : vector<1x2x16xf32> to vector<2x16xf32>
    %99 = arith.truncf %98 : vector<2x16xf32> to vector<2x16xbf16>
    %c0_53 = arith.constant 0 : index
    %c0_54 = arith.constant 0 : index
    %c0_55 = arith.constant 0 : index
    %100 = vector.load %arg3[%c0_53, %c0_54, %c0_55] : memref<2x16x64xbf16, #tpu.memory_space<vmem>>, vector<1x16x64xbf16>
    %101 = vector.shape_cast %100 : vector<1x16x64xbf16> to vector<16x64xbf16>
    %cst_56 = arith.constant dense<0.000000e+00> : vector<2x64xf32>
    %102 = tpu.matmul %99, %101, %cst_56 {dimension_numbers = #tpu.dot_dimension_numbers<[1], [0], [0], [1], [0, 0, 1, 1], [], []>} : vector<2x16xbf16>, vector<16x64xbf16>, vector<2x64xf32> -> vector<2x64xf32>
    %103 = arith.addf %96, %102 : vector<2x64xf32>
    %104 = vector.extract_strided_slice %103 {offsets = [0, 0], sizes = [2, 16], strides = [1, 1]} : vector<2x64xf32> to vector<2x16xf32>
    %105 = arith.negf %104 : vector<2x16xf32>
    %106 = math.exp %105 : vector<2x16xf32>
    %cst_57 = arith.constant 1.000000e+00 : f32
    %107 = vector.broadcast %cst_57 : f32 to vector<2x16xf32>
    %108 = arith.addf %107, %106 : vector<2x16xf32>
    %109 = arith.divf %107, %108 : vector<2x16xf32>
    %110 = vector.extract_strided_slice %103 {offsets = [0, 16], sizes = [2, 16], strides = [1, 1]} : vector<2x64xf32> to vector<2x16xf32>
    %111 = arith.negf %110 : vector<2x16xf32>
    %112 = math.exp %111 : vector<2x16xf32>
    %cst_58 = arith.constant 1.000000e+00 : f32
    %113 = vector.broadcast %cst_58 : f32 to vector<2x16xf32>
    %114 = arith.addf %113, %112 : vector<2x16xf32>
    %115 = arith.divf %113, %114 : vector<2x16xf32>
    %116 = vector.extract_strided_slice %103 {offsets = [0, 32], sizes = [2, 16], strides = [1, 1]} : vector<2x64xf32> to vector<2x16xf32>
    %117 = math.tanh %116 : vector<2x16xf32>
    %118 = vector.extract_strided_slice %103 {offsets = [0, 48], sizes = [2, 16], strides = [1, 1]} : vector<2x64xf32> to vector<2x16xf32>
    %119 = arith.negf %118 : vector<2x16xf32>
    %120 = math.exp %119 : vector<2x16xf32>
    %cst_59 = arith.constant 1.000000e+00 : f32
    %121 = vector.broadcast %cst_59 : f32 to vector<2x16xf32>
    %122 = arith.addf %121, %120 : vector<2x16xf32>
    %123 = arith.divf %121, %122 : vector<2x16xf32>
    %c0_60 = arith.constant 0 : index
    %c0_61 = arith.constant 0 : index
    %c0_62 = arith.constant 0 : index
    %124 = vector.load %arg7[%c0_60, %c0_61, %c0_62] : memref<2x2x16xf32, #tpu.memory_space<vmem>>, vector<1x2x16xf32>
    %125 = vector.shape_cast %124 : vector<1x2x16xf32> to vector<2x16xf32>
    %126 = arith.mulf %115, %125 : vector<2x16xf32>
    %127 = arith.mulf %109, %117 : vector<2x16xf32>
    %128 = arith.addf %126, %127 : vector<2x16xf32>
    %129 = math.tanh %128 : vector<2x16xf32>
    %130 = arith.mulf %123, %129 : vector<2x16xf32>
    %c0_63 = arith.constant 0 : index
    %c0_64 = arith.constant 0 : index
    %c0_65 = arith.constant 0 : index
    %131 = vector.load %arg6[%c0_63, %c0_64, %c0_65] : memref<2x2x16xf32, #tpu.memory_space<vmem>>, vector<1x2x16xf32>
    %132 = vector.shape_cast %131 : vector<1x2x16xf32> to vector<2x16xf32>
    %133 = vector.shape_cast %130 : vector<2x16xf32> to vector<1x2x16xf32>
    tpu.vector_store %arg6[%c0_63, %c0_64, %c0_65], %133 {strides = array<i32>} : memref<2x2x16xf32, #tpu.memory_space<vmem>>, vector<1x2x16xf32>,
    %c0_66 = arith.constant 0 : index
    %c0_67 = arith.constant 0 : index
    %c0_68 = arith.constant 0 : index
    %134 = vector.load %arg7[%c0_66, %c0_67, %c0_68] : memref<2x2x16xf32, #tpu.memory_space<vmem>>, vector<1x2x16xf32>
    %135 = vector.shape_cast %134 : vector<1x2x16xf32> to vector<2x16xf32>
    %136 = vector.shape_cast %128 : vector<2x16xf32> to vector<1x2x16xf32>
    tpu.vector_store %arg7[%c0_66, %c0_67, %c0_68], %136 {strides = array<i32>} : memref<2x2x16xf32, #tpu.memory_space<vmem>>, vector<1x2x16xf32>,
    %137 = arith.truncf %130 : vector<2x16xf32> to vector<2x16xbf16>
    %c1_69 = arith.constant 1 : index
    %c0_70 = arith.constant 0 : index
    %c0_71 = arith.constant 0 : index
    %138 = vector.load %arg4[%c1_69, %c0_70, %c0_71] : memref<8x2x16xbf16, #tpu.memory_space<vmem>>, vector<1x2x16xbf16>
    %139 = vector.shape_cast %138 : vector<1x2x16xbf16> to vector<2x16xbf16>
    %140 = vector.shape_cast %137 : vector<2x16xbf16> to vector<1x2x16xbf16>
    tpu.vector_store %arg4[%c1_69, %c0_70, %c0_71], %140 {strides = array<i32>} : memref<8x2x16xbf16, #tpu.memory_space<vmem>>, vector<1x2x16xbf16>,
    %c6 = arith.constant 6 : index
    %c0_72 = arith.constant 0 : index
    %c0_73 = arith.constant 0 : index
    %141 = vector.load %arg2[%c6, %c0_72, %c0_73] : memref<8x2x64xf32, #tpu.memory_space<vmem>>, vector<1x2x64xf32>
    %142 = vector.shape_cast %141 : vector<1x2x64xf32> to vector<2x64xf32>
    %c1_74 = arith.constant 1 : index
    %c0_75 = arith.constant 0 : index
    %c0_76 = arith.constant 0 : index
    %143 = vector.load %arg6[%c1_74, %c0_75, %c0_76] : memref<2x2x16xf32, #tpu.memory_space<vmem>>, vector<1x2x16xf32>
    %144 = vector.shape_cast %143 : vector<1x2x16xf32> to vector<2x16xf32>
    %145 = arith.truncf %144 : vector<2x16xf32> to vector<2x16xbf16>
    %c1_77 = arith.constant 1 : index
    %c0_78 = arith.constant 0 : index
    %c0_79 = arith.constant 0 : index
    %146 = vector.load %arg3[%c1_77, %c0_78, %c0_79] : memref<2x16x64xbf16, #tpu.memory_space<vmem>>, vector<1x16x64xbf16>
    %147 = vector.shape_cast %146 : vector<1x16x64xbf16> to vector<16x64xbf16>
    %cst_80 = arith.constant dense<0.000000e+00> : vector<2x64xf32>
    %148 = tpu.matmul %145, %147, %cst_80 {dimension_numbers = #tpu.dot_dimension_numbers<[1], [0], [0], [1], [0, 0, 1, 1], [], []>} : vector<2x16xbf16>, vector<16x64xbf16>, vector<2x64xf32> -> vector<2x64xf32>
    %149 = arith.addf %142, %148 : vector<2x64xf32>
    %150 = vector.extract_strided_slice %149 {offsets = [0, 0], sizes = [2, 16], strides = [1, 1]} : vector<2x64xf32> to vector<2x16xf32>
    %151 = arith.negf %150 : vector<2x16xf32>
    %152 = math.exp %151 : vector<2x16xf32>
    %cst_81 = arith.constant 1.000000e+00 : f32
    %153 = vector.broadcast %cst_81 : f32 to vector<2x16xf32>
    %154 = arith.addf %153, %152 : vector<2x16xf32>
    %155 = arith.divf %153, %154 : vector<2x16xf32>
    %156 = vector.extract_strided_slice %149 {offsets = [0, 16], sizes = [2, 16], strides = [1, 1]} : vector<2x64xf32> to vector<2x16xf32>
    %157 = arith.negf %156 : vector<2x16xf32>
    %158 = math.exp %157 : vector<2x16xf32>
    %cst_82 = arith.constant 1.000000e+00 : f32
    %159 = vector.broadcast %cst_82 : f32 to vector<2x16xf32>
    %160 = arith.addf %159, %158 : vector<2x16xf32>
    %161 = arith.divf %159, %160 : vector<2x16xf32>
    %162 = vector.extract_strided_slice %149 {offsets = [0, 32], sizes = [2, 16], strides = [1, 1]} : vector<2x64xf32> to vector<2x16xf32>
    %163 = math.tanh %162 : vector<2x16xf32>
    %164 = vector.extract_strided_slice %149 {offsets = [0, 48], sizes = [2, 16], strides = [1, 1]} : vector<2x64xf32> to vector<2x16xf32>
    %165 = arith.negf %164 : vector<2x16xf32>
    %166 = math.exp %165 : vector<2x16xf32>
    %cst_83 = arith.constant 1.000000e+00 : f32
    %167 = vector.broadcast %cst_83 : f32 to vector<2x16xf32>
    %168 = arith.addf %167, %166 : vector<2x16xf32>
    %169 = arith.divf %167, %168 : vector<2x16xf32>
    %c1_84 = arith.constant 1 : index
    %c0_85 = arith.constant 0 : index
    %c0_86 = arith.constant 0 : index
    %170 = vector.load %arg7[%c1_84, %c0_85, %c0_86] : memref<2x2x16xf32, #tpu.memory_space<vmem>>, vector<1x2x16xf32>
    %171 = vector.shape_cast %170 : vector<1x2x16xf32> to vector<2x16xf32>
    %172 = arith.mulf %161, %171 : vector<2x16xf32>
    %173 = arith.mulf %155, %163 : vector<2x16xf32>
    %174 = arith.addf %172, %173 : vector<2x16xf32>
    %175 = math.tanh %174 : vector<2x16xf32>
    %176 = arith.mulf %169, %175 : vector<2x16xf32>
    %c1_87 = arith.constant 1 : index
    %c0_88 = arith.constant 0 : index
    %c0_89 = arith.constant 0 : index
    %177 = vector.load %arg6[%c1_87, %c0_88, %c0_89] : memref<2x2x16xf32, #tpu.memory_space<vmem>>, vector<1x2x16xf32>
    %178 = vector.shape_cast %177 : vector<1x2x16xf32> to vector<2x16xf32>
    %179 = vector.shape_cast %176 : vector<2x16xf32> to vector<1x2x16xf32>
    tpu.vector_store %arg6[%c1_87, %c0_88, %c0_89], %179 {strides = array<i32>} : memref<2x2x16xf32, #tpu.memory_space<vmem>>, vector<1x2x16xf32>,
    %c1_90 = arith.constant 1 : index
    %c0_91 = arith.constant 0 : index
    %c0_92 = arith.constant 0 : index
    %180 = vector.load %arg7[%c1_90, %c0_91, %c0_92] : memref<2x2x16xf32, #tpu.memory_space<vmem>>, vector<1x2x16xf32>
    %181 = vector.shape_cast %180 : vector<1x2x16xf32> to vector<2x16xf32>
    %182 = vector.shape_cast %174 : vector<2x16xf32> to vector<1x2x16xf32>
    tpu.vector_store %arg7[%c1_90, %c0_91, %c0_92], %182 {strides = array<i32>} : memref<2x2x16xf32, #tpu.memory_space<vmem>>, vector<1x2x16xf32>,
    %183 = arith.truncf %176 : vector<2x16xf32> to vector<2x16xbf16>
    %c6_93 = arith.constant 6 : index
    %c0_94 = arith.constant 0 : index
    %c0_95 = arith.constant 0 : index
    %184 = vector.load %arg5[%c6_93, %c0_94, %c0_95] : memref<8x2x16xbf16, #tpu.memory_space<vmem>>, vector<1x2x16xbf16>
    %185 = vector.shape_cast %184 : vector<1x2x16xbf16> to vector<2x16xbf16>
    %186 = vector.shape_cast %183 : vector<2x16xbf16> to vector<1x2x16xbf16>
    tpu.vector_store %arg5[%c6_93, %c0_94, %c0_95], %186 {strides = array<i32>} : memref<8x2x16xbf16, #tpu.memory_space<vmem>>, vector<1x2x16xbf16>,
    %c2 = arith.constant 2 : index
    %c0_96 = arith.constant 0 : index
    %c0_97 = arith.constant 0 : index
    %187 = vector.load %arg1[%c2, %c0_96, %c0_97] : memref<8x2x64xf32, #tpu.memory_space<vmem>>, vector<1x2x64xf32>
    %188 = vector.shape_cast %187 : vector<1x2x64xf32> to vector<2x64xf32>
    %c0_98 = arith.constant 0 : index
    %c0_99 = arith.constant 0 : index
    %c0_100 = arith.constant 0 : index
    %189 = vector.load %arg6[%c0_98, %c0_99, %c0_100] : memref<2x2x16xf32, #tpu.memory_space<vmem>>, vector<1x2x16xf32>
    %190 = vector.shape_cast %189 : vector<1x2x16xf32> to vector<2x16xf32>
    %191 = arith.truncf %190 : vector<2x16xf32> to vector<2x16xbf16>
    %c0_101 = arith.constant 0 : index
    %c0_102 = arith.constant 0 : index
    %c0_103 = arith.constant 0 : index
    %192 = vector.load %arg3[%c0_101, %c0_102, %c0_103] : memref<2x16x64xbf16, #tpu.memory_space<vmem>>, vector<1x16x64xbf16>
    %193 = vector.shape_cast %192 : vector<1x16x64xbf16> to vector<16x64xbf16>
    %cst_104 = arith.constant dense<0.000000e+00> : vector<2x64xf32>
    %194 = tpu.matmul %191, %193, %cst_104 {dimension_numbers = #tpu.dot_dimension_numbers<[1], [0], [0], [1], [0, 0, 1, 1], [], []>} : vector<2x16xbf16>, vector<16x64xbf16>, vector<2x64xf32> -> vector<2x64xf32>
    %195 = arith.addf %188, %194 : vector<2x64xf32>
    %196 = vector.extract_strided_slice %195 {offsets = [0, 0], sizes = [2, 16], strides = [1, 1]} : vector<2x64xf32> to vector<2x16xf32>
    %197 = arith.negf %196 : vector<2x16xf32>
    %198 = math.exp %197 : vector<2x16xf32>
    %cst_105 = arith.constant 1.000000e+00 : f32
    %199 = vector.broadcast %cst_105 : f32 to vector<2x16xf32>
    %200 = arith.addf %199, %198 : vector<2x16xf32>
    %201 = arith.divf %199, %200 : vector<2x16xf32>
    %202 = vector.extract_strided_slice %195 {offsets = [0, 16], sizes = [2, 16], strides = [1, 1]} : vector<2x64xf32> to vector<2x16xf32>
    %203 = arith.negf %202 : vector<2x16xf32>
    %204 = math.exp %203 : vector<2x16xf32>
    %cst_106 = arith.constant 1.000000e+00 : f32
    %205 = vector.broadcast %cst_106 : f32 to vector<2x16xf32>
    %206 = arith.addf %205, %204 : vector<2x16xf32>
    %207 = arith.divf %205, %206 : vector<2x16xf32>
    %208 = vector.extract_strided_slice %195 {offsets = [0, 32], sizes = [2, 16], strides = [1, 1]} : vector<2x64xf32> to vector<2x16xf32>
    %209 = math.tanh %208 : vector<2x16xf32>
    %210 = vector.extract_strided_slice %195 {offsets = [0, 48], sizes = [2, 16], strides = [1, 1]} : vector<2x64xf32> to vector<2x16xf32>
    %211 = arith.negf %210 : vector<2x16xf32>
    %212 = math.exp %211 : vector<2x16xf32>
    %cst_107 = arith.constant 1.000000e+00 : f32
    %213 = vector.broadcast %cst_107 : f32 to vector<2x16xf32>
    %214 = arith.addf %213, %212 : vector<2x16xf32>
    %215 = arith.divf %213, %214 : vector<2x16xf32>
    %c0_108 = arith.constant 0 : index
    %c0_109 = arith.constant 0 : index
    %c0_110 = arith.constant 0 : index
    %216 = vector.load %arg7[%c0_108, %c0_109, %c0_110] : memref<2x2x16xf32, #tpu.memory_space<vmem>>, vector<1x2x16xf32>
    %217 = vector.shape_cast %216 : vector<1x2x16xf32> to vector<2x16xf32>
    %218 = arith.mulf %207, %217 : vector<2x16xf32>
    %219 = arith.mulf %201, %209 : vector<2x16xf32>
    %220 = arith.addf %218, %219 : vector<2x16xf32>
    %221 = math.tanh %220 : vector<2x16xf32>
    %222 = arith.mulf %215, %221 : vector<2x16xf32>
    %c0_111 = arith.constant 0 : index
    %c0_112 = arith.constant 0 : index
    %c0_113 = arith.constant 0 : index
    %223 = vector.load %arg6[%c0_111, %c0_112, %c0_113] : memref<2x2x16xf32, #tpu.memory_space<vmem>>, vector<1x2x16xf32>
    %224 = vector.shape_cast %223 : vector<1x2x16xf32> to vector<2x16xf32>
    %225 = vector.shape_cast %222 : vector<2x16xf32> to vector<1x2x16xf32>
    tpu.vector_store %arg6[%c0_111, %c0_112, %c0_113], %225 {strides = array<i32>} : memref<2x2x16xf32, #tpu.memory_space<vmem>>, vector<1x2x16xf32>,
    %c0_114 = arith.constant 0 : index
    %c0_115 = arith.constant 0 : index
    %c0_116 = arith.constant 0 : index
    %226 = vector.load %arg7[%c0_114, %c0_115, %c0_116] : memref<2x2x16xf32, #tpu.memory_space<vmem>>, vector<1x2x16xf32>
    %227 = vector.shape_cast %226 : vector<1x2x16xf32> to vector<2x16xf32>
    %228 = vector.shape_cast %220 : vector<2x16xf32> to vector<1x2x16xf32>
    tpu.vector_store %arg7[%c0_114, %c0_115, %c0_116], %228 {strides = array<i32>} : memref<2x2x16xf32, #tpu.memory_space<vmem>>, vector<1x2x16xf32>,
    %229 = arith.truncf %222 : vector<2x16xf32> to vector<2x16xbf16>
    %c2_117 = arith.constant 2 : index
    %c0_118 = arith.constant 0 : index
    %c0_119 = arith.constant 0 : index
    %230 = vector.load %arg4[%c2_117, %c0_118, %c0_119] : memref<8x2x16xbf16, #tpu.memory_space<vmem>>, vector<1x2x16xbf16>
    %231 = vector.shape_cast %230 : vector<1x2x16xbf16> to vector<2x16xbf16>
    %232 = vector.shape_cast %229 : vector<2x16xbf16> to vector<1x2x16xbf16>
    tpu.vector_store %arg4[%c2_117, %c0_118, %c0_119], %232 {strides = array<i32>} : memref<8x2x16xbf16, #tpu.memory_space<vmem>>, vector<1x2x16xbf16>,
    %c5 = arith.constant 5 : index
    %c0_120 = arith.constant 0 : index
    %c0_121 = arith.constant 0 : index
    %233 = vector.load %arg2[%c5, %c0_120, %c0_121] : memref<8x2x64xf32, #tpu.memory_space<vmem>>, vector<1x2x64xf32>
    %234 = vector.shape_cast %233 : vector<1x2x64xf32> to vector<2x64xf32>
    %c1_122 = arith.constant 1 : index
    %c0_123 = arith.constant 0 : index
    %c0_124 = arith.constant 0 : index
    %235 = vector.load %arg6[%c1_122, %c0_123, %c0_124] : memref<2x2x16xf32, #tpu.memory_space<vmem>>, vector<1x2x16xf32>
    %236 = vector.shape_cast %235 : vector<1x2x16xf32> to vector<2x16xf32>
    %237 = arith.truncf %236 : vector<2x16xf32> to vector<2x16xbf16>
    %c1_125 = arith.constant 1 : index
    %c0_126 = arith.constant 0 : index
    %c0_127 = arith.constant 0 : index
    %238 = vector.load %arg3[%c1_125, %c0_126, %c0_127] : memref<2x16x64xbf16, #tpu.memory_space<vmem>>, vector<1x16x64xbf16>
    %239 = vector.shape_cast %238 : vector<1x16x64xbf16> to vector<16x64xbf16>
    %cst_128 = arith.constant dense<0.000000e+00> : vector<2x64xf32>
    %240 = tpu.matmul %237, %239, %cst_128 {dimension_numbers = #tpu.dot_dimension_numbers<[1], [0], [0], [1], [0, 0, 1, 1], [], []>} : vector<2x16xbf16>, vector<16x64xbf16>, vector<2x64xf32> -> vector<2x64xf32>
    %241 = arith.addf %234, %240 : vector<2x64xf32>
    %242 = vector.extract_strided_slice %241 {offsets = [0, 0], sizes = [2, 16], strides = [1, 1]} : vector<2x64xf32> to vector<2x16xf32>
    %243 = arith.negf %242 : vector<2x16xf32>
    %244 = math.exp %243 : vector<2x16xf32>
    %cst_129 = arith.constant 1.000000e+00 : f32
    %245 = vector.broadcast %cst_129 : f32 to vector<2x16xf32>
    %246 = arith.addf %245, %244 : vector<2x16xf32>
    %247 = arith.divf %245, %246 : vector<2x16xf32>
    %248 = vector.extract_strided_slice %241 {offsets = [0, 16], sizes = [2, 16], strides = [1, 1]} : vector<2x64xf32> to vector<2x16xf32>
    %249 = arith.negf %248 : vector<2x16xf32>
    %250 = math.exp %249 : vector<2x16xf32>
    %cst_130 = arith.constant 1.000000e+00 : f32
    %251 = vector.broadcast %cst_130 : f32 to vector<2x16xf32>
    %252 = arith.addf %251, %250 : vector<2x16xf32>
    %253 = arith.divf %251, %252 : vector<2x16xf32>
    %254 = vector.extract_strided_slice %241 {offsets = [0, 32], sizes = [2, 16], strides = [1, 1]} : vector<2x64xf32> to vector<2x16xf32>
    %255 = math.tanh %254 : vector<2x16xf32>
    %256 = vector.extract_strided_slice %241 {offsets = [0, 48], sizes = [2, 16], strides = [1, 1]} : vector<2x64xf32> to vector<2x16xf32>
    %257 = arith.negf %256 : vector<2x16xf32>
    %258 = math.exp %257 : vector<2x16xf32>
    %cst_131 = arith.constant 1.000000e+00 : f32
    %259 = vector.broadcast %cst_131 : f32 to vector<2x16xf32>
    %260 = arith.addf %259, %258 : vector<2x16xf32>
    %261 = arith.divf %259, %260 : vector<2x16xf32>
    %c1_132 = arith.constant 1 : index
    %c0_133 = arith.constant 0 : index
    %c0_134 = arith.constant 0 : index
    %262 = vector.load %arg7[%c1_132, %c0_133, %c0_134] : memref<2x2x16xf32, #tpu.memory_space<vmem>>, vector<1x2x16xf32>
    %263 = vector.shape_cast %262 : vector<1x2x16xf32> to vector<2x16xf32>
    %264 = arith.mulf %253, %263 : vector<2x16xf32>
    %265 = arith.mulf %247, %255 : vector<2x16xf32>
    %266 = arith.addf %264, %265 : vector<2x16xf32>
    %267 = math.tanh %266 : vector<2x16xf32>
    %268 = arith.mulf %261, %267 : vector<2x16xf32>
    %c1_135 = arith.constant 1 : index
    %c0_136 = arith.constant 0 : index
    %c0_137 = arith.constant 0 : index
    %269 = vector.load %arg6[%c1_135, %c0_136, %c0_137] : memref<2x2x16xf32, #tpu.memory_space<vmem>>, vector<1x2x16xf32>
    %270 = vector.shape_cast %269 : vector<1x2x16xf32> to vector<2x16xf32>
    %271 = vector.shape_cast %268 : vector<2x16xf32> to vector<1x2x16xf32>
    tpu.vector_store %arg6[%c1_135, %c0_136, %c0_137], %271 {strides = array<i32>} : memref<2x2x16xf32, #tpu.memory_space<vmem>>, vector<1x2x16xf32>,
    %c1_138 = arith.constant 1 : index
    %c0_139 = arith.constant 0 : index
    %c0_140 = arith.constant 0 : index
    %272 = vector.load %arg7[%c1_138, %c0_139, %c0_140] : memref<2x2x16xf32, #tpu.memory_space<vmem>>, vector<1x2x16xf32>
    %273 = vector.shape_cast %272 : vector<1x2x16xf32> to vector<2x16xf32>
    %274 = vector.shape_cast %266 : vector<2x16xf32> to vector<1x2x16xf32>
    tpu.vector_store %arg7[%c1_138, %c0_139, %c0_140], %274 {strides = array<i32>} : memref<2x2x16xf32, #tpu.memory_space<vmem>>, vector<1x2x16xf32>,
    %275 = arith.truncf %268 : vector<2x16xf32> to vector<2x16xbf16>
    %c5_141 = arith.constant 5 : index
    %c0_142 = arith.constant 0 : index
    %c0_143 = arith.constant 0 : index
    %276 = vector.load %arg5[%c5_141, %c0_142, %c0_143] : memref<8x2x16xbf16, #tpu.memory_space<vmem>>, vector<1x2x16xbf16>
    %277 = vector.shape_cast %276 : vector<1x2x16xbf16> to vector<2x16xbf16>
    %278 = vector.shape_cast %275 : vector<2x16xbf16> to vector<1x2x16xbf16>
    tpu.vector_store %arg5[%c5_141, %c0_142, %c0_143], %278 {strides = array<i32>} : memref<8x2x16xbf16, #tpu.memory_space<vmem>>, vector<1x2x16xbf16>,
    %c3 = arith.constant 3 : index
    %c0_144 = arith.constant 0 : index
    %c0_145 = arith.constant 0 : index
    %279 = vector.load %arg1[%c3, %c0_144, %c0_145] : memref<8x2x64xf32, #tpu.memory_space<vmem>>, vector<1x2x64xf32>
    %280 = vector.shape_cast %279 : vector<1x2x64xf32> to vector<2x64xf32>
    %c0_146 = arith.constant 0 : index
    %c0_147 = arith.constant 0 : index
    %c0_148 = arith.constant 0 : index
    %281 = vector.load %arg6[%c0_146, %c0_147, %c0_148] : memref<2x2x16xf32, #tpu.memory_space<vmem>>, vector<1x2x16xf32>
    %282 = vector.shape_cast %281 : vector<1x2x16xf32> to vector<2x16xf32>
    %283 = arith.truncf %282 : vector<2x16xf32> to vector<2x16xbf16>
    %c0_149 = arith.constant 0 : index
    %c0_150 = arith.constant 0 : index
    %c0_151 = arith.constant 0 : index
    %284 = vector.load %arg3[%c0_149, %c0_150, %c0_151] : memref<2x16x64xbf16, #tpu.memory_space<vmem>>, vector<1x16x64xbf16>
    %285 = vector.shape_cast %284 : vector<1x16x64xbf16> to vector<16x64xbf16>
    %cst_152 = arith.constant dense<0.000000e+00> : vector<2x64xf32>
    %286 = tpu.matmul %283, %285, %cst_152 {dimension_numbers = #tpu.dot_dimension_numbers<[1], [0], [0], [1], [0, 0, 1, 1], [], []>} : vector<2x16xbf16>, vector<16x64xbf16>, vector<2x64xf32> -> vector<2x64xf32>
    %287 = arith.addf %280, %286 : vector<2x64xf32>
    %288 = vector.extract_strided_slice %287 {offsets = [0, 0], sizes = [2, 16], strides = [1, 1]} : vector<2x64xf32> to vector<2x16xf32>
    %289 = arith.negf %288 : vector<2x16xf32>
    %290 = math.exp %289 : vector<2x16xf32>
    %cst_153 = arith.constant 1.000000e+00 : f32
    %291 = vector.broadcast %cst_153 : f32 to vector<2x16xf32>
    %292 = arith.addf %291, %290 : vector<2x16xf32>
    %293 = arith.divf %291, %292 : vector<2x16xf32>
    %294 = vector.extract_strided_slice %287 {offsets = [0, 16], sizes = [2, 16], strides = [1, 1]} : vector<2x64xf32> to vector<2x16xf32>
    %295 = arith.negf %294 : vector<2x16xf32>
    %296 = math.exp %295 : vector<2x16xf32>
    %cst_154 = arith.constant 1.000000e+00 : f32
    %297 = vector.broadcast %cst_154 : f32 to vector<2x16xf32>
    %298 = arith.addf %297, %296 : vector<2x16xf32>
    %299 = arith.divf %297, %298 : vector<2x16xf32>
    %300 = vector.extract_strided_slice %287 {offsets = [0, 32], sizes = [2, 16], strides = [1, 1]} : vector<2x64xf32> to vector<2x16xf32>
    %301 = math.tanh %300 : vector<2x16xf32>
    %302 = vector.extract_strided_slice %287 {offsets = [0, 48], sizes = [2, 16], strides = [1, 1]} : vector<2x64xf32> to vector<2x16xf32>
    %303 = arith.negf %302 : vector<2x16xf32>
    %304 = math.exp %303 : vector<2x16xf32>
    %cst_155 = arith.constant 1.000000e+00 : f32
    %305 = vector.broadcast %cst_155 : f32 to vector<2x16xf32>
    %306 = arith.addf %305, %304 : vector<2x16xf32>
    %307 = arith.divf %305, %306 : vector<2x16xf32>
    %c0_156 = arith.constant 0 : index
    %c0_157 = arith.constant 0 : index
    %c0_158 = arith.constant 0 : index
    %308 = vector.load %arg7[%c0_156, %c0_157, %c0_158] : memref<2x2x16xf32, #tpu.memory_space<vmem>>, vector<1x2x16xf32>
    %309 = vector.shape_cast %308 : vector<1x2x16xf32> to vector<2x16xf32>
    %310 = arith.mulf %299, %309 : vector<2x16xf32>
    %311 = arith.mulf %293, %301 : vector<2x16xf32>
    %312 = arith.addf %310, %311 : vector<2x16xf32>
    %313 = math.tanh %312 : vector<2x16xf32>
    %314 = arith.mulf %307, %313 : vector<2x16xf32>
    %c0_159 = arith.constant 0 : index
    %c0_160 = arith.constant 0 : index
    %c0_161 = arith.constant 0 : index
    %315 = vector.load %arg6[%c0_159, %c0_160, %c0_161] : memref<2x2x16xf32, #tpu.memory_space<vmem>>, vector<1x2x16xf32>
    %316 = vector.shape_cast %315 : vector<1x2x16xf32> to vector<2x16xf32>
    %317 = vector.shape_cast %314 : vector<2x16xf32> to vector<1x2x16xf32>
    tpu.vector_store %arg6[%c0_159, %c0_160, %c0_161], %317 {strides = array<i32>} : memref<2x2x16xf32, #tpu.memory_space<vmem>>, vector<1x2x16xf32>,
    %c0_162 = arith.constant 0 : index
    %c0_163 = arith.constant 0 : index
    %c0_164 = arith.constant 0 : index
    %318 = vector.load %arg7[%c0_162, %c0_163, %c0_164] : memref<2x2x16xf32, #tpu.memory_space<vmem>>, vector<1x2x16xf32>
    %319 = vector.shape_cast %318 : vector<1x2x16xf32> to vector<2x16xf32>
    %320 = vector.shape_cast %312 : vector<2x16xf32> to vector<1x2x16xf32>
    tpu.vector_store %arg7[%c0_162, %c0_163, %c0_164], %320 {strides = array<i32>} : memref<2x2x16xf32, #tpu.memory_space<vmem>>, vector<1x2x16xf32>,
    %321 = arith.truncf %314 : vector<2x16xf32> to vector<2x16xbf16>
    %c3_165 = arith.constant 3 : index
    %c0_166 = arith.constant 0 : index
    %c0_167 = arith.constant 0 : index
    %322 = vector.load %arg4[%c3_165, %c0_166, %c0_167] : memref<8x2x16xbf16, #tpu.memory_space<vmem>>, vector<1x2x16xbf16>
    %323 = vector.shape_cast %322 : vector<1x2x16xbf16> to vector<2x16xbf16>
    %324 = vector.shape_cast %321 : vector<2x16xbf16> to vector<1x2x16xbf16>
    tpu.vector_store %arg4[%c3_165, %c0_166, %c0_167], %324 {strides = array<i32>} : memref<8x2x16xbf16, #tpu.memory_space<vmem>>, vector<1x2x16xbf16>,
    %c4 = arith.constant 4 : index
    %c0_168 = arith.constant 0 : index
    %c0_169 = arith.constant 0 : index
    %325 = vector.load %arg2[%c4, %c0_168, %c0_169] : memref<8x2x64xf32, #tpu.memory_space<vmem>>, vector<1x2x64xf32>
    %326 = vector.shape_cast %325 : vector<1x2x64xf32> to vector<2x64xf32>
    %c1_170 = arith.constant 1 : index
    %c0_171 = arith.constant 0 : index
    %c0_172 = arith.constant 0 : index
    %327 = vector.load %arg6[%c1_170, %c0_171, %c0_172] : memref<2x2x16xf32, #tpu.memory_space<vmem>>, vector<1x2x16xf32>
    %328 = vector.shape_cast %327 : vector<1x2x16xf32> to vector<2x16xf32>
    %329 = arith.truncf %328 : vector<2x16xf32> to vector<2x16xbf16>
    %c1_173 = arith.constant 1 : index
    %c0_174 = arith.constant 0 : index
    %c0_175 = arith.constant 0 : index
    %330 = vector.load %arg3[%c1_173, %c0_174, %c0_175] : memref<2x16x64xbf16, #tpu.memory_space<vmem>>, vector<1x16x64xbf16>
    %331 = vector.shape_cast %330 : vector<1x16x64xbf16> to vector<16x64xbf16>
    %cst_176 = arith.constant dense<0.000000e+00> : vector<2x64xf32>
    %332 = tpu.matmul %329, %331, %cst_176 {dimension_numbers = #tpu.dot_dimension_numbers<[1], [0], [0], [1], [0, 0, 1, 1], [], []>} : vector<2x16xbf16>, vector<16x64xbf16>, vector<2x64xf32> -> vector<2x64xf32>
    %333 = arith.addf %326, %332 : vector<2x64xf32>
    %334 = vector.extract_strided_slice %333 {offsets = [0, 0], sizes = [2, 16], strides = [1, 1]} : vector<2x64xf32> to vector<2x16xf32>
    %335 = arith.negf %334 : vector<2x16xf32>
    %336 = math.exp %335 : vector<2x16xf32>
    %cst_177 = arith.constant 1.000000e+00 : f32
    %337 = vector.broadcast %cst_177 : f32 to vector<2x16xf32>
    %338 = arith.addf %337, %336 : vector<2x16xf32>
    %339 = arith.divf %337, %338 : vector<2x16xf32>
    %340 = vector.extract_strided_slice %333 {offsets = [0, 16], sizes = [2, 16], strides = [1, 1]} : vector<2x64xf32> to vector<2x16xf32>
    %341 = arith.negf %340 : vector<2x16xf32>
    %342 = math.exp %341 : vector<2x16xf32>
    %cst_178 = arith.constant 1.000000e+00 : f32
    %343 = vector.broadcast %cst_178 : f32 to vector<2x16xf32>
    %344 = arith.addf %343, %342 : vector<2x16xf32>
    %345 = arith.divf %343, %344 : vector<2x16xf32>
    %346 = vector.extract_strided_slice %333 {offsets = [0, 32], sizes = [2, 16], strides = [1, 1]} : vector<2x64xf32> to vector<2x16xf32>
    %347 = math.tanh %346 : vector<2x16xf32>
    %348 = vector.extract_strided_slice %333 {offsets = [0, 48], sizes = [2, 16], strides = [1, 1]} : vector<2x64xf32> to vector<2x16xf32>
    %349 = arith.negf %348 : vector<2x16xf32>
    %350 = math.exp %349 : vector<2x16xf32>
    %cst_179 = arith.constant 1.000000e+00 : f32
    %351 = vector.broadcast %cst_179 : f32 to vector<2x16xf32>
    %352 = arith.addf %351, %350 : vector<2x16xf32>
    %353 = arith.divf %351, %352 : vector<2x16xf32>
    %c1_180 = arith.constant 1 : index
    %c0_181 = arith.constant 0 : index
    %c0_182 = arith.constant 0 : index
    %354 = vector.load %arg7[%c1_180, %c0_181, %c0_182] : memref<2x2x16xf32, #tpu.memory_space<vmem>>, vector<1x2x16xf32>
    %355 = vector.shape_cast %354 : vector<1x2x16xf32> to vector<2x16xf32>
    %356 = arith.mulf %345, %355 : vector<2x16xf32>
    %357 = arith.mulf %339, %347 : vector<2x16xf32>
    %358 = arith.addf %356, %357 : vector<2x16xf32>
    %359 = math.tanh %358 : vector<2x16xf32>
    %360 = arith.mulf %353, %359 : vector<2x16xf32>
    %c1_183 = arith.constant 1 : index
    %c0_184 = arith.constant 0 : index
    %c0_185 = arith.constant 0 : index
    %361 = vector.load %arg6[%c1_183, %c0_184, %c0_185] : memref<2x2x16xf32, #tpu.memory_space<vmem>>, vector<1x2x16xf32>
    %362 = vector.shape_cast %361 : vector<1x2x16xf32> to vector<2x16xf32>
    %363 = vector.shape_cast %360 : vector<2x16xf32> to vector<1x2x16xf32>
    tpu.vector_store %arg6[%c1_183, %c0_184, %c0_185], %363 {strides = array<i32>} : memref<2x2x16xf32, #tpu.memory_space<vmem>>, vector<1x2x16xf32>,
    %c1_186 = arith.constant 1 : index
    %c0_187 = arith.constant 0 : index
    %c0_188 = arith.constant 0 : index
    %364 = vector.load %arg7[%c1_186, %c0_187, %c0_188] : memref<2x2x16xf32, #tpu.memory_space<vmem>>, vector<1x2x16xf32>
    %365 = vector.shape_cast %364 : vector<1x2x16xf32> to vector<2x16xf32>
    %366 = vector.shape_cast %358 : vector<2x16xf32> to vector<1x2x16xf32>
    tpu.vector_store %arg7[%c1_186, %c0_187, %c0_188], %366 {strides = array<i32>} : memref<2x2x16xf32, #tpu.memory_space<vmem>>, vector<1x2x16xf32>,
    %367 = arith.truncf %360 : vector<2x16xf32> to vector<2x16xbf16>
    %c4_189 = arith.constant 4 : index
    %c0_190 = arith.constant 0 : index
    %c0_191 = arith.constant 0 : index
    %368 = vector.load %arg5[%c4_189, %c0_190, %c0_191] : memref<8x2x16xbf16, #tpu.memory_space<vmem>>, vector<1x2x16xbf16>
    %369 = vector.shape_cast %368 : vector<1x2x16xbf16> to vector<2x16xbf16>
    %370 = vector.shape_cast %367 : vector<2x16xbf16> to vector<1x2x16xbf16>
    tpu.vector_store %arg5[%c4_189, %c0_190, %c0_191], %370 {strides = array<i32>} : memref<8x2x16xbf16, #tpu.memory_space<vmem>>, vector<1x2x16xbf16>,
    %c4_192 = arith.constant 4 : index
    %c0_193 = arith.constant 0 : index
    %c0_194 = arith.constant 0 : index
    %371 = vector.load %arg1[%c4_192, %c0_193, %c0_194] : memref<8x2x64xf32, #tpu.memory_space<vmem>>, vector<1x2x64xf32>
    %372 = vector.shape_cast %371 : vector<1x2x64xf32> to vector<2x64xf32>
    %c0_195 = arith.constant 0 : index
    %c0_196 = arith.constant 0 : index
    %c0_197 = arith.constant 0 : index
    %373 = vector.load %arg6[%c0_195, %c0_196, %c0_197] : memref<2x2x16xf32, #tpu.memory_space<vmem>>, vector<1x2x16xf32>
    %374 = vector.shape_cast %373 : vector<1x2x16xf32> to vector<2x16xf32>
    %375 = arith.truncf %374 : vector<2x16xf32> to vector<2x16xbf16>
    %c0_198 = arith.constant 0 : index
    %c0_199 = arith.constant 0 : index
    %c0_200 = arith.constant 0 : index
    %376 = vector.load %arg3[%c0_198, %c0_199, %c0_200] : memref<2x16x64xbf16, #tpu.memory_space<vmem>>, vector<1x16x64xbf16>
    %377 = vector.shape_cast %376 : vector<1x16x64xbf16> to vector<16x64xbf16>
    %cst_201 = arith.constant dense<0.000000e+00> : vector<2x64xf32>
    %378 = tpu.matmul %375, %377, %cst_201 {dimension_numbers = #tpu.dot_dimension_numbers<[1], [0], [0], [1], [0, 0, 1, 1], [], []>} : vector<2x16xbf16>, vector<16x64xbf16>, vector<2x64xf32> -> vector<2x64xf32>
    %379 = arith.addf %372, %378 : vector<2x64xf32>
    %380 = vector.extract_strided_slice %379 {offsets = [0, 0], sizes = [2, 16], strides = [1, 1]} : vector<2x64xf32> to vector<2x16xf32>
    %381 = arith.negf %380 : vector<2x16xf32>
    %382 = math.exp %381 : vector<2x16xf32>
    %cst_202 = arith.constant 1.000000e+00 : f32
    %383 = vector.broadcast %cst_202 : f32 to vector<2x16xf32>
    %384 = arith.addf %383, %382 : vector<2x16xf32>
    %385 = arith.divf %383, %384 : vector<2x16xf32>
    %386 = vector.extract_strided_slice %379 {offsets = [0, 16], sizes = [2, 16], strides = [1, 1]} : vector<2x64xf32> to vector<2x16xf32>
    %387 = arith.negf %386 : vector<2x16xf32>
    %388 = math.exp %387 : vector<2x16xf32>
    %cst_203 = arith.constant 1.000000e+00 : f32
    %389 = vector.broadcast %cst_203 : f32 to vector<2x16xf32>
    %390 = arith.addf %389, %388 : vector<2x16xf32>
    %391 = arith.divf %389, %390 : vector<2x16xf32>
    %392 = vector.extract_strided_slice %379 {offsets = [0, 32], sizes = [2, 16], strides = [1, 1]} : vector<2x64xf32> to vector<2x16xf32>
    %393 = math.tanh %392 : vector<2x16xf32>
    %394 = vector.extract_strided_slice %379 {offsets = [0, 48], sizes = [2, 16], strides = [1, 1]} : vector<2x64xf32> to vector<2x16xf32>
    %395 = arith.negf %394 : vector<2x16xf32>
    %396 = math.exp %395 : vector<2x16xf32>
    %cst_204 = arith.constant 1.000000e+00 : f32
    %397 = vector.broadcast %cst_204 : f32 to vector<2x16xf32>
    %398 = arith.addf %397, %396 : vector<2x16xf32>
    %399 = arith.divf %397, %398 : vector<2x16xf32>
    %c0_205 = arith.constant 0 : index
    %c0_206 = arith.constant 0 : index
    %c0_207 = arith.constant 0 : index
    %400 = vector.load %arg7[%c0_205, %c0_206, %c0_207] : memref<2x2x16xf32, #tpu.memory_space<vmem>>, vector<1x2x16xf32>
    %401 = vector.shape_cast %400 : vector<1x2x16xf32> to vector<2x16xf32>
    %402 = arith.mulf %391, %401 : vector<2x16xf32>
    %403 = arith.mulf %385, %393 : vector<2x16xf32>
    %404 = arith.addf %402, %403 : vector<2x16xf32>
    %405 = math.tanh %404 : vector<2x16xf32>
    %406 = arith.mulf %399, %405 : vector<2x16xf32>
    %c0_208 = arith.constant 0 : index
    %c0_209 = arith.constant 0 : index
    %c0_210 = arith.constant 0 : index
    %407 = vector.load %arg6[%c0_208, %c0_209, %c0_210] : memref<2x2x16xf32, #tpu.memory_space<vmem>>, vector<1x2x16xf32>
    %408 = vector.shape_cast %407 : vector<1x2x16xf32> to vector<2x16xf32>
    %409 = vector.shape_cast %406 : vector<2x16xf32> to vector<1x2x16xf32>
    tpu.vector_store %arg6[%c0_208, %c0_209, %c0_210], %409 {strides = array<i32>} : memref<2x2x16xf32, #tpu.memory_space<vmem>>, vector<1x2x16xf32>,
    %c0_211 = arith.constant 0 : index
    %c0_212 = arith.constant 0 : index
    %c0_213 = arith.constant 0 : index
    %410 = vector.load %arg7[%c0_211, %c0_212, %c0_213] : memref<2x2x16xf32, #tpu.memory_space<vmem>>, vector<1x2x16xf32>
    %411 = vector.shape_cast %410 : vector<1x2x16xf32> to vector<2x16xf32>
    %412 = vector.shape_cast %404 : vector<2x16xf32> to vector<1x2x16xf32>
    tpu.vector_store %arg7[%c0_211, %c0_212, %c0_213], %412 {strides = array<i32>} : memref<2x2x16xf32, #tpu.memory_space<vmem>>, vector<1x2x16xf32>,
    %413 = arith.truncf %406 : vector<2x16xf32> to vector<2x16xbf16>
    %c4_214 = arith.constant 4 : index
    %c0_215 = arith.constant 0 : index
    %c0_216 = arith.constant 0 : index
    %414 = vector.load %arg4[%c4_214, %c0_215, %c0_216] : memref<8x2x16xbf16, #tpu.memory_space<vmem>>, vector<1x2x16xbf16>
    %415 = vector.shape_cast %414 : vector<1x2x16xbf16> to vector<2x16xbf16>
    %416 = vector.shape_cast %413 : vector<2x16xbf16> to vector<1x2x16xbf16>
    tpu.vector_store %arg4[%c4_214, %c0_215, %c0_216], %416 {strides = array<i32>} : memref<8x2x16xbf16, #tpu.memory_space<vmem>>, vector<1x2x16xbf16>,
    %c3_217 = arith.constant 3 : index
    %c0_218 = arith.constant 0 : index
    %c0_219 = arith.constant 0 : index
    %417 = vector.load %arg2[%c3_217, %c0_218, %c0_219] : memref<8x2x64xf32, #tpu.memory_space<vmem>>, vector<1x2x64xf32>
    %418 = vector.shape_cast %417 : vector<1x2x64xf32> to vector<2x64xf32>
    %c1_220 = arith.constant 1 : index
    %c0_221 = arith.constant 0 : index
    %c0_222 = arith.constant 0 : index
    %419 = vector.load %arg6[%c1_220, %c0_221, %c0_222] : memref<2x2x16xf32, #tpu.memory_space<vmem>>, vector<1x2x16xf32>
    %420 = vector.shape_cast %419 : vector<1x2x16xf32> to vector<2x16xf32>
    %421 = arith.truncf %420 : vector<2x16xf32> to vector<2x16xbf16>
    %c1_223 = arith.constant 1 : index
    %c0_224 = arith.constant 0 : index
    %c0_225 = arith.constant 0 : index
    %422 = vector.load %arg3[%c1_223, %c0_224, %c0_225] : memref<2x16x64xbf16, #tpu.memory_space<vmem>>, vector<1x16x64xbf16>
    %423 = vector.shape_cast %422 : vector<1x16x64xbf16> to vector<16x64xbf16>
    %cst_226 = arith.constant dense<0.000000e+00> : vector<2x64xf32>
    %424 = tpu.matmul %421, %423, %cst_226 {dimension_numbers = #tpu.dot_dimension_numbers<[1], [0], [0], [1], [0, 0, 1, 1], [], []>} : vector<2x16xbf16>, vector<16x64xbf16>, vector<2x64xf32> -> vector<2x64xf32>
    %425 = arith.addf %418, %424 : vector<2x64xf32>
    %426 = vector.extract_strided_slice %425 {offsets = [0, 0], sizes = [2, 16], strides = [1, 1]} : vector<2x64xf32> to vector<2x16xf32>
    %427 = arith.negf %426 : vector<2x16xf32>
    %428 = math.exp %427 : vector<2x16xf32>
    %cst_227 = arith.constant 1.000000e+00 : f32
    %429 = vector.broadcast %cst_227 : f32 to vector<2x16xf32>
    %430 = arith.addf %429, %428 : vector<2x16xf32>
    %431 = arith.divf %429, %430 : vector<2x16xf32>
    %432 = vector.extract_strided_slice %425 {offsets = [0, 16], sizes = [2, 16], strides = [1, 1]} : vector<2x64xf32> to vector<2x16xf32>
    %433 = arith.negf %432 : vector<2x16xf32>
    %434 = math.exp %433 : vector<2x16xf32>
    %cst_228 = arith.constant 1.000000e+00 : f32
    %435 = vector.broadcast %cst_228 : f32 to vector<2x16xf32>
    %436 = arith.addf %435, %434 : vector<2x16xf32>
    %437 = arith.divf %435, %436 : vector<2x16xf32>
    %438 = vector.extract_strided_slice %425 {offsets = [0, 32], sizes = [2, 16], strides = [1, 1]} : vector<2x64xf32> to vector<2x16xf32>
    %439 = math.tanh %438 : vector<2x16xf32>
    %440 = vector.extract_strided_slice %425 {offsets = [0, 48], sizes = [2, 16], strides = [1, 1]} : vector<2x64xf32> to vector<2x16xf32>
    %441 = arith.negf %440 : vector<2x16xf32>
    %442 = math.exp %441 : vector<2x16xf32>
    %cst_229 = arith.constant 1.000000e+00 : f32
    %443 = vector.broadcast %cst_229 : f32 to vector<2x16xf32>
    %444 = arith.addf %443, %442 : vector<2x16xf32>
    %445 = arith.divf %443, %444 : vector<2x16xf32>
    %c1_230 = arith.constant 1 : index
    %c0_231 = arith.constant 0 : index
    %c0_232 = arith.constant 0 : index
    %446 = vector.load %arg7[%c1_230, %c0_231, %c0_232] : memref<2x2x16xf32, #tpu.memory_space<vmem>>, vector<1x2x16xf32>
    %447 = vector.shape_cast %446 : vector<1x2x16xf32> to vector<2x16xf32>
    %448 = arith.mulf %437, %447 : vector<2x16xf32>
    %449 = arith.mulf %431, %439 : vector<2x16xf32>
    %450 = arith.addf %448, %449 : vector<2x16xf32>
    %451 = math.tanh %450 : vector<2x16xf32>
    %452 = arith.mulf %445, %451 : vector<2x16xf32>
    %c1_233 = arith.constant 1 : index
    %c0_234 = arith.constant 0 : index
    %c0_235 = arith.constant 0 : index
    %453 = vector.load %arg6[%c1_233, %c0_234, %c0_235] : memref<2x2x16xf32, #tpu.memory_space<vmem>>, vector<1x2x16xf32>
    %454 = vector.shape_cast %453 : vector<1x2x16xf32> to vector<2x16xf32>
    %455 = vector.shape_cast %452 : vector<2x16xf32> to vector<1x2x16xf32>
    tpu.vector_store %arg6[%c1_233, %c0_234, %c0_235], %455 {strides = array<i32>} : memref<2x2x16xf32, #tpu.memory_space<vmem>>, vector<1x2x16xf32>,
    %c1_236 = arith.constant 1 : index
    %c0_237 = arith.constant 0 : index
    %c0_238 = arith.constant 0 : index
    %456 = vector.load %arg7[%c1_236, %c0_237, %c0_238] : memref<2x2x16xf32, #tpu.memory_space<vmem>>, vector<1x2x16xf32>
    %457 = vector.shape_cast %456 : vector<1x2x16xf32> to vector<2x16xf32>
    %458 = vector.shape_cast %450 : vector<2x16xf32> to vector<1x2x16xf32>
    tpu.vector_store %arg7[%c1_236, %c0_237, %c0_238], %458 {strides = array<i32>} : memref<2x2x16xf32, #tpu.memory_space<vmem>>, vector<1x2x16xf32>,
    %459 = arith.truncf %452 : vector<2x16xf32> to vector<2x16xbf16>
    %c3_239 = arith.constant 3 : index
    %c0_240 = arith.constant 0 : index
    %c0_241 = arith.constant 0 : index
    %460 = vector.load %arg5[%c3_239, %c0_240, %c0_241] : memref<8x2x16xbf16, #tpu.memory_space<vmem>>, vector<1x2x16xbf16>
    %461 = vector.shape_cast %460 : vector<1x2x16xbf16> to vector<2x16xbf16>
    %462 = vector.shape_cast %459 : vector<2x16xbf16> to vector<1x2x16xbf16>
    tpu.vector_store %arg5[%c3_239, %c0_240, %c0_241], %462 {strides = array<i32>} : memref<8x2x16xbf16, #tpu.memory_space<vmem>>, vector<1x2x16xbf16>,
    %c5_242 = arith.constant 5 : index
    %c0_243 = arith.constant 0 : index
    %c0_244 = arith.constant 0 : index
    %463 = vector.load %arg1[%c5_242, %c0_243, %c0_244] : memref<8x2x64xf32, #tpu.memory_space<vmem>>, vector<1x2x64xf32>
    %464 = vector.shape_cast %463 : vector<1x2x64xf32> to vector<2x64xf32>
    %c0_245 = arith.constant 0 : index
    %c0_246 = arith.constant 0 : index
    %c0_247 = arith.constant 0 : index
    %465 = vector.load %arg6[%c0_245, %c0_246, %c0_247] : memref<2x2x16xf32, #tpu.memory_space<vmem>>, vector<1x2x16xf32>
    %466 = vector.shape_cast %465 : vector<1x2x16xf32> to vector<2x16xf32>
    %467 = arith.truncf %466 : vector<2x16xf32> to vector<2x16xbf16>
    %c0_248 = arith.constant 0 : index
    %c0_249 = arith.constant 0 : index
    %c0_250 = arith.constant 0 : index
    %468 = vector.load %arg3[%c0_248, %c0_249, %c0_250] : memref<2x16x64xbf16, #tpu.memory_space<vmem>>, vector<1x16x64xbf16>
    %469 = vector.shape_cast %468 : vector<1x16x64xbf16> to vector<16x64xbf16>
    %cst_251 = arith.constant dense<0.000000e+00> : vector<2x64xf32>
    %470 = tpu.matmul %467, %469, %cst_251 {dimension_numbers = #tpu.dot_dimension_numbers<[1], [0], [0], [1], [0, 0, 1, 1], [], []>} : vector<2x16xbf16>, vector<16x64xbf16>, vector<2x64xf32> -> vector<2x64xf32>
    %471 = arith.addf %464, %470 : vector<2x64xf32>
    %472 = vector.extract_strided_slice %471 {offsets = [0, 0], sizes = [2, 16], strides = [1, 1]} : vector<2x64xf32> to vector<2x16xf32>
    %473 = arith.negf %472 : vector<2x16xf32>
    %474 = math.exp %473 : vector<2x16xf32>
    %cst_252 = arith.constant 1.000000e+00 : f32
    %475 = vector.broadcast %cst_252 : f32 to vector<2x16xf32>
    %476 = arith.addf %475, %474 : vector<2x16xf32>
    %477 = arith.divf %475, %476 : vector<2x16xf32>
    %478 = vector.extract_strided_slice %471 {offsets = [0, 16], sizes = [2, 16], strides = [1, 1]} : vector<2x64xf32> to vector<2x16xf32>
    %479 = arith.negf %478 : vector<2x16xf32>
    %480 = math.exp %479 : vector<2x16xf32>
    %cst_253 = arith.constant 1.000000e+00 : f32
    %481 = vector.broadcast %cst_253 : f32 to vector<2x16xf32>
    %482 = arith.addf %481, %480 : vector<2x16xf32>
    %483 = arith.divf %481, %482 : vector<2x16xf32>
    %484 = vector.extract_strided_slice %471 {offsets = [0, 32], sizes = [2, 16], strides = [1, 1]} : vector<2x64xf32> to vector<2x16xf32>
    %485 = math.tanh %484 : vector<2x16xf32>
    %486 = vector.extract_strided_slice %471 {offsets = [0, 48], sizes = [2, 16], strides = [1, 1]} : vector<2x64xf32> to vector<2x16xf32>
    %487 = arith.negf %486 : vector<2x16xf32>
    %488 = math.exp %487 : vector<2x16xf32>
    %cst_254 = arith.constant 1.000000e+00 : f32
    %489 = vector.broadcast %cst_254 : f32 to vector<2x16xf32>
    %490 = arith.addf %489, %488 : vector<2x16xf32>
    %491 = arith.divf %489, %490 : vector<2x16xf32>
    %c0_255 = arith.constant 0 : index
    %c0_256 = arith.constant 0 : index
    %c0_257 = arith.constant 0 : index
    %492 = vector.load %arg7[%c0_255, %c0_256, %c0_257] : memref<2x2x16xf32, #tpu.memory_space<vmem>>, vector<1x2x16xf32>
    %493 = vector.shape_cast %492 : vector<1x2x16xf32> to vector<2x16xf32>
    %494 = arith.mulf %483, %493 : vector<2x16xf32>
    %495 = arith.mulf %477, %485 : vector<2x16xf32>
    %496 = arith.addf %494, %495 : vector<2x16xf32>
    %497 = math.tanh %496 : vector<2x16xf32>
    %498 = arith.mulf %491, %497 : vector<2x16xf32>
    %c0_258 = arith.constant 0 : index
    %c0_259 = arith.constant 0 : index
    %c0_260 = arith.constant 0 : index
    %499 = vector.load %arg6[%c0_258, %c0_259, %c0_260] : memref<2x2x16xf32, #tpu.memory_space<vmem>>, vector<1x2x16xf32>
    %500 = vector.shape_cast %499 : vector<1x2x16xf32> to vector<2x16xf32>
    %501 = vector.shape_cast %498 : vector<2x16xf32> to vector<1x2x16xf32>
    tpu.vector_store %arg6[%c0_258, %c0_259, %c0_260], %501 {strides = array<i32>} : memref<2x2x16xf32, #tpu.memory_space<vmem>>, vector<1x2x16xf32>,
    %c0_261 = arith.constant 0 : index
    %c0_262 = arith.constant 0 : index
    %c0_263 = arith.constant 0 : index
    %502 = vector.load %arg7[%c0_261, %c0_262, %c0_263] : memref<2x2x16xf32, #tpu.memory_space<vmem>>, vector<1x2x16xf32>
    %503 = vector.shape_cast %502 : vector<1x2x16xf32> to vector<2x16xf32>
    %504 = vector.shape_cast %496 : vector<2x16xf32> to vector<1x2x16xf32>
    tpu.vector_store %arg7[%c0_261, %c0_262, %c0_263], %504 {strides = array<i32>} : memref<2x2x16xf32, #tpu.memory_space<vmem>>, vector<1x2x16xf32>,
    %505 = arith.truncf %498 : vector<2x16xf32> to vector<2x16xbf16>
    %c5_264 = arith.constant 5 : index
    %c0_265 = arith.constant 0 : index
    %c0_266 = arith.constant 0 : index
    %506 = vector.load %arg4[%c5_264, %c0_265, %c0_266] : memref<8x2x16xbf16, #tpu.memory_space<vmem>>, vector<1x2x16xbf16>
    %507 = vector.shape_cast %506 : vector<1x2x16xbf16> to vector<2x16xbf16>
    %508 = vector.shape_cast %505 : vector<2x16xbf16> to vector<1x2x16xbf16>
    tpu.vector_store %arg4[%c5_264, %c0_265, %c0_266], %508 {strides = array<i32>} : memref<8x2x16xbf16, #tpu.memory_space<vmem>>, vector<1x2x16xbf16>,
    %c2_267 = arith.constant 2 : index
    %c0_268 = arith.constant 0 : index
    %c0_269 = arith.constant 0 : index
    %509 = vector.load %arg2[%c2_267, %c0_268, %c0_269] : memref<8x2x64xf32, #tpu.memory_space<vmem>>, vector<1x2x64xf32>
    %510 = vector.shape_cast %509 : vector<1x2x64xf32> to vector<2x64xf32>
    %c1_270 = arith.constant 1 : index
    %c0_271 = arith.constant 0 : index
    %c0_272 = arith.constant 0 : index
    %511 = vector.load %arg6[%c1_270, %c0_271, %c0_272] : memref<2x2x16xf32, #tpu.memory_space<vmem>>, vector<1x2x16xf32>
    %512 = vector.shape_cast %511 : vector<1x2x16xf32> to vector<2x16xf32>
    %513 = arith.truncf %512 : vector<2x16xf32> to vector<2x16xbf16>
    %c1_273 = arith.constant 1 : index
    %c0_274 = arith.constant 0 : index
    %c0_275 = arith.constant 0 : index
    %514 = vector.load %arg3[%c1_273, %c0_274, %c0_275] : memref<2x16x64xbf16, #tpu.memory_space<vmem>>, vector<1x16x64xbf16>
    %515 = vector.shape_cast %514 : vector<1x16x64xbf16> to vector<16x64xbf16>
    %cst_276 = arith.constant dense<0.000000e+00> : vector<2x64xf32>
    %516 = tpu.matmul %513, %515, %cst_276 {dimension_numbers = #tpu.dot_dimension_numbers<[1], [0], [0], [1], [0, 0, 1, 1], [], []>} : vector<2x16xbf16>, vector<16x64xbf16>, vector<2x64xf32> -> vector<2x64xf32>
    %517 = arith.addf %510, %516 : vector<2x64xf32>
    %518 = vector.extract_strided_slice %517 {offsets = [0, 0], sizes = [2, 16], strides = [1, 1]} : vector<2x64xf32> to vector<2x16xf32>
    %519 = arith.negf %518 : vector<2x16xf32>
    %520 = math.exp %519 : vector<2x16xf32>
    %cst_277 = arith.constant 1.000000e+00 : f32
    %521 = vector.broadcast %cst_277 : f32 to vector<2x16xf32>
    %522 = arith.addf %521, %520 : vector<2x16xf32>
    %523 = arith.divf %521, %522 : vector<2x16xf32>
    %524 = vector.extract_strided_slice %517 {offsets = [0, 16], sizes = [2, 16], strides = [1, 1]} : vector<2x64xf32> to vector<2x16xf32>
    %525 = arith.negf %524 : vector<2x16xf32>
    %526 = math.exp %525 : vector<2x16xf32>
    %cst_278 = arith.constant 1.000000e+00 : f32
    %527 = vector.broadcast %cst_278 : f32 to vector<2x16xf32>
    %528 = arith.addf %527, %526 : vector<2x16xf32>
    %529 = arith.divf %527, %528 : vector<2x16xf32>
    %530 = vector.extract_strided_slice %517 {offsets = [0, 32], sizes = [2, 16], strides = [1, 1]} : vector<2x64xf32> to vector<2x16xf32>
    %531 = math.tanh %530 : vector<2x16xf32>
    %532 = vector.extract_strided_slice %517 {offsets = [0, 48], sizes = [2, 16], strides = [1, 1]} : vector<2x64xf32> to vector<2x16xf32>
    %533 = arith.negf %532 : vector<2x16xf32>
    %534 = math.exp %533 : vector<2x16xf32>
    %cst_279 = arith.constant 1.000000e+00 : f32
    %535 = vector.broadcast %cst_279 : f32 to vector<2x16xf32>
    %536 = arith.addf %535, %534 : vector<2x16xf32>
    %537 = arith.divf %535, %536 : vector<2x16xf32>
    %c1_280 = arith.constant 1 : index
    %c0_281 = arith.constant 0 : index
    %c0_282 = arith.constant 0 : index
    %538 = vector.load %arg7[%c1_280, %c0_281, %c0_282] : memref<2x2x16xf32, #tpu.memory_space<vmem>>, vector<1x2x16xf32>
    %539 = vector.shape_cast %538 : vector<1x2x16xf32> to vector<2x16xf32>
    %540 = arith.mulf %529, %539 : vector<2x16xf32>
    %541 = arith.mulf %523, %531 : vector<2x16xf32>
    %542 = arith.addf %540, %541 : vector<2x16xf32>
    %543 = math.tanh %542 : vector<2x16xf32>
    %544 = arith.mulf %537, %543 : vector<2x16xf32>
    %c1_283 = arith.constant 1 : index
    %c0_284 = arith.constant 0 : index
    %c0_285 = arith.constant 0 : index
    %545 = vector.load %arg6[%c1_283, %c0_284, %c0_285] : memref<2x2x16xf32, #tpu.memory_space<vmem>>, vector<1x2x16xf32>
    %546 = vector.shape_cast %545 : vector<1x2x16xf32> to vector<2x16xf32>
    %547 = vector.shape_cast %544 : vector<2x16xf32> to vector<1x2x16xf32>
    tpu.vector_store %arg6[%c1_283, %c0_284, %c0_285], %547 {strides = array<i32>} : memref<2x2x16xf32, #tpu.memory_space<vmem>>, vector<1x2x16xf32>,
    %c1_286 = arith.constant 1 : index
    %c0_287 = arith.constant 0 : index
    %c0_288 = arith.constant 0 : index
    %548 = vector.load %arg7[%c1_286, %c0_287, %c0_288] : memref<2x2x16xf32, #tpu.memory_space<vmem>>, vector<1x2x16xf32>
    %549 = vector.shape_cast %548 : vector<1x2x16xf32> to vector<2x16xf32>
    %550 = vector.shape_cast %542 : vector<2x16xf32> to vector<1x2x16xf32>
    tpu.vector_store %arg7[%c1_286, %c0_287, %c0_288], %550 {strides = array<i32>} : memref<2x2x16xf32, #tpu.memory_space<vmem>>, vector<1x2x16xf32>,
    %551 = arith.truncf %544 : vector<2x16xf32> to vector<2x16xbf16>
    %c2_289 = arith.constant 2 : index
    %c0_290 = arith.constant 0 : index
    %c0_291 = arith.constant 0 : index
    %552 = vector.load %arg5[%c2_289, %c0_290, %c0_291] : memref<8x2x16xbf16, #tpu.memory_space<vmem>>, vector<1x2x16xbf16>
    %553 = vector.shape_cast %552 : vector<1x2x16xbf16> to vector<2x16xbf16>
    %554 = vector.shape_cast %551 : vector<2x16xbf16> to vector<1x2x16xbf16>
    tpu.vector_store %arg5[%c2_289, %c0_290, %c0_291], %554 {strides = array<i32>} : memref<8x2x16xbf16, #tpu.memory_space<vmem>>, vector<1x2x16xbf16>,
    %c6_292 = arith.constant 6 : index
    %c0_293 = arith.constant 0 : index
    %c0_294 = arith.constant 0 : index
    %555 = vector.load %arg1[%c6_292, %c0_293, %c0_294] : memref<8x2x64xf32, #tpu.memory_space<vmem>>, vector<1x2x64xf32>
    %556 = vector.shape_cast %555 : vector<1x2x64xf32> to vector<2x64xf32>
    %c0_295 = arith.constant 0 : index
    %c0_296 = arith.constant 0 : index
    %c0_297 = arith.constant 0 : index
    %557 = vector.load %arg6[%c0_295, %c0_296, %c0_297] : memref<2x2x16xf32, #tpu.memory_space<vmem>>, vector<1x2x16xf32>
    %558 = vector.shape_cast %557 : vector<1x2x16xf32> to vector<2x16xf32>
    %559 = arith.truncf %558 : vector<2x16xf32> to vector<2x16xbf16>
    %c0_298 = arith.constant 0 : index
    %c0_299 = arith.constant 0 : index
    %c0_300 = arith.constant 0 : index
    %560 = vector.load %arg3[%c0_298, %c0_299, %c0_300] : memref<2x16x64xbf16, #tpu.memory_space<vmem>>, vector<1x16x64xbf16>
    %561 = vector.shape_cast %560 : vector<1x16x64xbf16> to vector<16x64xbf16>
    %cst_301 = arith.constant dense<0.000000e+00> : vector<2x64xf32>
    %562 = tpu.matmul %559, %561, %cst_301 {dimension_numbers = #tpu.dot_dimension_numbers<[1], [0], [0], [1], [0, 0, 1, 1], [], []>} : vector<2x16xbf16>, vector<16x64xbf16>, vector<2x64xf32> -> vector<2x64xf32>
    %563 = arith.addf %556, %562 : vector<2x64xf32>
    %564 = vector.extract_strided_slice %563 {offsets = [0, 0], sizes = [2, 16], strides = [1, 1]} : vector<2x64xf32> to vector<2x16xf32>
    %565 = arith.negf %564 : vector<2x16xf32>
    %566 = math.exp %565 : vector<2x16xf32>
    %cst_302 = arith.constant 1.000000e+00 : f32
    %567 = vector.broadcast %cst_302 : f32 to vector<2x16xf32>
    %568 = arith.addf %567, %566 : vector<2x16xf32>
    %569 = arith.divf %567, %568 : vector<2x16xf32>
    %570 = vector.extract_strided_slice %563 {offsets = [0, 16], sizes = [2, 16], strides = [1, 1]} : vector<2x64xf32> to vector<2x16xf32>
    %571 = arith.negf %570 : vector<2x16xf32>
    %572 = math.exp %571 : vector<2x16xf32>
    %cst_303 = arith.constant 1.000000e+00 : f32
    %573 = vector.broadcast %cst_303 : f32 to vector<2x16xf32>
    %574 = arith.addf %573, %572 : vector<2x16xf32>
    %575 = arith.divf %573, %574 : vector<2x16xf32>
    %576 = vector.extract_strided_slice %563 {offsets = [0, 32], sizes = [2, 16], strides = [1, 1]} : vector<2x64xf32> to vector<2x16xf32>
    %577 = math.tanh %576 : vector<2x16xf32>
    %578 = vector.extract_strided_slice %563 {offsets = [0, 48], sizes = [2, 16], strides = [1, 1]} : vector<2x64xf32> to vector<2x16xf32>
    %579 = arith.negf %578 : vector<2x16xf32>
    %580 = math.exp %579 : vector<2x16xf32>
    %cst_304 = arith.constant 1.000000e+00 : f32
    %581 = vector.broadcast %cst_304 : f32 to vector<2x16xf32>
    %582 = arith.addf %581, %580 : vector<2x16xf32>
    %583 = arith.divf %581, %582 : vector<2x16xf32>
    %c0_305 = arith.constant 0 : index
    %c0_306 = arith.constant 0 : index
    %c0_307 = arith.constant 0 : index
    %584 = vector.load %arg7[%c0_305, %c0_306, %c0_307] : memref<2x2x16xf32, #tpu.memory_space<vmem>>, vector<1x2x16xf32>
    %585 = vector.shape_cast %584 : vector<1x2x16xf32> to vector<2x16xf32>
    %586 = arith.mulf %575, %585 : vector<2x16xf32>
    %587 = arith.mulf %569, %577 : vector<2x16xf32>
    %588 = arith.addf %586, %587 : vector<2x16xf32>
    %589 = math.tanh %588 : vector<2x16xf32>
    %590 = arith.mulf %583, %589 : vector<2x16xf32>
    %c0_308 = arith.constant 0 : index
    %c0_309 = arith.constant 0 : index
    %c0_310 = arith.constant 0 : index
    %591 = vector.load %arg6[%c0_308, %c0_309, %c0_310] : memref<2x2x16xf32, #tpu.memory_space<vmem>>, vector<1x2x16xf32>
    %592 = vector.shape_cast %591 : vector<1x2x16xf32> to vector<2x16xf32>
    %593 = vector.shape_cast %590 : vector<2x16xf32> to vector<1x2x16xf32>
    tpu.vector_store %arg6[%c0_308, %c0_309, %c0_310], %593 {strides = array<i32>} : memref<2x2x16xf32, #tpu.memory_space<vmem>>, vector<1x2x16xf32>,
    %c0_311 = arith.constant 0 : index
    %c0_312 = arith.constant 0 : index
    %c0_313 = arith.constant 0 : index
    %594 = vector.load %arg7[%c0_311, %c0_312, %c0_313] : memref<2x2x16xf32, #tpu.memory_space<vmem>>, vector<1x2x16xf32>
    %595 = vector.shape_cast %594 : vector<1x2x16xf32> to vector<2x16xf32>
    %596 = vector.shape_cast %588 : vector<2x16xf32> to vector<1x2x16xf32>
    tpu.vector_store %arg7[%c0_311, %c0_312, %c0_313], %596 {strides = array<i32>} : memref<2x2x16xf32, #tpu.memory_space<vmem>>, vector<1x2x16xf32>,
    %597 = arith.truncf %590 : vector<2x16xf32> to vector<2x16xbf16>
    %c6_314 = arith.constant 6 : index
    %c0_315 = arith.constant 0 : index
    %c0_316 = arith.constant 0 : index
    %598 = vector.load %arg4[%c6_314, %c0_315, %c0_316] : memref<8x2x16xbf16, #tpu.memory_space<vmem>>, vector<1x2x16xbf16>
    %599 = vector.shape_cast %598 : vector<1x2x16xbf16> to vector<2x16xbf16>
    %600 = vector.shape_cast %597 : vector<2x16xbf16> to vector<1x2x16xbf16>
    tpu.vector_store %arg4[%c6_314, %c0_315, %c0_316], %600 {strides = array<i32>} : memref<8x2x16xbf16, #tpu.memory_space<vmem>>, vector<1x2x16xbf16>,
    %c1_317 = arith.constant 1 : index
    %c0_318 = arith.constant 0 : index
    %c0_319 = arith.constant 0 : index
    %601 = vector.load %arg2[%c1_317, %c0_318, %c0_319] : memref<8x2x64xf32, #tpu.memory_space<vmem>>, vector<1x2x64xf32>
    %602 = vector.shape_cast %601 : vector<1x2x64xf32> to vector<2x64xf32>
    %c1_320 = arith.constant 1 : index
    %c0_321 = arith.constant 0 : index
    %c0_322 = arith.constant 0 : index
    %603 = vector.load %arg6[%c1_320, %c0_321, %c0_322] : memref<2x2x16xf32, #tpu.memory_space<vmem>>, vector<1x2x16xf32>
    %604 = vector.shape_cast %603 : vector<1x2x16xf32> to vector<2x16xf32>
    %605 = arith.truncf %604 : vector<2x16xf32> to vector<2x16xbf16>
    %c1_323 = arith.constant 1 : index
    %c0_324 = arith.constant 0 : index
    %c0_325 = arith.constant 0 : index
    %606 = vector.load %arg3[%c1_323, %c0_324, %c0_325] : memref<2x16x64xbf16, #tpu.memory_space<vmem>>, vector<1x16x64xbf16>
    %607 = vector.shape_cast %606 : vector<1x16x64xbf16> to vector<16x64xbf16>
    %cst_326 = arith.constant dense<0.000000e+00> : vector<2x64xf32>
    %608 = tpu.matmul %605, %607, %cst_326 {dimension_numbers = #tpu.dot_dimension_numbers<[1], [0], [0], [1], [0, 0, 1, 1], [], []>} : vector<2x16xbf16>, vector<16x64xbf16>, vector<2x64xf32> -> vector<2x64xf32>
    %609 = arith.addf %602, %608 : vector<2x64xf32>
    %610 = vector.extract_strided_slice %609 {offsets = [0, 0], sizes = [2, 16], strides = [1, 1]} : vector<2x64xf32> to vector<2x16xf32>
    %611 = arith.negf %610 : vector<2x16xf32>
    %612 = math.exp %611 : vector<2x16xf32>
    %cst_327 = arith.constant 1.000000e+00 : f32
    %613 = vector.broadcast %cst_327 : f32 to vector<2x16xf32>
    %614 = arith.addf %613, %612 : vector<2x16xf32>
    %615 = arith.divf %613, %614 : vector<2x16xf32>
    %616 = vector.extract_strided_slice %609 {offsets = [0, 16], sizes = [2, 16], strides = [1, 1]} : vector<2x64xf32> to vector<2x16xf32>
    %617 = arith.negf %616 : vector<2x16xf32>
    %618 = math.exp %617 : vector<2x16xf32>
    %cst_328 = arith.constant 1.000000e+00 : f32
    %619 = vector.broadcast %cst_328 : f32 to vector<2x16xf32>
    %620 = arith.addf %619, %618 : vector<2x16xf32>
    %621 = arith.divf %619, %620 : vector<2x16xf32>
    %622 = vector.extract_strided_slice %609 {offsets = [0, 32], sizes = [2, 16], strides = [1, 1]} : vector<2x64xf32> to vector<2x16xf32>
    %623 = math.tanh %622 : vector<2x16xf32>
    %624 = vector.extract_strided_slice %609 {offsets = [0, 48], sizes = [2, 16], strides = [1, 1]} : vector<2x64xf32> to vector<2x16xf32>
    %625 = arith.negf %624 : vector<2x16xf32>
    %626 = math.exp %625 : vector<2x16xf32>
    %cst_329 = arith.constant 1.000000e+00 : f32
    %627 = vector.broadcast %cst_329 : f32 to vector<2x16xf32>
    %628 = arith.addf %627, %626 : vector<2x16xf32>
    %629 = arith.divf %627, %628 : vector<2x16xf32>
    %c1_330 = arith.constant 1 : index
    %c0_331 = arith.constant 0 : index
    %c0_332 = arith.constant 0 : index
    %630 = vector.load %arg7[%c1_330, %c0_331, %c0_332] : memref<2x2x16xf32, #tpu.memory_space<vmem>>, vector<1x2x16xf32>
    %631 = vector.shape_cast %630 : vector<1x2x16xf32> to vector<2x16xf32>
    %632 = arith.mulf %621, %631 : vector<2x16xf32>
    %633 = arith.mulf %615, %623 : vector<2x16xf32>
    %634 = arith.addf %632, %633 : vector<2x16xf32>
    %635 = math.tanh %634 : vector<2x16xf32>
    %636 = arith.mulf %629, %635 : vector<2x16xf32>
    %c1_333 = arith.constant 1 : index
    %c0_334 = arith.constant 0 : index
    %c0_335 = arith.constant 0 : index
    %637 = vector.load %arg6[%c1_333, %c0_334, %c0_335] : memref<2x2x16xf32, #tpu.memory_space<vmem>>, vector<1x2x16xf32>
    %638 = vector.shape_cast %637 : vector<1x2x16xf32> to vector<2x16xf32>
    %639 = vector.shape_cast %636 : vector<2x16xf32> to vector<1x2x16xf32>
    tpu.vector_store %arg6[%c1_333, %c0_334, %c0_335], %639 {strides = array<i32>} : memref<2x2x16xf32, #tpu.memory_space<vmem>>, vector<1x2x16xf32>,
    %c1_336 = arith.constant 1 : index
    %c0_337 = arith.constant 0 : index
    %c0_338 = arith.constant 0 : index
    %640 = vector.load %arg7[%c1_336, %c0_337, %c0_338] : memref<2x2x16xf32, #tpu.memory_space<vmem>>, vector<1x2x16xf32>
    %641 = vector.shape_cast %640 : vector<1x2x16xf32> to vector<2x16xf32>
    %642 = vector.shape_cast %634 : vector<2x16xf32> to vector<1x2x16xf32>
    tpu.vector_store %arg7[%c1_336, %c0_337, %c0_338], %642 {strides = array<i32>} : memref<2x2x16xf32, #tpu.memory_space<vmem>>, vector<1x2x16xf32>,
    %643 = arith.truncf %636 : vector<2x16xf32> to vector<2x16xbf16>
    %c1_339 = arith.constant 1 : index
    %c0_340 = arith.constant 0 : index
    %c0_341 = arith.constant 0 : index
    %644 = vector.load %arg5[%c1_339, %c0_340, %c0_341] : memref<8x2x16xbf16, #tpu.memory_space<vmem>>, vector<1x2x16xbf16>
    %645 = vector.shape_cast %644 : vector<1x2x16xbf16> to vector<2x16xbf16>
    %646 = vector.shape_cast %643 : vector<2x16xbf16> to vector<1x2x16xbf16>
    tpu.vector_store %arg5[%c1_339, %c0_340, %c0_341], %646 {strides = array<i32>} : memref<8x2x16xbf16, #tpu.memory_space<vmem>>, vector<1x2x16xbf16>,
    %c7_342 = arith.constant 7 : index
    %c0_343 = arith.constant 0 : index
    %c0_344 = arith.constant 0 : index
    %647 = vector.load %arg1[%c7_342, %c0_343, %c0_344] : memref<8x2x64xf32, #tpu.memory_space<vmem>>, vector<1x2x64xf32>
    %648 = vector.shape_cast %647 : vector<1x2x64xf32> to vector<2x64xf32>
    %c0_345 = arith.constant 0 : index
    %c0_346 = arith.constant 0 : index
    %c0_347 = arith.constant 0 : index
    %649 = vector.load %arg6[%c0_345, %c0_346, %c0_347] : memref<2x2x16xf32, #tpu.memory_space<vmem>>, vector<1x2x16xf32>
    %650 = vector.shape_cast %649 : vector<1x2x16xf32> to vector<2x16xf32>
    %651 = arith.truncf %650 : vector<2x16xf32> to vector<2x16xbf16>
    %c0_348 = arith.constant 0 : index
    %c0_349 = arith.constant 0 : index
    %c0_350 = arith.constant 0 : index
    %652 = vector.load %arg3[%c0_348, %c0_349, %c0_350] : memref<2x16x64xbf16, #tpu.memory_space<vmem>>, vector<1x16x64xbf16>
    %653 = vector.shape_cast %652 : vector<1x16x64xbf16> to vector<16x64xbf16>
    %cst_351 = arith.constant dense<0.000000e+00> : vector<2x64xf32>
    %654 = tpu.matmul %651, %653, %cst_351 {dimension_numbers = #tpu.dot_dimension_numbers<[1], [0], [0], [1], [0, 0, 1, 1], [], []>} : vector<2x16xbf16>, vector<16x64xbf16>, vector<2x64xf32> -> vector<2x64xf32>
    %655 = arith.addf %648, %654 : vector<2x64xf32>
    %656 = vector.extract_strided_slice %655 {offsets = [0, 0], sizes = [2, 16], strides = [1, 1]} : vector<2x64xf32> to vector<2x16xf32>
    %657 = arith.negf %656 : vector<2x16xf32>
    %658 = math.exp %657 : vector<2x16xf32>
    %cst_352 = arith.constant 1.000000e+00 : f32
    %659 = vector.broadcast %cst_352 : f32 to vector<2x16xf32>
    %660 = arith.addf %659, %658 : vector<2x16xf32>
    %661 = arith.divf %659, %660 : vector<2x16xf32>
    %662 = vector.extract_strided_slice %655 {offsets = [0, 16], sizes = [2, 16], strides = [1, 1]} : vector<2x64xf32> to vector<2x16xf32>
    %663 = arith.negf %662 : vector<2x16xf32>
    %664 = math.exp %663 : vector<2x16xf32>
    %cst_353 = arith.constant 1.000000e+00 : f32
    %665 = vector.broadcast %cst_353 : f32 to vector<2x16xf32>
    %666 = arith.addf %665, %664 : vector<2x16xf32>
    %667 = arith.divf %665, %666 : vector<2x16xf32>
    %668 = vector.extract_strided_slice %655 {offsets = [0, 32], sizes = [2, 16], strides = [1, 1]} : vector<2x64xf32> to vector<2x16xf32>
    %669 = math.tanh %668 : vector<2x16xf32>
    %670 = vector.extract_strided_slice %655 {offsets = [0, 48], sizes = [2, 16], strides = [1, 1]} : vector<2x64xf32> to vector<2x16xf32>
    %671 = arith.negf %670 : vector<2x16xf32>
    %672 = math.exp %671 : vector<2x16xf32>
    %cst_354 = arith.constant 1.000000e+00 : f32
    %673 = vector.broadcast %cst_354 : f32 to vector<2x16xf32>
    %674 = arith.addf %673, %672 : vector<2x16xf32>
    %675 = arith.divf %673, %674 : vector<2x16xf32>
    %c0_355 = arith.constant 0 : index
    %c0_356 = arith.constant 0 : index
    %c0_357 = arith.constant 0 : index
    %676 = vector.load %arg7[%c0_355, %c0_356, %c0_357] : memref<2x2x16xf32, #tpu.memory_space<vmem>>, vector<1x2x16xf32>
    %677 = vector.shape_cast %676 : vector<1x2x16xf32> to vector<2x16xf32>
    %678 = arith.mulf %667, %677 : vector<2x16xf32>
    %679 = arith.mulf %661, %669 : vector<2x16xf32>
    %680 = arith.addf %678, %679 : vector<2x16xf32>
    %681 = math.tanh %680 : vector<2x16xf32>
    %682 = arith.mulf %675, %681 : vector<2x16xf32>
    %c0_358 = arith.constant 0 : index
    %c0_359 = arith.constant 0 : index
    %c0_360 = arith.constant 0 : index
    %683 = vector.load %arg6[%c0_358, %c0_359, %c0_360] : memref<2x2x16xf32, #tpu.memory_space<vmem>>, vector<1x2x16xf32>
    %684 = vector.shape_cast %683 : vector<1x2x16xf32> to vector<2x16xf32>
    %685 = vector.shape_cast %682 : vector<2x16xf32> to vector<1x2x16xf32>
    tpu.vector_store %arg6[%c0_358, %c0_359, %c0_360], %685 {strides = array<i32>} : memref<2x2x16xf32, #tpu.memory_space<vmem>>, vector<1x2x16xf32>,
    %c0_361 = arith.constant 0 : index
    %c0_362 = arith.constant 0 : index
    %c0_363 = arith.constant 0 : index
    %686 = vector.load %arg7[%c0_361, %c0_362, %c0_363] : memref<2x2x16xf32, #tpu.memory_space<vmem>>, vector<1x2x16xf32>
    %687 = vector.shape_cast %686 : vector<1x2x16xf32> to vector<2x16xf32>
    %688 = vector.shape_cast %680 : vector<2x16xf32> to vector<1x2x16xf32>
    tpu.vector_store %arg7[%c0_361, %c0_362, %c0_363], %688 {strides = array<i32>} : memref<2x2x16xf32, #tpu.memory_space<vmem>>, vector<1x2x16xf32>,
    %689 = arith.truncf %682 : vector<2x16xf32> to vector<2x16xbf16>
    %c7_364 = arith.constant 7 : index
    %c0_365 = arith.constant 0 : index
    %c0_366 = arith.constant 0 : index
    %690 = vector.load %arg4[%c7_364, %c0_365, %c0_366] : memref<8x2x16xbf16, #tpu.memory_space<vmem>>, vector<1x2x16xbf16>
    %691 = vector.shape_cast %690 : vector<1x2x16xbf16> to vector<2x16xbf16>
    %692 = vector.shape_cast %689 : vector<2x16xbf16> to vector<1x2x16xbf16>
    tpu.vector_store %arg4[%c7_364, %c0_365, %c0_366], %692 {strides = array<i32>} : memref<8x2x16xbf16, #tpu.memory_space<vmem>>, vector<1x2x16xbf16>,
    %c0_367 = arith.constant 0 : index
    %c0_368 = arith.constant 0 : index
    %c0_369 = arith.constant 0 : index
    %693 = vector.load %arg2[%c0_367, %c0_368, %c0_369] : memref<8x2x64xf32, #tpu.memory_space<vmem>>, vector<1x2x64xf32>
    %694 = vector.shape_cast %693 : vector<1x2x64xf32> to vector<2x64xf32>
    %c1_370 = arith.constant 1 : index
    %c0_371 = arith.constant 0 : index
    %c0_372 = arith.constant 0 : index
    %695 = vector.load %arg6[%c1_370, %c0_371, %c0_372] : memref<2x2x16xf32, #tpu.memory_space<vmem>>, vector<1x2x16xf32>
    %696 = vector.shape_cast %695 : vector<1x2x16xf32> to vector<2x16xf32>
    %697 = arith.truncf %696 : vector<2x16xf32> to vector<2x16xbf16>
    %c1_373 = arith.constant 1 : index
    %c0_374 = arith.constant 0 : index
    %c0_375 = arith.constant 0 : index
    %698 = vector.load %arg3[%c1_373, %c0_374, %c0_375] : memref<2x16x64xbf16, #tpu.memory_space<vmem>>, vector<1x16x64xbf16>
    %699 = vector.shape_cast %698 : vector<1x16x64xbf16> to vector<16x64xbf16>
    %cst_376 = arith.constant dense<0.000000e+00> : vector<2x64xf32>
    %700 = tpu.matmul %697, %699, %cst_376 {dimension_numbers = #tpu.dot_dimension_numbers<[1], [0], [0], [1], [0, 0, 1, 1], [], []>} : vector<2x16xbf16>, vector<16x64xbf16>, vector<2x64xf32> -> vector<2x64xf32>
    %701 = arith.addf %694, %700 : vector<2x64xf32>
    %702 = vector.extract_strided_slice %701 {offsets = [0, 0], sizes = [2, 16], strides = [1, 1]} : vector<2x64xf32> to vector<2x16xf32>
    %703 = arith.negf %702 : vector<2x16xf32>
    %704 = math.exp %703 : vector<2x16xf32>
    %cst_377 = arith.constant 1.000000e+00 : f32
    %705 = vector.broadcast %cst_377 : f32 to vector<2x16xf32>
    %706 = arith.addf %705, %704 : vector<2x16xf32>
    %707 = arith.divf %705, %706 : vector<2x16xf32>
    %708 = vector.extract_strided_slice %701 {offsets = [0, 16], sizes = [2, 16], strides = [1, 1]} : vector<2x64xf32> to vector<2x16xf32>
    %709 = arith.negf %708 : vector<2x16xf32>
    %710 = math.exp %709 : vector<2x16xf32>
    %cst_378 = arith.constant 1.000000e+00 : f32
    %711 = vector.broadcast %cst_378 : f32 to vector<2x16xf32>
    %712 = arith.addf %711, %710 : vector<2x16xf32>
    %713 = arith.divf %711, %712 : vector<2x16xf32>
    %714 = vector.extract_strided_slice %701 {offsets = [0, 32], sizes = [2, 16], strides = [1, 1]} : vector<2x64xf32> to vector<2x16xf32>
    %715 = math.tanh %714 : vector<2x16xf32>
    %716 = vector.extract_strided_slice %701 {offsets = [0, 48], sizes = [2, 16], strides = [1, 1]} : vector<2x64xf32> to vector<2x16xf32>
    %717 = arith.negf %716 : vector<2x16xf32>
    %718 = math.exp %717 : vector<2x16xf32>
    %cst_379 = arith.constant 1.000000e+00 : f32
    %719 = vector.broadcast %cst_379 : f32 to vector<2x16xf32>
    %720 = arith.addf %719, %718 : vector<2x16xf32>
    %721 = arith.divf %719, %720 : vector<2x16xf32>
    %c1_380 = arith.constant 1 : index
    %c0_381 = arith.constant 0 : index
    %c0_382 = arith.constant 0 : index
    %722 = vector.load %arg7[%c1_380, %c0_381, %c0_382] : memref<2x2x16xf32, #tpu.memory_space<vmem>>, vector<1x2x16xf32>
    %723 = vector.shape_cast %722 : vector<1x2x16xf32> to vector<2x16xf32>
    %724 = arith.mulf %713, %723 : vector<2x16xf32>
    %725 = arith.mulf %707, %715 : vector<2x16xf32>
    %726 = arith.addf %724, %725 : vector<2x16xf32>
    %727 = math.tanh %726 : vector<2x16xf32>
    %728 = arith.mulf %721, %727 : vector<2x16xf32>
    %c1_383 = arith.constant 1 : index
    %c0_384 = arith.constant 0 : index
    %c0_385 = arith.constant 0 : index
    %729 = vector.load %arg6[%c1_383, %c0_384, %c0_385] : memref<2x2x16xf32, #tpu.memory_space<vmem>>, vector<1x2x16xf32>
    %730 = vector.shape_cast %729 : vector<1x2x16xf32> to vector<2x16xf32>
    %731 = vector.shape_cast %728 : vector<2x16xf32> to vector<1x2x16xf32>
    tpu.vector_store %arg6[%c1_383, %c0_384, %c0_385], %731 {strides = array<i32>} : memref<2x2x16xf32, #tpu.memory_space<vmem>>, vector<1x2x16xf32>,
    %c1_386 = arith.constant 1 : index
    %c0_387 = arith.constant 0 : index
    %c0_388 = arith.constant 0 : index
    %732 = vector.load %arg7[%c1_386, %c0_387, %c0_388] : memref<2x2x16xf32, #tpu.memory_space<vmem>>, vector<1x2x16xf32>
    %733 = vector.shape_cast %732 : vector<1x2x16xf32> to vector<2x16xf32>
    %734 = vector.shape_cast %726 : vector<2x16xf32> to vector<1x2x16xf32>
    tpu.vector_store %arg7[%c1_386, %c0_387, %c0_388], %734 {strides = array<i32>} : memref<2x2x16xf32, #tpu.memory_space<vmem>>, vector<1x2x16xf32>,
    %735 = arith.truncf %728 : vector<2x16xf32> to vector<2x16xbf16>
    %c0_389 = arith.constant 0 : index
    %c0_390 = arith.constant 0 : index
    %c0_391 = arith.constant 0 : index
    %736 = vector.load %arg5[%c0_389, %c0_390, %c0_391] : memref<8x2x16xbf16, #tpu.memory_space<vmem>>, vector<1x2x16xbf16>
    %737 = vector.shape_cast %736 : vector<1x2x16xbf16> to vector<2x16xbf16>
    %738 = vector.shape_cast %735 : vector<2x16xbf16> to vector<1x2x16xbf16>
    tpu.vector_store %arg5[%c0_389, %c0_390, %c0_391], %738 {strides = array<i32>} : memref<8x2x16xbf16, #tpu.memory_space<vmem>>, vector<1x2x16xbf16>,
    return
  }
  func.func @transform_0(%arg0: i32) -> (i32, i32, i32) {
    %c0_i32 = arith.constant 0 : i32
    %c0_i32_0 = arith.constant 0 : i32
    %c0_i32_1 = arith.constant 0 : i32
    return %arg0, %c0_i32, %c0_i32_0 : i32, i32, i32
  }
  func.func @transform_1(%arg0: i32) -> (i32, i32, i32) {
    %c0_i32 = arith.constant 0 : i32
    %0 = arith.subi %c0_i32, %arg0 : i32
    %c0_i32_0 = arith.constant 0 : i32
    %c0_i32_1 = arith.constant 0 : i32
    %c0_i32_2 = arith.constant 0 : i32
    return %0, %c0_i32_0, %c0_i32_1 : i32, i32, i32
  }
  func.func @transform_2(%arg0: i32) -> (i32, i32, i32) {
    %c0_i32 = arith.constant 0 : i32
    %c0_i32_0 = arith.constant 0 : i32
    %c0_i32_1 = arith.constant 0 : i32
    %c0_i32_2 = arith.constant 0 : i32
    return %c0_i32, %c0_i32_0, %c0_i32_1 : i32, i32, i32
  }
  func.func @transform_3(%arg0: i32) -> (i32, i32, i32) {
    %c0_i32 = arith.constant 0 : i32
    %c0_i32_0 = arith.constant 0 : i32
    %c0_i32_1 = arith.constant 0 : i32
    return %arg0, %c0_i32, %c0_i32_0 : i32, i32, i32
  }
  func.func @transform_4(%arg0: i32) -> (i32, i32, i32) {
    %c0_i32 = arith.constant 0 : i32
    %0 = arith.subi %c0_i32, %arg0 : i32
    %c0_i32_0 = arith.constant 0 : i32
    %c0_i32_1 = arith.constant 0 : i32
    %c0_i32_2 = arith.constant 0 : i32
    return %0, %c0_i32_0, %c0_i32_1 : i32, i32, i32
  }
}

module attributes {stable_mosaic.version = 11 : i64} {
  func.func @_mm_kernel(%arg0: i32, %arg1: i32, %arg2: memref<6x32xbf16, #tpu.memory_space<vmem>>, %arg3: memref<32x19xbf16, #tpu.memory_space<vmem>>, %arg4: memref<1x19xf32, #tpu.memory_space<vmem>>, %arg5: memref<6x19xbf16, #tpu.memory_space<vmem>>, %arg6: memref<6x19xf32, #tpu.memory_space<vmem>>) attributes {dimension_semantics = [#tpu.dimension_semantics<parallel>, #tpu.dimension_semantics<arbitrary>], iteration_bounds = array<i64: 1, 1>, scalar_prefetch = 0 : i64, scratch_operands = 1 : i64, tpu.core_type = #tpu.core_type<tc>, window_params = [{transform_indices = @transform_0, window_bounds = array<i64: 6, 32>}, {transform_indices = @transform_1, window_bounds = array<i64: 32, 19>}, {pipeline_mode = #tpu.pipeline_mode<synchronous>, transform_indices = @transform_2, window_bounds = array<i64: 1, 19>}, {transform_indices = @transform_3, window_bounds = array<i64: 6, 19>}]} {
    %c0_i32 = arith.constant 0 : i32
    %0 = arith.cmpi eq, %arg1, %c0_i32 : i32
    %1 = arith.extui %0 : i1 to i32
    %c0_i32_0 = arith.constant 0 : i32
    %2 = arith.cmpi ne, %1, %c0_i32_0 : i32
    scf.if %2 {
      %cst_10 = arith.constant 0.000000e+00 : f32
      %12 = vector.broadcast %cst_10 : f32 to vector<6x19xf32>
      %c0_11 = arith.constant 0 : index
      %c0_12 = arith.constant 0 : index
      %13 = vector.load %arg6[%c0_11, %c0_12] : memref<6x19xf32, #tpu.memory_space<vmem>>, vector<6x19xf32>
      tpu.vector_store %arg6[%c0_11, %c0_12], %12 {strides = array<i32>} : memref<6x19xf32, #tpu.memory_space<vmem>>, vector<6x19xf32>,
    } else {
    }
    %c0 = arith.constant 0 : index
    %c0_1 = arith.constant 0 : index
    %3 = vector.load %arg6[%c0, %c0_1] : memref<6x19xf32, #tpu.memory_space<vmem>>, vector<6x19xf32>
    %c0_2 = arith.constant 0 : index
    %c0_3 = arith.constant 0 : index
    %4 = vector.load %arg2[%c0_2, %c0_3] : memref<6x32xbf16, #tpu.memory_space<vmem>>, vector<6x32xbf16>
    %c0_4 = arith.constant 0 : index
    %c0_5 = arith.constant 0 : index
    %5 = vector.load %arg3[%c0_4, %c0_5] : memref<32x19xbf16, #tpu.memory_space<vmem>>, vector<32x19xbf16>
    %cst = arith.constant dense<0.000000e+00> : vector<6x19xf32>
    %6 = tpu.matmul %4, %5, %cst {dimension_numbers = #tpu.dot_dimension_numbers<[1], [0], [0], [1], [0, 0, 1, 1], [], []>} : vector<6x32xbf16>, vector<32x19xbf16>, vector<6x19xf32> -> vector<6x19xf32>
    %7 = arith.addf %3, %6 : vector<6x19xf32>
    %c0_6 = arith.constant 0 : index
    %c0_7 = arith.constant 0 : index
    %8 = vector.load %arg6[%c0_6, %c0_7] : memref<6x19xf32, #tpu.memory_space<vmem>>, vector<6x19xf32>
    tpu.vector_store %arg6[%c0_6, %c0_7], %7 {strides = array<i32>} : memref<6x19xf32, #tpu.memory_space<vmem>>, vector<6x19xf32>,
    %c0_i32_8 = arith.constant 0 : i32
    %9 = arith.cmpi eq, %arg1, %c0_i32_8 : i32
    %10 = arith.extui %9 : i1 to i32
    %c0_i32_9 = arith.constant 0 : i32
    %11 = arith.cmpi ne, %10, %c0_i32_9 : i32
    scf.if %11 {
      %c0_10 = arith.constant 0 : index
      %c0_11 = arith.constant 0 : index
      %12 = vector.load %arg6[%c0_10, %c0_11] : memref<6x19xf32, #tpu.memory_space<vmem>>, vector<6x19xf32>
      %c0_12 = arith.constant 0 : index
      %c0_13 = arith.constant 0 : index
      %13 = vector.load %arg4[%c0_12, %c0_13] : memref<1x19xf32, #tpu.memory_space<vmem>>, vector<1x19xf32>
      %14 = vector.broadcast %13 : vector<1x19xf32> to vector<6x19xf32>
      %15 = arith.addf %12, %14 : vector<6x19xf32>
      %16 = arith.truncf %15 : vector<6x19xf32> to vector<6x19xbf16>
      %c0_14 = arith.constant 0 : index
      %c0_15 = arith.constant 0 : index
      %17 = vector.load %arg5[%c0_14, %c0_15] : memref<6x19xbf16, #tpu.memory_space<vmem>>, vector<6x19xbf16>
      tpu.vector_store %arg5[%c0_14, %c0_15], %16 {strides = array<i32>} : memref<6x19xbf16, #tpu.memory_space<vmem>>, vector<6x19xbf16>,
    } else {
    }
    return
  }
  func.func @transform_0(%arg0: i32, %arg1: i32) -> (i32, i32) {
    %c0_i32 = arith.constant 0 : i32
    return %arg0, %arg1 : i32, i32
  }
  func.func @transform_1(%arg0: i32, %arg1: i32) -> (i32, i32) {
    %c0_i32 = arith.constant 0 : i32
    %c0_i32_0 = arith.constant 0 : i32
    return %arg1, %c0_i32 : i32, i32
  }
  func.func @transform_2(%arg0: i32, %arg1: i32) -> (i32, i32) {
    %c0_i32 = arith.constant 0 : i32
    %c0_i32_0 = arith.constant 0 : i32
    %c0_i32_1 = arith.constant 0 : i32
    return %c0_i32, %c0_i32_0 : i32, i32
  }
  func.func @transform_3(%arg0: i32, %arg1: i32) -> (i32, i32) {
    %c0_i32 = arith.constant 0 : i32
    %c0_i32_0 = arith.constant 0 : i32
    return %arg0, %c0_i32 : i32, i32
  }
}

module attributes {stable_mosaic.version = 11 : i64} {
  func.func @_mm_kernel(%arg0: i32, %arg1: i32, %arg2: memref<2x16xbf16, #tpu.memory_space<vmem>>, %arg3: memref<16x64xbf16, #tpu.memory_space<vmem>>, %arg4: memref<2x64xbf16, #tpu.memory_space<vmem>>, %arg5: memref<2x64xf32, #tpu.memory_space<vmem>>) attributes {dimension_semantics = [#tpu.dimension_semantics<parallel>, #tpu.dimension_semantics<arbitrary>], iteration_bounds = array<i64: 1, 1>, scalar_prefetch = 0 : i64, scratch_operands = 1 : i64, tpu.core_type = #tpu.core_type<tc>, window_params = [{transform_indices = @transform_0, window_bounds = array<i64: 2, 16>}, {transform_indices = @transform_1, window_bounds = array<i64: 16, 64>}, {transform_indices = @transform_2, window_bounds = array<i64: 2, 64>}]} {
    %c0_i32 = arith.constant 0 : i32
    %0 = arith.cmpi eq, %arg1, %c0_i32 : i32
    %1 = arith.extui %0 : i1 to i32
    %c0_i32_0 = arith.constant 0 : i32
    %2 = arith.cmpi ne, %1, %c0_i32_0 : i32
    scf.if %2 {
      %cst_10 = arith.constant 0.000000e+00 : f32
      %12 = vector.broadcast %cst_10 : f32 to vector<2x64xf32>
      %c0_11 = arith.constant 0 : index
      %c0_12 = arith.constant 0 : index
      %13 = vector.load %arg5[%c0_11, %c0_12] : memref<2x64xf32, #tpu.memory_space<vmem>>, vector<2x64xf32>
      tpu.vector_store %arg5[%c0_11, %c0_12], %12 {strides = array<i32>} : memref<2x64xf32, #tpu.memory_space<vmem>>, vector<2x64xf32>,
    } else {
    }
    %c0 = arith.constant 0 : index
    %c0_1 = arith.constant 0 : index
    %3 = vector.load %arg5[%c0, %c0_1] : memref<2x64xf32, #tpu.memory_space<vmem>>, vector<2x64xf32>
    %c0_2 = arith.constant 0 : index
    %c0_3 = arith.constant 0 : index
    %4 = vector.load %arg2[%c0_2, %c0_3] : memref<2x16xbf16, #tpu.memory_space<vmem>>, vector<2x16xbf16>
    %c0_4 = arith.constant 0 : index
    %c0_5 = arith.constant 0 : index
    %5 = vector.load %arg3[%c0_4, %c0_5] : memref<16x64xbf16, #tpu.memory_space<vmem>>, vector<16x64xbf16>
    %cst = arith.constant dense<0.000000e+00> : vector<2x64xf32>
    %6 = tpu.matmul %4, %5, %cst {dimension_numbers = #tpu.dot_dimension_numbers<[1], [0], [0], [1], [0, 0, 1, 1], [], []>} : vector<2x16xbf16>, vector<16x64xbf16>, vector<2x64xf32> -> vector<2x64xf32>
    %7 = arith.addf %3, %6 : vector<2x64xf32>
    %c0_6 = arith.constant 0 : index
    %c0_7 = arith.constant 0 : index
    %8 = vector.load %arg5[%c0_6, %c0_7] : memref<2x64xf32, #tpu.memory_space<vmem>>, vector<2x64xf32>
    tpu.vector_store %arg5[%c0_6, %c0_7], %7 {strides = array<i32>} : memref<2x64xf32, #tpu.memory_space<vmem>>, vector<2x64xf32>,
    %c0_i32_8 = arith.constant 0 : i32
    %9 = arith.cmpi eq, %arg1, %c0_i32_8 : i32
    %10 = arith.extui %9 : i1 to i32
    %c0_i32_9 = arith.constant 0 : i32
    %11 = arith.cmpi ne, %10, %c0_i32_9 : i32
    scf.if %11 {
      %c0_10 = arith.constant 0 : index
      %c0_11 = arith.constant 0 : index
      %12 = vector.load %arg5[%c0_10, %c0_11] : memref<2x64xf32, #tpu.memory_space<vmem>>, vector<2x64xf32>
      %13 = arith.truncf %12 : vector<2x64xf32> to vector<2x64xbf16>
      %c0_12 = arith.constant 0 : index
      %c0_13 = arith.constant 0 : index
      %14 = vector.load %arg4[%c0_12, %c0_13] : memref<2x64xbf16, #tpu.memory_space<vmem>>, vector<2x64xbf16>
      tpu.vector_store %arg4[%c0_12, %c0_13], %13 {strides = array<i32>} : memref<2x64xbf16, #tpu.memory_space<vmem>>, vector<2x64xbf16>,
    } else {
    }
    return
  }
  func.func @transform_0(%arg0: i32, %arg1: i32) -> (i32, i32) {
    %c0_i32 = arith.constant 0 : i32
    return %arg0, %arg1 : i32, i32
  }
  func.func @transform_1(%arg0: i32, %arg1: i32) -> (i32, i32) {
    %c0_i32 = arith.constant 0 : i32
    %c0_i32_0 = arith.constant 0 : i32
    return %arg1, %c0_i32 : i32, i32
  }
  func.func @transform_2(%arg0: i32, %arg1: i32) -> (i32, i32) {
    %c0_i32 = arith.constant 0 : i32
    %c0_i32_0 = arith.constant 0 : i32
    return %arg0, %c0_i32 : i32, i32
  }
}

module attributes {stable_mosaic.version = 11 : i64} {
  func.func @_mm_kernel(%arg0: i32, %arg1: i32, %arg2: memref<2x48xbf16, #tpu.memory_space<vmem>>, %arg3: memref<48x32xbf16, #tpu.memory_space<vmem>>, %arg4: memref<1x32xf32, #tpu.memory_space<vmem>>, %arg5: memref<2x16xbf16, #tpu.memory_space<vmem>>, %arg6: memref<2x32xf32, #tpu.memory_space<vmem>>) attributes {dimension_semantics = [#tpu.dimension_semantics<parallel>, #tpu.dimension_semantics<arbitrary>], iteration_bounds = array<i64: 1, 1>, scalar_prefetch = 0 : i64, scratch_operands = 1 : i64, tpu.core_type = #tpu.core_type<tc>, window_params = [{transform_indices = @transform_0, window_bounds = array<i64: 2, 48>}, {transform_indices = @transform_1, window_bounds = array<i64: 48, 32>}, {pipeline_mode = #tpu.pipeline_mode<synchronous>, transform_indices = @transform_2, window_bounds = array<i64: 1, 32>}, {transform_indices = @transform_3, window_bounds = array<i64: 2, 16>}]} {
    %c0_i32 = arith.constant 0 : i32
    %0 = arith.cmpi eq, %arg1, %c0_i32 : i32
    %1 = arith.extui %0 : i1 to i32
    %c0_i32_0 = arith.constant 0 : i32
    %2 = arith.cmpi ne, %1, %c0_i32_0 : i32
    scf.if %2 {
      %cst_10 = arith.constant 0.000000e+00 : f32
      %12 = vector.broadcast %cst_10 : f32 to vector<2x32xf32>
      %c0_11 = arith.constant 0 : index
      %c0_12 = arith.constant 0 : index
      %13 = vector.load %arg6[%c0_11, %c0_12] : memref<2x32xf32, #tpu.memory_space<vmem>>, vector<2x32xf32>
      tpu.vector_store %arg6[%c0_11, %c0_12], %12 {strides = array<i32>} : memref<2x32xf32, #tpu.memory_space<vmem>>, vector<2x32xf32>,
    } else {
    }
    %c0 = arith.constant 0 : index
    %c0_1 = arith.constant 0 : index
    %3 = vector.load %arg6[%c0, %c0_1] : memref<2x32xf32, #tpu.memory_space<vmem>>, vector<2x32xf32>
    %c0_2 = arith.constant 0 : index
    %c0_3 = arith.constant 0 : index
    %4 = vector.load %arg2[%c0_2, %c0_3] : memref<2x48xbf16, #tpu.memory_space<vmem>>, vector<2x48xbf16>
    %c0_4 = arith.constant 0 : index
    %c0_5 = arith.constant 0 : index
    %5 = vector.load %arg3[%c0_4, %c0_5] : memref<48x32xbf16, #tpu.memory_space<vmem>>, vector<48x32xbf16>
    %cst = arith.constant dense<0.000000e+00> : vector<2x32xf32>
    %6 = tpu.matmul %4, %5, %cst {dimension_numbers = #tpu.dot_dimension_numbers<[1], [0], [0], [1], [0, 0, 1, 1], [], []>} : vector<2x48xbf16>, vector<48x32xbf16>, vector<2x32xf32> -> vector<2x32xf32>
    %7 = arith.addf %3, %6 : vector<2x32xf32>
    %c0_6 = arith.constant 0 : index
    %c0_7 = arith.constant 0 : index
    %8 = vector.load %arg6[%c0_6, %c0_7] : memref<2x32xf32, #tpu.memory_space<vmem>>, vector<2x32xf32>
    tpu.vector_store %arg6[%c0_6, %c0_7], %7 {strides = array<i32>} : memref<2x32xf32, #tpu.memory_space<vmem>>, vector<2x32xf32>,
    %c0_i32_8 = arith.constant 0 : i32
    %9 = arith.cmpi eq, %arg1, %c0_i32_8 : i32
    %10 = arith.extui %9 : i1 to i32
    %c0_i32_9 = arith.constant 0 : i32
    %11 = arith.cmpi ne, %10, %c0_i32_9 : i32
    scf.if %11 {
      %c0_10 = arith.constant 0 : index
      %c0_11 = arith.constant 0 : index
      %12 = vector.load %arg6[%c0_10, %c0_11] : memref<2x32xf32, #tpu.memory_space<vmem>>, vector<2x32xf32>
      %c0_12 = arith.constant 0 : index
      %c0_13 = arith.constant 0 : index
      %13 = vector.load %arg4[%c0_12, %c0_13] : memref<1x32xf32, #tpu.memory_space<vmem>>, vector<1x32xf32>
      %14 = vector.broadcast %13 : vector<1x32xf32> to vector<2x32xf32>
      %15 = arith.addf %12, %14 : vector<2x32xf32>
      %16 = vector.extract_strided_slice %15 {offsets = [0, 0], sizes = [2, 16], strides = [1, 1]} : vector<2x32xf32> to vector<2x16xf32>
      %17 = vector.extract_strided_slice %15 {offsets = [0, 16], sizes = [2, 16], strides = [1, 1]} : vector<2x32xf32> to vector<2x16xf32>
      %18 = arith.negf %17 : vector<2x16xf32>
      %19 = math.exp %18 : vector<2x16xf32>
      %cst_14 = arith.constant 1.000000e+00 : f32
      %20 = vector.broadcast %cst_14 : f32 to vector<2x16xf32>
      %21 = arith.addf %20, %19 : vector<2x16xf32>
      %22 = arith.divf %20, %21 : vector<2x16xf32>
      %23 = arith.mulf %16, %22 : vector<2x16xf32>
      %24 = arith.truncf %23 : vector<2x16xf32> to vector<2x16xbf16>
      %c0_15 = arith.constant 0 : index
      %c0_16 = arith.constant 0 : index
      %25 = vector.load %arg5[%c0_15, %c0_16] : memref<2x16xbf16, #tpu.memory_space<vmem>>, vector<2x16xbf16>
      tpu.vector_store %arg5[%c0_15, %c0_16], %24 {strides = array<i32>} : memref<2x16xbf16, #tpu.memory_space<vmem>>, vector<2x16xbf16>,
    } else {
    }
    return
  }
  func.func @transform_0(%arg0: i32, %arg1: i32) -> (i32, i32) {
    %c0_i32 = arith.constant 0 : i32
    return %arg0, %arg1 : i32, i32
  }
  func.func @transform_1(%arg0: i32, %arg1: i32) -> (i32, i32) {
    %c0_i32 = arith.constant 0 : i32
    %c0_i32_0 = arith.constant 0 : i32
    return %arg1, %c0_i32 : i32, i32
  }
  func.func @transform_2(%arg0: i32, %arg1: i32) -> (i32, i32) {
    %c0_i32 = arith.constant 0 : i32
    %c0_i32_0 = arith.constant 0 : i32
    %c0_i32_1 = arith.constant 0 : i32
    return %c0_i32, %c0_i32_0 : i32, i32
  }
  func.func @transform_3(%arg0: i32, %arg1: i32) -> (i32, i32) {
    %c0_i32 = arith.constant 0 : i32
    %c0_i32_0 = arith.constant 0 : i32
    return %arg0, %c0_i32 : i32, i32
  }
}

module attributes {stable_mosaic.version = 11 : i64} {
  func.func @_bias_act_kernel(%arg0: i32, %arg1: memref<16x8xbf16, #tpu.memory_space<vmem>>, %arg2: memref<1x8xf32, #tpu.memory_space<vmem>>, %arg3: memref<16x8xbf16, #tpu.memory_space<vmem>>) attributes {dimension_semantics = [#tpu.dimension_semantics<parallel>], iteration_bounds = array<i64: 1>, scalar_prefetch = 0 : i64, scratch_operands = 0 : i64, tpu.core_type = #tpu.core_type<tc>, window_params = [{transform_indices = @transform_0, window_bounds = array<i64: 16, 8>}, {pipeline_mode = #tpu.pipeline_mode<synchronous>, transform_indices = @transform_1, window_bounds = array<i64: 1, 8>}, {transform_indices = @transform_2, window_bounds = array<i64: 16, 8>}]} {
    %c0 = arith.constant 0 : index
    %c0_0 = arith.constant 0 : index
    %0 = vector.load %arg1[%c0, %c0_0] : memref<16x8xbf16, #tpu.memory_space<vmem>>, vector<16x8xbf16>
    %1 = arith.extf %0 : vector<16x8xbf16> to vector<16x8xf32>
    %c0_1 = arith.constant 0 : index
    %c0_2 = arith.constant 0 : index
    %2 = vector.load %arg2[%c0_1, %c0_2] : memref<1x8xf32, #tpu.memory_space<vmem>>, vector<1x8xf32>
    %3 = vector.broadcast %2 : vector<1x8xf32> to vector<16x8xf32>
    %4 = arith.addf %1, %3 : vector<16x8xf32>
    %cst = arith.constant 0.000000e+00 : f32
    %5 = vector.broadcast %cst : f32 to vector<16x8xf32>
    %6 = arith.maximumf %4, %5 : vector<16x8xf32>
    %7 = arith.truncf %6 : vector<16x8xf32> to vector<16x8xbf16>
    %c0_3 = arith.constant 0 : index
    %c0_4 = arith.constant 0 : index
    %8 = vector.load %arg3[%c0_3, %c0_4] : memref<16x8xbf16, #tpu.memory_space<vmem>>, vector<16x8xbf16>
    tpu.vector_store %arg3[%c0_3, %c0_4], %7 {strides = array<i32>} : memref<16x8xbf16, #tpu.memory_space<vmem>>, vector<16x8xbf16>,
    return
  }
  func.func @transform_0(%arg0: i32) -> (i32, i32) {
    %c0_i32 = arith.constant 0 : i32
    %c0_i32_0 = arith.constant 0 : i32
    return %arg0, %c0_i32 : i32, i32
  }
  func.func @transform_1(%arg0: i32) -> (i32, i32) {
    %c0_i32 = arith.constant 0 : i32
    %c0_i32_0 = arith.constant 0 : i32
    %c0_i32_1 = arith.constant 0 : i32
    return %c0_i32, %c0_i32_0 : i32, i32
  }
  func.func @transform_2(%arg0: i32) -> (i32, i32) {
    %c0_i32 = arith.constant 0 : i32
    %c0_i32_0 = arith.constant 0 : i32
    return %arg0, %c0_i32 : i32, i32
  }
}

module attributes {stable_mosaic.version = 11 : i64} {
  func.func @_mm_kernel(%arg0: i32, %arg1: i32, %arg2: memref<12x24xbf16, #tpu.memory_space<vmem>>, %arg3: memref<24x16xbf16, #tpu.memory_space<vmem>>, %arg4: memref<1x16xf32, #tpu.memory_space<vmem>>, %arg5: memref<12x8xbf16, #tpu.memory_space<vmem>>, %arg6: memref<12x16xf32, #tpu.memory_space<vmem>>) attributes {dimension_semantics = [#tpu.dimension_semantics<parallel>, #tpu.dimension_semantics<arbitrary>], iteration_bounds = array<i64: 1, 1>, scalar_prefetch = 0 : i64, scratch_operands = 1 : i64, tpu.core_type = #tpu.core_type<tc>, window_params = [{transform_indices = @transform_0, window_bounds = array<i64: 12, 24>}, {transform_indices = @transform_1, window_bounds = array<i64: 24, 16>}, {pipeline_mode = #tpu.pipeline_mode<synchronous>, transform_indices = @transform_2, window_bounds = array<i64: 1, 16>}, {transform_indices = @transform_3, window_bounds = array<i64: 12, 8>}]} {
    %c0_i32 = arith.constant 0 : i32
    %0 = arith.cmpi eq, %arg1, %c0_i32 : i32
    %1 = arith.extui %0 : i1 to i32
    %c0_i32_0 = arith.constant 0 : i32
    %2 = arith.cmpi ne, %1, %c0_i32_0 : i32
    scf.if %2 {
      %cst_10 = arith.constant 0.000000e+00 : f32
      %12 = vector.broadcast %cst_10 : f32 to vector<12x16xf32>
      %c0_11 = arith.constant 0 : index
      %c0_12 = arith.constant 0 : index
      %13 = vector.load %arg6[%c0_11, %c0_12] : memref<12x16xf32, #tpu.memory_space<vmem>>, vector<12x16xf32>
      tpu.vector_store %arg6[%c0_11, %c0_12], %12 {strides = array<i32>} : memref<12x16xf32, #tpu.memory_space<vmem>>, vector<12x16xf32>,
    } else {
    }
    %c0 = arith.constant 0 : index
    %c0_1 = arith.constant 0 : index
    %3 = vector.load %arg6[%c0, %c0_1] : memref<12x16xf32, #tpu.memory_space<vmem>>, vector<12x16xf32>
    %c0_2 = arith.constant 0 : index
    %c0_3 = arith.constant 0 : index
    %4 = vector.load %arg2[%c0_2, %c0_3] : memref<12x24xbf16, #tpu.memory_space<vmem>>, vector<12x24xbf16>
    %c0_4 = arith.constant 0 : index
    %c0_5 = arith.constant 0 : index
    %5 = vector.load %arg3[%c0_4, %c0_5] : memref<24x16xbf16, #tpu.memory_space<vmem>>, vector<24x16xbf16>
    %cst = arith.constant dense<0.000000e+00> : vector<12x16xf32>
    %6 = tpu.matmul %4, %5, %cst {dimension_numbers = #tpu.dot_dimension_numbers<[1], [0], [0], [1], [0, 0, 1, 1], [], []>} : vector<12x24xbf16>, vector<24x16xbf16>, vector<12x16xf32> -> vector<12x16xf32>
    %7 = arith.addf %3, %6 : vector<12x16xf32>
    %c0_6 = arith.constant 0 : index
    %c0_7 = arith.constant 0 : index
    %8 = vector.load %arg6[%c0_6, %c0_7] : memref<12x16xf32, #tpu.memory_space<vmem>>, vector<12x16xf32>
    tpu.vector_store %arg6[%c0_6, %c0_7], %7 {strides = array<i32>} : memref<12x16xf32, #tpu.memory_space<vmem>>, vector<12x16xf32>,
    %c0_i32_8 = arith.constant 0 : i32
    %9 = arith.cmpi eq, %arg1, %c0_i32_8 : i32
    %10 = arith.extui %9 : i1 to i32
    %c0_i32_9 = arith.constant 0 : i32
    %11 = arith.cmpi ne, %10, %c0_i32_9 : i32
    scf.if %11 {
      %c0_10 = arith.constant 0 : index
      %c0_11 = arith.constant 0 : index
      %12 = vector.load %arg6[%c0_10, %c0_11] : memref<12x16xf32, #tpu.memory_space<vmem>>, vector<12x16xf32>
      %c0_12 = arith.constant 0 : index
      %c0_13 = arith.constant 0 : index
      %13 = vector.load %arg4[%c0_12, %c0_13] : memref<1x16xf32, #tpu.memory_space<vmem>>, vector<1x16xf32>
      %14 = vector.broadcast %13 : vector<1x16xf32> to vector<12x16xf32>
      %15 = arith.addf %12, %14 : vector<12x16xf32>
      %16 = vector.extract_strided_slice %15 {offsets = [0, 0], sizes = [12, 8], strides = [1, 1]} : vector<12x16xf32> to vector<12x8xf32>
      %17 = vector.extract_strided_slice %15 {offsets = [0, 8], sizes = [12, 8], strides = [1, 1]} : vector<12x16xf32> to vector<12x8xf32>
      %18 = arith.negf %17 : vector<12x8xf32>
      %19 = math.exp %18 : vector<12x8xf32>
      %cst_14 = arith.constant 1.000000e+00 : f32
      %20 = vector.broadcast %cst_14 : f32 to vector<12x8xf32>
      %21 = arith.addf %20, %19 : vector<12x8xf32>
      %22 = arith.divf %20, %21 : vector<12x8xf32>
      %23 = arith.mulf %16, %22 : vector<12x8xf32>
      %24 = arith.truncf %23 : vector<12x8xf32> to vector<12x8xbf16>
      %c0_15 = arith.constant 0 : index
      %c0_16 = arith.constant 0 : index
      %25 = vector.load %arg5[%c0_15, %c0_16] : memref<12x8xbf16, #tpu.memory_space<vmem>>, vector<12x8xbf16>
      tpu.vector_store %arg5[%c0_15, %c0_16], %24 {strides = array<i32>} : memref<12x8xbf16, #tpu.memory_space<vmem>>, vector<12x8xbf16>,
    } else {
    }
    return
  }
  func.func @transform_0(%arg0: i32, %arg1: i32) -> (i32, i32) {
    %c0_i32 = arith.constant 0 : i32
    return %arg0, %arg1 : i32, i32
  }
  func.func @transform_1(%arg0: i32, %arg1: i32) -> (i32, i32) {
    %c0_i32 = arith.constant 0 : i32
    %c0_i32_0 = arith.constant 0 : i32
    return %arg1, %c0_i32 : i32, i32
  }
  func.func @transform_2(%arg0: i32, %arg1: i32) -> (i32, i32) {
    %c0_i32 = arith.constant 0 : i32
    %c0_i32_0 = arith.constant 0 : i32
    %c0_i32_1 = arith.constant 0 : i32
    return %c0_i32, %c0_i32_0 : i32, i32
  }
  func.func @transform_3(%arg0: i32, %arg1: i32) -> (i32, i32) {
    %c0_i32 = arith.constant 0 : i32
    %c0_i32_0 = arith.constant 0 : i32
    return %arg0, %c0_i32 : i32, i32
  }
}

module attributes {stable_mosaic.version = 11 : i64} {
  func.func @_mm_kernel(%arg0: i32, %arg1: i32, %arg2: memref<12x8xbf16, #tpu.memory_space<vmem>>, %arg3: memref<8x32xbf16, #tpu.memory_space<vmem>>, %arg4: memref<12x32xbf16, #tpu.memory_space<vmem>>, %arg5: memref<12x32xf32, #tpu.memory_space<vmem>>) attributes {dimension_semantics = [#tpu.dimension_semantics<parallel>, #tpu.dimension_semantics<arbitrary>], iteration_bounds = array<i64: 1, 1>, scalar_prefetch = 0 : i64, scratch_operands = 1 : i64, tpu.core_type = #tpu.core_type<tc>, window_params = [{transform_indices = @transform_0, window_bounds = array<i64: 12, 8>}, {transform_indices = @transform_1, window_bounds = array<i64: 8, 32>}, {transform_indices = @transform_2, window_bounds = array<i64: 12, 32>}]} {
    %c0_i32 = arith.constant 0 : i32
    %0 = arith.cmpi eq, %arg1, %c0_i32 : i32
    %1 = arith.extui %0 : i1 to i32
    %c0_i32_0 = arith.constant 0 : i32
    %2 = arith.cmpi ne, %1, %c0_i32_0 : i32
    scf.if %2 {
      %cst_10 = arith.constant 0.000000e+00 : f32
      %12 = vector.broadcast %cst_10 : f32 to vector<12x32xf32>
      %c0_11 = arith.constant 0 : index
      %c0_12 = arith.constant 0 : index
      %13 = vector.load %arg5[%c0_11, %c0_12] : memref<12x32xf32, #tpu.memory_space<vmem>>, vector<12x32xf32>
      tpu.vector_store %arg5[%c0_11, %c0_12], %12 {strides = array<i32>} : memref<12x32xf32, #tpu.memory_space<vmem>>, vector<12x32xf32>,
    } else {
    }
    %c0 = arith.constant 0 : index
    %c0_1 = arith.constant 0 : index
    %3 = vector.load %arg5[%c0, %c0_1] : memref<12x32xf32, #tpu.memory_space<vmem>>, vector<12x32xf32>
    %c0_2 = arith.constant 0 : index
    %c0_3 = arith.constant 0 : index
    %4 = vector.load %arg2[%c0_2, %c0_3] : memref<12x8xbf16, #tpu.memory_space<vmem>>, vector<12x8xbf16>
    %c0_4 = arith.constant 0 : index
    %c0_5 = arith.constant 0 : index
    %5 = vector.load %arg3[%c0_4, %c0_5] : memref<8x32xbf16, #tpu.memory_space<vmem>>, vector<8x32xbf16>
    %cst = arith.constant dense<0.000000e+00> : vector<12x32xf32>
    %6 = tpu.matmul %4, %5, %cst {dimension_numbers = #tpu.dot_dimension_numbers<[1], [0], [0], [1], [0, 0, 1, 1], [], []>} : vector<12x8xbf16>, vector<8x32xbf16>, vector<12x32xf32> -> vector<12x32xf32>
    %7 = arith.addf %3, %6 : vector<12x32xf32>
    %c0_6 = arith.constant 0 : index
    %c0_7 = arith.constant 0 : index
    %8 = vector.load %arg5[%c0_6, %c0_7] : memref<12x32xf32, #tpu.memory_space<vmem>>, vector<12x32xf32>
    tpu.vector_store %arg5[%c0_6, %c0_7], %7 {strides = array<i32>} : memref<12x32xf32, #tpu.memory_space<vmem>>, vector<12x32xf32>,
    %c0_i32_8 = arith.constant 0 : i32
    %9 = arith.cmpi eq, %arg1, %c0_i32_8 : i32
    %10 = arith.extui %9 : i1 to i32
    %c0_i32_9 = arith.constant 0 : i32
    %11 = arith.cmpi ne, %10, %c0_i32_9 : i32
    scf.if %11 {
      %c0_10 = arith.constant 0 : index
      %c0_11 = arith.constant 0 : index
      %12 = vector.load %arg5[%c0_10, %c0_11] : memref<12x32xf32, #tpu.memory_space<vmem>>, vector<12x32xf32>
      %13 = arith.truncf %12 : vector<12x32xf32> to vector<12x32xbf16>
      %c0_12 = arith.constant 0 : index
      %c0_13 = arith.constant 0 : index
      %14 = vector.load %arg4[%c0_12, %c0_13] : memref<12x32xbf16, #tpu.memory_space<vmem>>, vector<12x32xbf16>
      tpu.vector_store %arg4[%c0_12, %c0_13], %13 {strides = array<i32>} : memref<12x32xbf16, #tpu.memory_space<vmem>>, vector<12x32xbf16>,
    } else {
    }
    return
  }
  func.func @transform_0(%arg0: i32, %arg1: i32) -> (i32, i32) {
    %c0_i32 = arith.constant 0 : i32
    return %arg0, %arg1 : i32, i32
  }
  func.func @transform_1(%arg0: i32, %arg1: i32) -> (i32, i32) {
    %c0_i32 = arith.constant 0 : i32
    %c0_i32_0 = arith.constant 0 : i32
    return %arg1, %c0_i32 : i32, i32
  }
  func.func @transform_2(%arg0: i32, %arg1: i32) -> (i32, i32) {
    %c0_i32 = arith.constant 0 : i32
    %c0_i32_0 = arith.constant 0 : i32
    return %arg0, %c0_i32 : i32, i32
  }
}

module attributes {stable_mosaic.version = 11 : i64} {
  func.func @_bias_act_kernel(%arg0: i32, %arg1: memref<56x4xbf16, #tpu.memory_space<vmem>>, %arg2: memref<1x4xf32, #tpu.memory_space<vmem>>, %arg3: memref<56x4xbf16, #tpu.memory_space<vmem>>) attributes {dimension_semantics = [#tpu.dimension_semantics<parallel>], iteration_bounds = array<i64: 1>, scalar_prefetch = 0 : i64, scratch_operands = 0 : i64, tpu.core_type = #tpu.core_type<tc>, window_params = [{transform_indices = @transform_0, window_bounds = array<i64: 56, 4>}, {pipeline_mode = #tpu.pipeline_mode<synchronous>, transform_indices = @transform_1, window_bounds = array<i64: 1, 4>}, {transform_indices = @transform_2, window_bounds = array<i64: 56, 4>}]} {
    %c0 = arith.constant 0 : index
    %c0_0 = arith.constant 0 : index
    %0 = vector.load %arg1[%c0, %c0_0] : memref<56x4xbf16, #tpu.memory_space<vmem>>, vector<56x4xbf16>
    %1 = arith.extf %0 : vector<56x4xbf16> to vector<56x4xf32>
    %c0_1 = arith.constant 0 : index
    %c0_2 = arith.constant 0 : index
    %2 = vector.load %arg2[%c0_1, %c0_2] : memref<1x4xf32, #tpu.memory_space<vmem>>, vector<1x4xf32>
    %3 = vector.broadcast %2 : vector<1x4xf32> to vector<56x4xf32>
    %4 = arith.addf %1, %3 : vector<56x4xf32>
    %5 = arith.truncf %4 : vector<56x4xf32> to vector<56x4xbf16>
    %c0_3 = arith.constant 0 : index
    %c0_4 = arith.constant 0 : index
    %6 = vector.load %arg3[%c0_3, %c0_4] : memref<56x4xbf16, #tpu.memory_space<vmem>>, vector<56x4xbf16>
    tpu.vector_store %arg3[%c0_3, %c0_4], %5 {strides = array<i32>} : memref<56x4xbf16, #tpu.memory_space<vmem>>, vector<56x4xbf16>,
    return
  }
  func.func @transform_0(%arg0: i32) -> (i32, i32) {
    %c0_i32 = arith.constant 0 : i32
    %c0_i32_0 = arith.constant 0 : i32
    return %arg0, %c0_i32 : i32, i32
  }
  func.func @transform_1(%arg0: i32) -> (i32, i32) {
    %c0_i32 = arith.constant 0 : i32
    %c0_i32_0 = arith.constant 0 : i32
    %c0_i32_1 = arith.constant 0 : i32
    return %c0_i32, %c0_i32_0 : i32, i32
  }
  func.func @transform_2(%arg0: i32) -> (i32, i32) {
    %c0_i32 = arith.constant 0 : i32
    %c0_i32_0 = arith.constant 0 : i32
    return %arg0, %c0_i32 : i32, i32
  }
}

module attributes {stable_mosaic.version = 11 : i64} {
  func.func @_mm_kernel(%arg0: i32, %arg1: i32, %arg2: memref<6x3xbf16, #tpu.memory_space<vmem>>, %arg3: memref<3x24xbf16, #tpu.memory_space<vmem>>, %arg4: memref<6x24xbf16, #tpu.memory_space<vmem>>, %arg5: memref<6x24xf32, #tpu.memory_space<vmem>>) attributes {dimension_semantics = [#tpu.dimension_semantics<parallel>, #tpu.dimension_semantics<arbitrary>], iteration_bounds = array<i64: 1, 1>, scalar_prefetch = 0 : i64, scratch_operands = 1 : i64, tpu.core_type = #tpu.core_type<tc>, window_params = [{transform_indices = @transform_0, window_bounds = array<i64: 6, 3>}, {transform_indices = @transform_1, window_bounds = array<i64: 3, 24>}, {transform_indices = @transform_2, window_bounds = array<i64: 6, 24>}]} {
    %c0_i32 = arith.constant 0 : i32
    %0 = arith.cmpi eq, %arg1, %c0_i32 : i32
    %1 = arith.extui %0 : i1 to i32
    %c0_i32_0 = arith.constant 0 : i32
    %2 = arith.cmpi ne, %1, %c0_i32_0 : i32
    scf.if %2 {
      %cst_10 = arith.constant 0.000000e+00 : f32
      %12 = vector.broadcast %cst_10 : f32 to vector<6x24xf32>
      %c0_11 = arith.constant 0 : index
      %c0_12 = arith.constant 0 : index
      %13 = vector.load %arg5[%c0_11, %c0_12] : memref<6x24xf32, #tpu.memory_space<vmem>>, vector<6x24xf32>
      tpu.vector_store %arg5[%c0_11, %c0_12], %12 {strides = array<i32>} : memref<6x24xf32, #tpu.memory_space<vmem>>, vector<6x24xf32>,
    } else {
    }
    %c0 = arith.constant 0 : index
    %c0_1 = arith.constant 0 : index
    %3 = vector.load %arg5[%c0, %c0_1] : memref<6x24xf32, #tpu.memory_space<vmem>>, vector<6x24xf32>
    %c0_2 = arith.constant 0 : index
    %c0_3 = arith.constant 0 : index
    %4 = vector.load %arg2[%c0_2, %c0_3] : memref<6x3xbf16, #tpu.memory_space<vmem>>, vector<6x3xbf16>
    %c0_4 = arith.constant 0 : index
    %c0_5 = arith.constant 0 : index
    %5 = vector.load %arg3[%c0_4, %c0_5] : memref<3x24xbf16, #tpu.memory_space<vmem>>, vector<3x24xbf16>
    %cst = arith.constant dense<0.000000e+00> : vector<6x24xf32>
    %6 = tpu.matmul %4, %5, %cst {dimension_numbers = #tpu.dot_dimension_numbers<[1], [0], [0], [1], [0, 0, 1, 1], [], []>} : vector<6x3xbf16>, vector<3x24xbf16>, vector<6x24xf32> -> vector<6x24xf32>
    %7 = arith.addf %3, %6 : vector<6x24xf32>
    %c0_6 = arith.constant 0 : index
    %c0_7 = arith.constant 0 : index
    %8 = vector.load %arg5[%c0_6, %c0_7] : memref<6x24xf32, #tpu.memory_space<vmem>>, vector<6x24xf32>
    tpu.vector_store %arg5[%c0_6, %c0_7], %7 {strides = array<i32>} : memref<6x24xf32, #tpu.memory_space<vmem>>, vector<6x24xf32>,
    %c0_i32_8 = arith.constant 0 : i32
    %9 = arith.cmpi eq, %arg1, %c0_i32_8 : i32
    %10 = arith.extui %9 : i1 to i32
    %c0_i32_9 = arith.constant 0 : i32
    %11 = arith.cmpi ne, %10, %c0_i32_9 : i32
    scf.if %11 {
      %c0_10 = arith.constant 0 : index
      %c0_11 = arith.constant 0 : index
      %12 = vector.load %arg5[%c0_10, %c0_11] : memref<6x24xf32, #tpu.memory_space<vmem>>, vector<6x24xf32>
      %13 = arith.truncf %12 : vector<6x24xf32> to vector<6x24xbf16>
      %c0_12 = arith.constant 0 : index
      %c0_13 = arith.constant 0 : index
      %14 = vector.load %arg4[%c0_12, %c0_13] : memref<6x24xbf16, #tpu.memory_space<vmem>>, vector<6x24xbf16>
      tpu.vector_store %arg4[%c0_12, %c0_13], %13 {strides = array<i32>} : memref<6x24xbf16, #tpu.memory_space<vmem>>, vector<6x24xbf16>,
    } else {
    }
    return
  }
  func.func @transform_0(%arg0: i32, %arg1: i32) -> (i32, i32) {
    %c0_i32 = arith.constant 0 : i32
    return %arg0, %arg1 : i32, i32
  }
  func.func @transform_1(%arg0: i32, %arg1: i32) -> (i32, i32) {
    %c0_i32 = arith.constant 0 : i32
    %c0_i32_0 = arith.constant 0 : i32
    return %arg1, %c0_i32 : i32, i32
  }
  func.func @transform_2(%arg0: i32, %arg1: i32) -> (i32, i32) {
    %c0_i32 = arith.constant 0 : i32
    %c0_i32_0 = arith.constant 0 : i32
    return %arg0, %c0_i32 : i32, i32
  }
}

module attributes {stable_mosaic.version = 11 : i64} {
  func.func @_mm_kernel(%arg0: i32, %arg1: i32, %arg2: memref<32x3xbf16, #tpu.memory_space<vmem>>, %arg3: memref<3x48xbf16, #tpu.memory_space<vmem>>, %arg4: memref<32x48xbf16, #tpu.memory_space<vmem>>, %arg5: memref<32x48xf32, #tpu.memory_space<vmem>>) attributes {dimension_semantics = [#tpu.dimension_semantics<parallel>, #tpu.dimension_semantics<arbitrary>], iteration_bounds = array<i64: 1, 1>, scalar_prefetch = 0 : i64, scratch_operands = 1 : i64, tpu.core_type = #tpu.core_type<tc>, window_params = [{transform_indices = @transform_0, window_bounds = array<i64: 32, 3>}, {transform_indices = @transform_1, window_bounds = array<i64: 3, 48>}, {transform_indices = @transform_2, window_bounds = array<i64: 32, 48>}]} {
    %c0_i32 = arith.constant 0 : i32
    %0 = arith.cmpi eq, %arg1, %c0_i32 : i32
    %1 = arith.extui %0 : i1 to i32
    %c0_i32_0 = arith.constant 0 : i32
    %2 = arith.cmpi ne, %1, %c0_i32_0 : i32
    scf.if %2 {
      %cst_10 = arith.constant 0.000000e+00 : f32
      %12 = vector.broadcast %cst_10 : f32 to vector<32x48xf32>
      %c0_11 = arith.constant 0 : index
      %c0_12 = arith.constant 0 : index
      %13 = vector.load %arg5[%c0_11, %c0_12] : memref<32x48xf32, #tpu.memory_space<vmem>>, vector<32x48xf32>
      tpu.vector_store %arg5[%c0_11, %c0_12], %12 {strides = array<i32>} : memref<32x48xf32, #tpu.memory_space<vmem>>, vector<32x48xf32>,
    } else {
    }
    %c0 = arith.constant 0 : index
    %c0_1 = arith.constant 0 : index
    %3 = vector.load %arg5[%c0, %c0_1] : memref<32x48xf32, #tpu.memory_space<vmem>>, vector<32x48xf32>
    %c0_2 = arith.constant 0 : index
    %c0_3 = arith.constant 0 : index
    %4 = vector.load %arg2[%c0_2, %c0_3] : memref<32x3xbf16, #tpu.memory_space<vmem>>, vector<32x3xbf16>
    %c0_4 = arith.constant 0 : index
    %c0_5 = arith.constant 0 : index
    %5 = vector.load %arg3[%c0_4, %c0_5] : memref<3x48xbf16, #tpu.memory_space<vmem>>, vector<3x48xbf16>
    %cst = arith.constant dense<0.000000e+00> : vector<32x48xf32>
    %6 = tpu.matmul %4, %5, %cst {dimension_numbers = #tpu.dot_dimension_numbers<[1], [0], [0], [1], [0, 0, 1, 1], [], []>} : vector<32x3xbf16>, vector<3x48xbf16>, vector<32x48xf32> -> vector<32x48xf32>
    %7 = arith.addf %3, %6 : vector<32x48xf32>
    %c0_6 = arith.constant 0 : index
    %c0_7 = arith.constant 0 : index
    %8 = vector.load %arg5[%c0_6, %c0_7] : memref<32x48xf32, #tpu.memory_space<vmem>>, vector<32x48xf32>
    tpu.vector_store %arg5[%c0_6, %c0_7], %7 {strides = array<i32>} : memref<32x48xf32, #tpu.memory_space<vmem>>, vector<32x48xf32>,
    %c0_i32_8 = arith.constant 0 : i32
    %9 = arith.cmpi eq, %arg1, %c0_i32_8 : i32
    %10 = arith.extui %9 : i1 to i32
    %c0_i32_9 = arith.constant 0 : i32
    %11 = arith.cmpi ne, %10, %c0_i32_9 : i32
    scf.if %11 {
      %c0_10 = arith.constant 0 : index
      %c0_11 = arith.constant 0 : index
      %12 = vector.load %arg5[%c0_10, %c0_11] : memref<32x48xf32, #tpu.memory_space<vmem>>, vector<32x48xf32>
      %13 = arith.truncf %12 : vector<32x48xf32> to vector<32x48xbf16>
      %c0_12 = arith.constant 0 : index
      %c0_13 = arith.constant 0 : index
      %14 = vector.load %arg4[%c0_12, %c0_13] : memref<32x48xbf16, #tpu.memory_space<vmem>>, vector<32x48xbf16>
      tpu.vector_store %arg4[%c0_12, %c0_13], %13 {strides = array<i32>} : memref<32x48xbf16, #tpu.memory_space<vmem>>, vector<32x48xbf16>,
    } else {
    }
    return
  }
  func.func @transform_0(%arg0: i32, %arg1: i32) -> (i32, i32) {
    %c0_i32 = arith.constant 0 : i32
    return %arg0, %arg1 : i32, i32
  }
  func.func @transform_1(%arg0: i32, %arg1: i32) -> (i32, i32) {
    %c0_i32 = arith.constant 0 : i32
    %c0_i32_0 = arith.constant 0 : i32
    return %arg1, %c0_i32 : i32, i32
  }
  func.func @transform_2(%arg0: i32, %arg1: i32) -> (i32, i32) {
    %c0_i32 = arith.constant 0 : i32
    %c0_i32_0 = arith.constant 0 : i32
    return %arg0, %c0_i32 : i32, i32
  }
}

module attributes {stable_mosaic.version = 11 : i64} {
  func.func @_bias_act_kernel(%arg0: i32, %arg1: memref<32x3xbf16, #tpu.memory_space<vmem>>, %arg2: memref<1x3xf32, #tpu.memory_space<vmem>>, %arg3: memref<32x3xbf16, #tpu.memory_space<vmem>>) attributes {dimension_semantics = [#tpu.dimension_semantics<parallel>], iteration_bounds = array<i64: 1>, scalar_prefetch = 0 : i64, scratch_operands = 0 : i64, tpu.core_type = #tpu.core_type<tc>, window_params = [{transform_indices = @transform_0, window_bounds = array<i64: 32, 3>}, {pipeline_mode = #tpu.pipeline_mode<synchronous>, transform_indices = @transform_1, window_bounds = array<i64: 1, 3>}, {transform_indices = @transform_2, window_bounds = array<i64: 32, 3>}]} {
    %c0 = arith.constant 0 : index
    %c0_0 = arith.constant 0 : index
    %0 = vector.load %arg1[%c0, %c0_0] : memref<32x3xbf16, #tpu.memory_space<vmem>>, vector<32x3xbf16>
    %1 = arith.extf %0 : vector<32x3xbf16> to vector<32x3xf32>
    %c0_1 = arith.constant 0 : index
    %c0_2 = arith.constant 0 : index
    %2 = vector.load %arg2[%c0_1, %c0_2] : memref<1x3xf32, #tpu.memory_space<vmem>>, vector<1x3xf32>
    %3 = vector.broadcast %2 : vector<1x3xf32> to vector<32x3xf32>
    %4 = arith.addf %1, %3 : vector<32x3xf32>
    %cst = arith.constant 0.000000e+00 : f32
    %5 = vector.broadcast %cst : f32 to vector<32x3xf32>
    %6 = arith.maximumf %4, %5 : vector<32x3xf32>
    %7 = arith.truncf %6 : vector<32x3xf32> to vector<32x3xbf16>
    %c0_3 = arith.constant 0 : index
    %c0_4 = arith.constant 0 : index
    %8 = vector.load %arg3[%c0_3, %c0_4] : memref<32x3xbf16, #tpu.memory_space<vmem>>, vector<32x3xbf16>
    tpu.vector_store %arg3[%c0_3, %c0_4], %7 {strides = array<i32>} : memref<32x3xbf16, #tpu.memory_space<vmem>>, vector<32x3xbf16>,
    return
  }
  func.func @transform_0(%arg0: i32) -> (i32, i32) {
    %c0_i32 = arith.constant 0 : i32
    %c0_i32_0 = arith.constant 0 : i32
    return %arg0, %c0_i32 : i32, i32
  }
  func.func @transform_1(%arg0: i32) -> (i32, i32) {
    %c0_i32 = arith.constant 0 : i32
    %c0_i32_0 = arith.constant 0 : i32
    %c0_i32_1 = arith.constant 0 : i32
    return %c0_i32, %c0_i32_0 : i32, i32
  }
  func.func @transform_2(%arg0: i32) -> (i32, i32) {
    %c0_i32 = arith.constant 0 : i32
    %c0_i32_0 = arith.constant 0 : i32
    return %arg0, %c0_i32 : i32, i32
  }
}

module attributes {stable_mosaic.version = 11 : i64} {
  func.func @_bias_act_kernel(%arg0: i32, %arg1: memref<136x6xbf16, #tpu.memory_space<vmem>>, %arg2: memref<1x6xf32, #tpu.memory_space<vmem>>, %arg3: memref<136x6xbf16, #tpu.memory_space<vmem>>) attributes {dimension_semantics = [#tpu.dimension_semantics<parallel>], iteration_bounds = array<i64: 1>, scalar_prefetch = 0 : i64, scratch_operands = 0 : i64, tpu.core_type = #tpu.core_type<tc>, window_params = [{transform_indices = @transform_0, window_bounds = array<i64: 136, 6>}, {pipeline_mode = #tpu.pipeline_mode<synchronous>, transform_indices = @transform_1, window_bounds = array<i64: 1, 6>}, {transform_indices = @transform_2, window_bounds = array<i64: 136, 6>}]} {
    %c0 = arith.constant 0 : index
    %c0_0 = arith.constant 0 : index
    %0 = vector.load %arg1[%c0, %c0_0] : memref<136x6xbf16, #tpu.memory_space<vmem>>, vector<136x6xbf16>
    %1 = arith.extf %0 : vector<136x6xbf16> to vector<136x6xf32>
    %c0_1 = arith.constant 0 : index
    %c0_2 = arith.constant 0 : index
    %2 = vector.load %arg2[%c0_1, %c0_2] : memref<1x6xf32, #tpu.memory_space<vmem>>, vector<1x6xf32>
    %3 = vector.broadcast %2 : vector<1x6xf32> to vector<136x6xf32>
    %4 = arith.addf %1, %3 : vector<136x6xf32>
    %5 = arith.truncf %4 : vector<136x6xf32> to vector<136x6xbf16>
    %c0_3 = arith.constant 0 : index
    %c0_4 = arith.constant 0 : index
    %6 = vector.load %arg3[%c0_3, %c0_4] : memref<136x6xbf16, #tpu.memory_space<vmem>>, vector<136x6xbf16>
    tpu.vector_store %arg3[%c0_3, %c0_4], %5 {strides = array<i32>} : memref<136x6xbf16, #tpu.memory_space<vmem>>, vector<136x6xbf16>,
    return
  }
  func.func @transform_0(%arg0: i32) -> (i32, i32) {
    %c0_i32 = arith.constant 0 : i32
    %c0_i32_0 = arith.constant 0 : i32
    return %arg0, %c0_i32 : i32, i32
  }
  func.func @transform_1(%arg0: i32) -> (i32, i32) {
    %c0_i32 = arith.constant 0 : i32
    %c0_i32_0 = arith.constant 0 : i32
    %c0_i32_1 = arith.constant 0 : i32
    return %c0_i32, %c0_i32_0 : i32, i32
  }
  func.func @transform_2(%arg0: i32) -> (i32, i32) {
    %c0_i32 = arith.constant 0 : i32
    %c0_i32_0 = arith.constant 0 : i32
    return %arg0, %c0_i32 : i32, i32
  }
}

</mosaic_0001>

<bundles_post_ra>
// kernel: _lambda_.19
= control target key start
LH: loop header
LB: loop body
LE: loop exit
PB: predicated region body
PF: predicated region fallthrough
CT: control target
= control target key end

     0   :  { %vm19_vm0 = vcmask 64512   ;;  %vm50_vm1 = vcmask 130048   ;;  %v189_v1 = vmov 0.0   ;;  %vm153_vm2 = vcmask 60416   ;;  %s242_s1 = inlined_call_operand.vmem [shape: bf16[16,8], index: 1, kind: input, shape index: {}]   ;;  %s243_s0 = inlined_call_operand.vmem [shape: bf16[32,16], index: 0, kind: input, shape index: {}]   ;;  %s244_s2 = inlined_call_operand.vmem [shape: f32[1,8], index: 2, kind: input, shape index: {}]   ;;  %s245_s3 = inlined_call_operand.vmem [shape: bf16[32,8], index: 3, kind: output, shape index: {}]  }
   0x1   :  { %v186_v0 = vld [vmem:[%s242_s1] sm:$0xff]   ;;  %22 = vst.msk [vmem:[#allocation2 + $0x10] sm:$0xff] %vm19_vm0, %v189_v1  ;;  %20 = vst.msk [vmem:[#allocation2] sm:$0xff] %vm19_vm0, %v189_v1  ;;  %v188_v3 = vld [vmem:[%s243_s0 + $0x8] sm:$0xff]  }
   0x2   :  { %21 = vst.msk [vmem:[#allocation2 + $0x8] sm:$0xff] %vm19_vm0, %v189_v1  ;;  %23 = vst.msk [vmem:[#allocation2 + $0x18] sm:$0xff] %vm19_vm0, %v189_v1  ;;  %v187_v2 = vld [vmem:[%s243_s0] sm:$0xff]   ;;  %179 = vmatprep.subr.bf16.mxu0 %v186_v0 }
   0x3   :  { %180 = vmatpush3.bf16.msra.mxu0 %v186_v0  ;;  %181 = vmatprep.mubr.msk.bf16.mxu0 %vm50_vm1, %v187_v2  ;;  %v167_v16 = vld [vmem:[%s244_s2] ss:$0 sm:$0xff] }
   0x6   :  { %182 = vmatmul.mubr.msk.bf16.vlgmr.msra.gmra.mxu0 %vm50_vm1, %v188_v3 }
   0x8   :  { %v26_v4 = vld [vmem:[#allocation2 + $0x10] sm:$0xff]  ;;  %v24_v6 = vld [vmem:[#allocation2] sm:$0xff] }
   0x9   :  { %v27_v9 = vld [vmem:[#allocation2 + $0x18] sm:$0xff]  ;;  %v25_v12 = vld [vmem:[#allocation2 + $0x8] sm:$0xff] }
  0xc6   :  { %v183_v5 = vpop.f32.mrf.mxu0 }
  0xc7   :  { %v108_v7 = vadd.f32 %v183_v5, %v26_v4 }
  0xc8   :  { %v91_v8 = vpop.f32.mrf.mxu0 }
  0xc9   :  { %113 = vst.msk [vmem:[#allocation2 + $0x10] sm:$0xff] %vm19_vm0, %v108_v7  ;;  %v106_v10 = vadd.f32 %v91_v8, %v24_v6 }
  0xca   :  { %v184_v11 = vpop.f32.mrf.mxu0 }
  0xcb   :  { %111 = vst.msk [vmem:[#allocation2] sm:$0xff] %vm19_vm0, %v106_v10  ;;  %v109_v13 = vadd.f32 %v184_v11, %v27_v9 }
  0xcc   :  { %v94_v14 = vpop.f32.mrf.mxu0 }
  0xcd   :  { %114 = vst.msk [vmem:[#allocation2 + $0x18] sm:$0xff] %vm19_vm0, %v109_v13  ;;  %v107_v15 = vadd.f32 %v94_v14, %v25_v12 }
  0xcf   :  { %112 = vst.msk [vmem:[#allocation2 + $0x8] sm:$0xff] %vm19_vm0, %v107_v15 }
  0xd0   :  { %v120_v17 = vld [vmem:[#allocation2 + $0x10] sm:$0xff] }
  0xd1   :  { %v131_v18 = vadd.f32 %v167_v16, %v120_v17 }
  0xd2   :  { %v118_v19 = vld [vmem:[#allocation2] sm:$0xff] }
  0xd3   :  { %v135_v20 = vmax.f32 %v131_v18, 0.0  ;;  %v129_v21 = vadd.f32 %v167_v16, %v118_v19 }
  0xd4   :  { %v121_v22 = vld [vmem:[#allocation2 + $0x18] sm:$0xff] }
  0xd5   :  { %v174_v23 = vpack.c.bf16 %v135_v20, %v135_v20  ;;  %v133_v24 = vmax.f32 %v129_v21, 0.0  ;;  %v132_v25 = vadd.f32 %v167_v16, %v121_v22 }
  0xd6   :  { %v119_v26 = vld [vmem:[#allocation2 + $0x8] sm:$0xff] }
  0xd7   :  { %156 = vst.msk [vmem:[%s245_s3 + $0x8] sm:$0xf] %vm153_vm2, %v174_v23  ;;  %v172_v27 = vpack.c.bf16 %v133_v24, %v133_v24  ;;  %v136_v28 = vmax.f32 %v132_v25, 0.0  ;;  %v130_v29 = vadd.f32 %v167_v16, %v119_v26 }
  0xd9   :  { %154 = vst.msk [vmem:[%s245_s3] sm:$0xf] %vm153_vm2, %v172_v27  ;;  %v175_v30 = vpack.c.bf16 %v136_v28, %v136_v28  ;;  %v134_v31 = vmax.f32 %v130_v29, 0.0 }
  0xdb   :  { %157 = vst.msk [vmem:[%s245_s3 + $0xc] sm:$0xf] %vm153_vm2, %v175_v30  ;;  %v173_v32 = vpack.c.bf16 %v134_v31, %v134_v31 }
  0xdd   :  { %155 = vst.msk [vmem:[%s245_s3 + $0x4] sm:$0xf] %vm153_vm2, %v173_v32 }

// kernel: _lambda_.20
= control target key start
LH: loop header
LB: loop body
LE: loop exit
PB: predicated region body
PF: predicated region fallthrough
CT: control target
= control target key end

     0   :  { %vm50_vm0 = vcmask 1043456   ;;  %vm43_vm1 = vcmask 64512   ;;  %vm19_vm2 = vcmask 130048   ;;  %v246_v1 = vmov 0.0   ;;  %s300_s1 = inlined_call_operand.vmem [shape: bf16[8,16], index: 1, kind: input, shape index: {}]   ;;  %s301_s0 = inlined_call_operand.vmem [shape: bf16[32,8], index: 0, kind: input, shape index: {}]   ;;  %s302_s2 = inlined_call_operand.vmem [shape: f32[1,16], index: 2, kind: input, shape index: {}]   ;;  %s303_s3 = inlined_call_operand.vmem [shape: bf16[32,8], index: 3, kind: output, shape index: {}]  }
   0x1   :  { %v32_v0 = vld [vmem:[%s300_s1] sm:$0xf]  ;;  %22 = vst.msk [vmem:[#allocation2 + $0x10] sm:$0xff] %vm19_vm2, %v246_v1  ;;  %20 = vst.msk [vmem:[#allocation2] sm:$0xff] %vm19_vm2, %v246_v1  ;;  %v229_v4 = vld [vmem:[%s301_s0 + $0x8] sm:$0xff]   ;;  %vm190_vm3 = vcmask 60416  }
   0x2   :  { %21 = vst.msk [vmem:[#allocation2 + $0x8] sm:$0xff] %vm19_vm2, %v246_v1  ;;  %23 = vst.msk [vmem:[#allocation2 + $0x18] sm:$0xff] %vm19_vm2, %v246_v1  ;;  %225 = vmatprep.subr.msk.bf16.mxu0 %vm50_vm0, %v32_v0  ;;  %v52_v2 = vsel %vm50_vm0, %v32_v0, 0  ;;  %v228_v3 = vld [vmem:[%s301_s0] sm:$0xff]  }
   0x3   :  { %220 = vmatpush3.bf16.msra.mxu0 %v52_v2  ;;  %221 = vmatprep.mubr.msk.bf16.mxu0 %vm43_vm1, %v228_v3  ;;  %v203_v17 = vld [vmem:[%s302_s2] ss:$0 sm:$0xff]  ;;  %s247_s2 = smov 120  }
   0x6   :  { %222 = vmatmul.mubr.msk.bf16.vlgmr.msra.gmra.mxu0 %vm43_vm1, %v229_v4 }
   0x8   :  { %v26_v5 = vld [vmem:[#allocation2 + $0x10] sm:$0xff]  ;;  %v24_v7 = vld [vmem:[#allocation2] sm:$0xff] }
   0x9   :  { %v27_v10 = vld [vmem:[#allocation2 + $0x18] sm:$0xff]  ;;  %v25_v13 = vld [vmem:[#allocation2 + $0x8] sm:$0xff] }
  0xc6   :  { %v223_v6 = vpop.f32.mrf.mxu0 }
  0xc7   :  { %v105_v8 = vadd.f32 %v223_v6, %v26_v5 }
  0xc8   :  { %v88_v9 = vpop.f32.mrf.mxu0 }
  0xc9   :  { %110 = vst.msk [vmem:[#allocation2 + $0x10] sm:$0xff] %vm19_vm2, %v105_v8  ;;  %v103_v11 = vadd.f32 %v88_v9, %v24_v7 }
  0xca   :  { %v224_v12 = vpop.f32.mrf.mxu0 }
  0xcb   :  { %108 = vst.msk [vmem:[#allocation2] sm:$0xff] %vm19_vm2, %v103_v11  ;;  %v106_v14 = vadd.f32 %v224_v12, %v27_v10 }
  0xcc   :  { %v91_v15 = vpop.f32.mrf.mxu0 }
  0xcd   :  { %111 = vst.msk [vmem:[#allocation2 + $0x18] sm:$0xff] %vm19_vm2, %v106_v14  ;;  %v104_v16 = vadd.f32 %v91_v15, %v25_v13 }
  0xcf   :  { %109 = vst.msk [vmem:[#allocation2 + $0x8] sm:$0xff] %vm19_vm2, %v104_v16 }
  0xd0   :  { %v117_v18 = vld [vmem:[#allocation2 + $0x10] sm:$0xff] }
  0xd1   :  { %v128_v19 = vadd.f32 %v203_v17, %v117_v18 }
  0xd2   :  { %v115_v20 = vld [vmem:[#allocation2] sm:$0xff] }
  0xd3   :  { %v206_v21 = vmul.f32 -1.442695, %v128_v19  ;;  %v126_v22 = vadd.f32 %v203_v17, %v115_v20 }
  0xd4   :  { %v118_v23 = vld [vmem:[#allocation2 + $0x18] sm:$0xff] }
  0xd5   :  { %230 = vpow2.f32 %v206_v21  ;;  %v129_v24 = vadd.f32 %v203_v17, %v118_v23  ;;  %v204_v25 = vmul.f32 -1.442695, %v126_v22 }
  0xd6   :  { %v116_v26 = vld [vmem:[#allocation2 + $0x8] sm:$0xff] }
  0xd7   :  { %v127_v27 = vadd.f32 %v203_v17, %v116_v26  ;;  %v207_v28 = vmul.f32 -1.442695, %v129_v24  ;;  %232 = vpow2.f32 %v204_v25 }
  0xd9   :  { %v205_v29 = vmul.f32 -1.442695, %v127_v27  ;;  %234 = vpow2.f32 %v207_v28 }
  0xdb   :  { %236 = vpow2.f32 %v205_v29 }
  0xe2   :  { %v231_v30 = vpop.eup %230 }
  0xe3   :  { %v144_v31 = vadd.f32 1.0, %v231_v30 }
  0xe4   :  { %v233_v32 = vpop.eup %232 }
  0xe5   :  { %238 = vrcp.f32 %v144_v31  ;;  %v142_v33 = vadd.f32 1.0, %v233_v32 }
  0xe6   :  { %v235_v34 = vpop.eup %234 }
  0xe7   :  { %240 = vrcp.f32 %v142_v33  ;;  %v145_v35 = vadd.f32 1.0, %v235_v34 }
  0xe8   :  { %v237_v36 = vpop.eup %236 }
  0xe9   :  { %242 = vrcp.f32 %v145_v35  ;;  %v143_v37 = vadd.f32 1.0, %v237_v36 }
  0xeb   :  { %244 = vrcp.f32 %v143_v37 }
  0xf2   :  { %v239_v38 = vpop.eup %238 }
  0xf3   :  { %162 = vrot.lane.b32.xlu1 %v239_v38, %s247_s2 }
  0xf4   :  { %v241_v39 = vpop.eup %240 }
  0xf5   :  { %158 = vrot.lane.b32.xlu0 %v241_v39, %s247_s2 }
  0xf6   :  { %v243_v40 = vpop.eup %242 }
  0xf7   :  { %164 = vrot.lane.b32.xlu1 %v243_v40, %s247_s2 }
  0xf8   :  { %v245_v41 = vpop.eup %244 }
  0xf9   :  { %160 = vrot.lane.b32.xlu0 %v245_v41, %s247_s2 }
 0x165   :  { %v163_v42 = vpop.permute.xlu1 %162 }
 0x166   :  { %v172_v43 = vmul.f32 %v163_v42, %v128_v19 }
 0x167   :  { %v159_v44 = vpop.permute.xlu0 %158 }
 0x168   :  { %v214_v45 = vpack.c.bf16 %v172_v43, %v172_v43  ;;  %v170_v46 = vmul.f32 %v159_v44, %v126_v22 }
 0x169   :  { %v165_v47 = vpop.permute.xlu1 %164 }
 0x16a   :  { %193 = vst.msk [vmem:[%s303_s3 + $0x8] sm:$0xf] %vm190_vm3, %v214_v45  ;;  %v212_v48 = vpack.c.bf16 %v170_v46, %v170_v46  ;;  %v173_v49 = vmul.f32 %v165_v47, %v129_v24 }
 0x16b   :  { %v161_v50 = vpop.permute.xlu0 %160 }
 0x16c   :  { %191 = vst.msk [vmem:[%s303_s3] sm:$0xf] %vm190_vm3, %v212_v48  ;;  %v215_v51 = vpack.c.bf16 %v173_v49, %v173_v49  ;;  %v171_v52 = vmul.f32 %v161_v50, %v127_v27 }
 0x16e   :  { %194 = vst.msk [vmem:[%s303_s3 + $0xc] sm:$0xf] %vm190_vm3, %v215_v51  ;;  %v213_v53 = vpack.c.bf16 %v171_v52, %v171_v52 }
 0x170   :  { %192 = vst.msk [vmem:[%s303_s3 + $0x4] sm:$0xf] %vm190_vm3, %v213_v53 }

// kernel: _lambda_.22
= control target key start
LH: loop header
LB: loop body
LE: loop exit
PB: predicated region body
PF: predicated region fallthrough
CT: control target
= control target key end

     0   :  { %vm19_vm0 = vcmask 259072   ;;  %v128_v0 = vmov 0.0   ;;  %vm129_vm1 = vmmov 0   ;;  %vm31_vm2 = vcmask 130048   ;;  %s165_s1 = inlined_call_operand.vmem [shape: bf16[16,32], index: 1, kind: input, shape index: {}]   ;;  %s166_s0 = inlined_call_operand.vmem [shape: bf16[6,16], index: 0, kind: input, shape index: {}]   ;;  %s167_s2 = inlined_call_operand.vmem [shape: f32[1,32], index: 2, kind: input, shape index: {}]   ;;  %s168_s3 = inlined_call_operand.vmem [shape: bf16[6,16], index: 3, kind: output, shape index: {}]  }
   0x1   :  { %20 = vst.msk [vmem:[#allocation2] sm:$0x3f] %vm19_vm0, %v128_v0  ;;  %114 = vmatprep.subr.bf16.mxu0 %v128_v0  ;;  %v123_v1 = vld [vmem:[%s165_s1] sm:$0xff]   ;;  %116 = vmatprep.mubr.msk.bf16.mxu0 %vm129_vm1, %v128_v0  ;;  %vm102_vm3 = vcmask 124928  }
   0x2   :  { %115 = vmatpush3.bf16.msra.mxu0 %v123_v1  ;;  %v22_v2 = vld [vmem:[%s166_s0] sm:$0x7]  ;;  %s130_s0 = smov 112  }
   0x3   :  { %v110_v9 = vld [vmem:[%s167_s2] ss:$0 sm:$0xff] }
   0x5   :  { %117 = vmatmul.mubr.msk.bf16.vlgmr.msra.gmra.mxu0 %vm31_vm2, %v22_v2 }
   0x8   :  { %v21_v3 = vld [vmem:[#allocation2] sm:$0x3f] }
  0xc5   :  { %v69_v4 = vpop.f32.mrf.mxu0 }
  0xc6   :  { %v75_v5 = vadd.f32 %v69_v4, %v21_v3 }
  0xc7   :  { %v118_v6 = vpop.f32.mrf.mxu0 }
  0xc8   :  { %77 = vst.msk [vmem:[#allocation2] sm:$0x3f] %vm19_vm0, %v75_v5 }
  0xc9   :  { %v72_v7 = vpop.f32.mrf.mxu0 }
  0xcb   :  { %v119_v8 = vpop.f32.mrf.mxu0 }
  0xcf   :  { %v81_v10 = vld [vmem:[#allocation2] sm:$0x3f] }
  0xd0   :  { %v89_v11 = vadd.f32 %v110_v9, %v81_v10 }
  0xd2   :  { %v111_v12 = vmul.f32 -1.442695, %v89_v11 }
  0xd4   :  { %124 = vpow2.f32 %v111_v12 }
  0xe1   :  { %v125_v13 = vpop.eup %124 }
  0xe2   :  { %v93_v14 = vadd.f32 1.0, %v125_v13 }
  0xe4   :  { %126 = vrcp.f32 %v93_v14 }
  0xf1   :  { %v127_v15 = vpop.eup %126 }
  0xf2   :  { %97 = vrot.lane.b32.xlu0 %v127_v15, %s130_s0 }
 0x164   :  { %v98_v16 = vpop.permute.xlu0 %97 }
 0x165   :  { %v100_v17 = vmul.f32 %v98_v16, %v89_v11 }
 0x167   :  { %v101_v18 = vpack.c.bf16 %v100_v17, %v100_v17 }
 0x169   :  { %103 = vst.msk [vmem:[%s168_s3] sm:$0x7] %vm102_vm3, %v101_v18 }

// kernel: _lambda_.21
= control target key start
LH: loop header
LB: loop body
LE: loop exit
PB: predicated region body
PF: predicated region fallthrough
CT: control target
= control target key end

     0   :  { %vm19_vm0 = vcmask 128000   ;;  %v151_v0 = vmov 0.0   ;;  %vm152_vm1 = vmmov 0   ;;  %vm55_vm2 = vcmask 523264   ;;  %s196_s1 = inlined_call_operand.vmem [shape: bf16[64,16], index: 1, kind: input, shape index: {}]   ;;  %s197_s0 = inlined_call_operand.vmem [shape: bf16[6,64], index: 0, kind: input, shape index: {}]   ;;  %s198_s2 = inlined_call_operand.vmem [shape: f32[1,16], index: 2, kind: input, shape index: {}]   ;;  %s199_s3 = inlined_call_operand.vmem [shape: bf16[6,16], index: 3, kind: output, shape index: {}]  }
   0x1   :  { %133 = vmatprep.subr.bf16.mxu0 %v151_v0  ;;  %v147_v1 = vld [vmem:[%s196_s1 + $0x18] sm:$0xff]   ;;  %141 = vmatprep.mubr.msk.bf16.mxu0 %vm152_vm1, %v151_v0  ;;  %20 = vst.msk [vmem:[#allocation2] sm:$0x3f] %vm19_vm0, %v151_v0  ;;  %v148_v2 = vld [vmem:[%s196_s1 + $0x10] sm:$0xff]   ;;  %v149_v3 = vld [vmem:[%s196_s1 + $0x8] sm:$0xff]   ;;  %vm116_vm3 = vcmask 124928  }
   0x2   :  { %134 = vmatpush3.bf16.msra.mxu0 %v147_v1  ;;  %v150_v4 = vld [vmem:[%s196_s1] sm:$0xff]  }
   0x3   :  { %135 = vmatprep.subr.bf16.mxu0 %v151_v0  ;;  %v22_v5 = vld [vmem:[%s197_s0] sm:$0x7] }
   0x4   :  { %v127_v12 = vld [vmem:[%s198_s2] ss:$0 sm:$0xff] }
   0x6   :  { %136 = vmatpush3.bf16.msra.mxu0 %v148_v2 }
   0x7   :  { %137 = vmatprep.subr.bf16.mxu0 %v151_v0 }
   0x8   :  { %v21_v6 = vld [vmem:[#allocation2] sm:$0x3f] }
   0xa   :  { %138 = vmatpush3.bf16.msra.mxu0 %v149_v3 }
   0xb   :  { %139 = vmatprep.subr.bf16.mxu0 %v151_v0 }
   0xe   :  { %140 = vmatpush3.bf16.msra.mxu0 %v150_v4 }
  0x11   :  { %142 = vmatmul.mubr.msk.bf16.vlgmr.msra.gmra.mxu0 %vm55_vm2, %v22_v5 }
  0xd1   :  { %v93_v7 = vpop.f32.mrf.mxu0 }
  0xd2   :  { %v99_v8 = vadd.f32 %v93_v7, %v21_v6 }
  0xd3   :  { %v143_v9 = vpop.f32.mrf.mxu0 }
  0xd4   :  { %101 = vst.msk [vmem:[#allocation2] sm:$0x3f] %vm19_vm0, %v99_v8 }
  0xd5   :  { %v96_v10 = vpop.f32.mrf.mxu0 }
  0xd7   :  { %v144_v11 = vpop.f32.mrf.mxu0 }
  0xdb   :  { %v105_v13 = vld [vmem:[#allocation2] sm:$0x3f] }
  0xdc   :  { %v113_v14 = vadd.f32 %v127_v12, %v105_v13 }
  0xde   :  { %v114_v15 = vmax.f32 %v113_v14, 0.0 }
  0xe0   :  { %v115_v16 = vpack.c.bf16 %v114_v15, %v114_v15 }
  0xe2   :  { %117 = vst.msk [vmem:[%s199_s3] sm:$0x7] %vm116_vm3, %v115_v16 }

// kernel: _lambda_.23
= control target key start
LH: loop header
LB: loop body
LE: loop exit
PB: predicated region body
PF: predicated region fallthrough
CT: control target
= control target key end

     0   :  { %v107_v0 = vmov 0.0   ;;  %vm108_vm0 = vmmov 0   ;;  %vm30_vm1 = vcmask 130048   ;;  %s141_s1 = inlined_call_operand.vmem [shape: bf16[16,128], index: 1, kind: input, shape index: {}]   ;;  %s142_s0 = inlined_call_operand.vmem [shape: bf16[6,16], index: 0, kind: input, shape index: {}]   ;;  %s143_s2 = inlined_call_operand.vmem [shape: f32[1,128], index: 2, kind: input, shape index: {}]   ;;  %s144_s3 = inlined_call_operand.vmem [shape: f32[6,128], index: 3, kind: output, shape index: {}]  }
   0x1   :  { %19 = vst [vmem:[#allocation2] sm:$0x3f] %v107_v0  ;;  %98 = vmatprep.subr.bf16.mxu0 %v107_v0  ;;  %v106_v1 = vld [vmem:[%s141_s1] sm:$0xff]   ;;  %100 = vmatprep.mubr.msk.bf16.mxu0 %vm108_vm0, %v107_v0 }
   0x2   :  { %99 = vmatpush3.bf16.msra.mxu0 %v106_v1  ;;  %v21_v2 = vld [vmem:[%s142_s0] sm:$0x7] }
   0x3   :  { %v95_v9 = vld [vmem:[%s143_s2] ss:$0 sm:$0xff] }
   0x5   :  { %101 = vmatmul.mubr.msk.bf16.vlgmr.msra.gmra.mxu0 %vm30_vm1, %v21_v2 }
   0x8   :  { %v20_v3 = vld [vmem:[#allocation2] sm:$0x3f] }
  0xc5   :  { %v68_v4 = vpop.f32.mrf.mxu0 }
  0xc6   :  { %v74_v5 = vadd.f32 %v68_v4, %v20_v3 }
  0xc7   :  { %v102_v6 = vpop.f32.mrf.mxu0 }
  0xc8   :  { %75 = vst [vmem:[#allocation2] sm:$0x3f] %v74_v5 }
  0xc9   :  { %v71_v7 = vpop.f32.mrf.mxu0 }
  0xcb   :  { %v103_v8 = vpop.f32.mrf.mxu0 }
  0xcf   :  { %v79_v10 = vld [vmem:[#allocation2] sm:$0x3f] }
  0xd0   :  { %v87_v11 = vadd.f32 %v95_v9, %v79_v10 }
  0xd2   :  { %88 = vst [vmem:[%s144_s3] sm:$0x3f] %v87_v11 }

// kernel: _lambda_.25
= control target key start
LH: loop header
LB: loop body
LE: loop exit
PB: predicated region body
PF: predicated region fallthrough
CT: control target
= control target key end

     0   :  { %v120_v0 = vmov 0.0   ;;  %vm121_vm0 = vmmov 0   ;;  %vm38_vm1 = vcmask 261120   ;;  %s157_s1 = inlined_call_operand.vmem [shape: bf16[32,128], index: 1, kind: input, shape index: {}]   ;;  %s158_s0 = inlined_call_operand.vmem [shape: bf16[6,32], index: 0, kind: input, shape index: {}]   ;;  %s159_s2 = inlined_call_operand.vmem [shape: f32[1,128], index: 2, kind: input, shape index: {}]   ;;  %s160_s3 = inlined_call_operand.vmem [shape: f32[6,128], index: 3, kind: output, shape index: {}]  }
   0x1   :  { %108 = vmatprep.subr.bf16.mxu0 %v120_v0  ;;  %19 = vst [vmem:[#allocation2] sm:$0x3f] %v120_v0  ;;  %v118_v1 = vld [vmem:[%s157_s1 + $0x8] sm:$0xff]   ;;  %112 = vmatprep.mubr.msk.bf16.mxu0 %vm121_vm0, %v120_v0  ;;  %v119_v2 = vld [vmem:[%s157_s1] sm:$0xff]  }
   0x2   :  { %109 = vmatpush3.bf16.msra.mxu0 %v118_v1  ;;  %v21_v3 = vld [vmem:[%s158_s0] sm:$0x7] }
   0x3   :  { %110 = vmatprep.subr.bf16.mxu0 %v120_v0  ;;  %v104_v10 = vld [vmem:[%s159_s2] ss:$0 sm:$0xff] }
   0x6   :  { %111 = vmatpush3.bf16.msra.mxu0 %v119_v2 }
   0x8   :  { %v20_v4 = vld [vmem:[#allocation2] sm:$0x3f] }
   0x9   :  { %113 = vmatmul.mubr.msk.bf16.vlgmr.msra.gmra.mxu0 %vm38_vm1, %v21_v3 }
  0xc9   :  { %v76_v5 = vpop.f32.mrf.mxu0 }
  0xca   :  { %v82_v6 = vadd.f32 %v76_v5, %v20_v4 }
  0xcb   :  { %v114_v7 = vpop.f32.mrf.mxu0 }
  0xcc   :  { %83 = vst [vmem:[#allocation2] sm:$0x3f] %v82_v6 }
  0xcd   :  { %v79_v8 = vpop.f32.mrf.mxu0 }
  0xcf   :  { %v115_v9 = vpop.f32.mrf.mxu0 }
  0xd3   :  { %v87_v11 = vld [vmem:[#allocation2] sm:$0x3f] }
  0xd4   :  { %v95_v12 = vadd.f32 %v104_v10, %v87_v11 }
  0xd6   :  { %96 = vst [vmem:[%s160_s3] sm:$0x3f] %v95_v12 }

// kernel: _lambda_.27
= control target key start
LH: loop header
LB: loop body
LE: loop exit
PB: predicated region body
PF: predicated region fallthrough
CT: control target
= control target key end

     0   :  { %vm19_vm0 = vcmask 152576   ;;  %v124_v0 = vmov 0.0   ;;  %vm125_vm1 = vmmov 0   ;;  %vm39_vm2 = vcmask 261120   ;;  %s163_s1 = inlined_call_operand.vmem [shape: bf16[32,19], index: 1, kind: input, shape index: {}]   ;;  %s164_s0 = inlined_call_operand.vmem [shape: bf16[6,32], index: 0, kind: input, shape index: {}]   ;;  %s165_s2 = inlined_call_operand.vmem [shape: f32[1,19], index: 2, kind: input, shape index: {}]   ;;  %s166_s3 = inlined_call_operand.vmem [shape: bf16[6,19], index: 3, kind: output, shape index: {}]  }
   0x1   :  { %20 = vst.msk [vmem:[#allocation2] sm:$0x3f] %vm19_vm0, %v124_v0  ;;  %112 = vmatprep.subr.bf16.mxu0 %v124_v0  ;;  %v122_v1 = vld [vmem:[%s163_s1 + $0x8] sm:$0xff]   ;;  %116 = vmatprep.mubr.msk.bf16.mxu0 %vm125_vm1, %v124_v0  ;;  %v123_v2 = vld [vmem:[%s163_s1] sm:$0xff]   ;;  %vm99_vm3 = vcmask 149504  }
   0x2   :  { %113 = vmatpush3.bf16.msra.mxu0 %v122_v1  ;;  %v22_v3 = vld [vmem:[%s164_s0] sm:$0x7] }
   0x3   :  { %114 = vmatprep.subr.bf16.mxu0 %v124_v0  ;;  %v108_v10 = vld [vmem:[%s165_s2] ss:$0 sm:$0xff] }
   0x6   :  { %115 = vmatpush3.bf16.msra.mxu0 %v123_v2 }
   0x8   :  { %v21_v4 = vld [vmem:[#allocation2] sm:$0x3f] }
   0x9   :  { %117 = vmatmul.mubr.msk.bf16.vlgmr.msra.gmra.mxu0 %vm39_vm2, %v22_v3 }
  0xc9   :  { %v77_v5 = vpop.f32.mrf.mxu0 }
  0xca   :  { %v83_v6 = vadd.f32 %v77_v5, %v21_v4 }
  0xcb   :  { %v118_v7 = vpop.f32.mrf.mxu0 }
  0xcc   :  { %85 = vst.msk [vmem:[#allocation2] sm:$0x3f] %vm19_vm0, %v83_v6 }
  0xcd   :  { %v80_v8 = vpop.f32.mrf.mxu0 }
  0xcf   :  { %v119_v9 = vpop.f32.mrf.mxu0 }
  0xd3   :  { %v89_v11 = vld [vmem:[#allocation2] sm:$0x3f] }
  0xd4   :  { %v97_v12 = vadd.f32 %v108_v10, %v89_v11 }
  0xd6   :  { %v98_v13 = vpack.c.bf16 %v97_v12, %v97_v12 }
  0xd8   :  { %100 = vst.msk [vmem:[%s166_s3] sm:$0x7] %vm99_vm3, %v98_v13 }

// kernel: _lambda_.29
= control target key start
LH: loop header
LB: loop body
LE: loop exit
PB: predicated region body
PF: predicated region fallthrough
CT: control target
= control target key end

     0   :  { %vm16_vm0 = vcmask 517120   ;;  %v99_v0 = vmov 0.0   ;;  %vm100_vm1 = vmmov 0   ;;  %vm28_vm2 = vcmask 130048   ;;  %s127_s1 = inlined_call_operand.vmem [shape: bf16[16,64], index: 1, kind: input, shape index: {}]   ;;  %s128_s0 = inlined_call_operand.vmem [shape: bf16[2,16], index: 0, kind: input, shape index: {}]   ;;  %s129_s2 = inlined_call_operand.vmem [shape: bf16[2,64], index: 2, kind: output, shape index: {}]  }
   0x1   :  { %17 = vst.msk [vmem:[#allocation2] sm:$0x3] %vm16_vm0, %v99_v0  ;;  %90 = vmatprep.subr.bf16.mxu0 %v99_v0  ;;  %v98_v1 = vld [vmem:[%s127_s1] sm:$0xff]   ;;  %92 = vmatprep.mubr.msk.bf16.mxu0 %vm100_vm1, %v99_v0  ;;  %vm80_vm3 = vcmask 516096  }
   0x2   :  { %91 = vmatpush3.bf16.msra.mxu0 %v98_v1  ;;  %v19_v2 = vld [vmem:[%s128_s0] sm:$0x1] }
   0x5   :  { %93 = vmatmul.mubr.msk.bf16.vlgmr.msra.gmra.mxu0 %vm28_vm2, %v19_v2 }
   0x8   :  { %v18_v3 = vld [vmem:[#allocation2] sm:$0x3] }
  0xc5   :  { %v66_v4 = vpop.f32.mrf.mxu0 }
  0xc6   :  { %v72_v5 = vadd.f32 %v66_v4, %v18_v3 }
  0xc7   :  { %v94_v6 = vpop.f32.mrf.mxu0 }
  0xc8   :  { %74 = vst.msk [vmem:[#allocation2] sm:$0x3] %vm16_vm0, %v72_v5 }
  0xc9   :  { %v69_v7 = vpop.f32.mrf.mxu0 }
  0xcb   :  { %v95_v8 = vpop.f32.mrf.mxu0 }
  0xcf   :  { %v78_v9 = vld [vmem:[#allocation2] sm:$0x3] }
  0xd0   :  { %v79_v10 = vpack.c.bf16 %v78_v9, %v78_v9 }
  0xd2   :  { %81 = vst.msk [vmem:[%s129_s2] sm:$0x1] %vm80_vm3, %v79_v10 }

// kernel: _lambda_.28
= control target key start
LH: loop header
LB: loop body
LE: loop exit
PB: predicated region body
PF: predicated region fallthrough
CT: control target
= control target key end

     0   :  { %vm19_vm0 = vcmask 254976   ;;  %v154_v0 = vmov 0.0   ;;  %vm155_vm1 = vmmov 0   ;;  %vm47_vm2 = vcmask 392192   ;;  %s197_s1 = inlined_call_operand.vmem [shape: bf16[48,32], index: 1, kind: input, shape index: {}]   ;;  %s198_s0 = inlined_call_operand.vmem [shape: bf16[2,48], index: 0, kind: input, shape index: {}]   ;;  %s199_s2 = inlined_call_operand.vmem [shape: f32[1,32], index: 2, kind: input, shape index: {}]   ;;  %s200_s3 = inlined_call_operand.vmem [shape: bf16[2,16], index: 3, kind: output, shape index: {}]  }
   0x1   :  { %134 = vmatprep.subr.bf16.mxu0 %v154_v0  ;;  %v147_v1 = vld [vmem:[%s197_s1 + $0x10] sm:$0xff]   ;;  %140 = vmatprep.mubr.msk.bf16.mxu0 %vm155_vm1, %v154_v0  ;;  %20 = vst.msk [vmem:[#allocation2] sm:$0x3] %vm19_vm0, %v154_v0  ;;  %v148_v2 = vld [vmem:[%s197_s1 + $0x8] sm:$0xff]   ;;  %v149_v3 = vld [vmem:[%s197_s1] sm:$0xff]   ;;  %vm118_vm3 = vcmask 122880  }
   0x2   :  { %135 = vmatpush3.bf16.msra.mxu0 %v147_v1  ;;  %v22_v4 = vld [vmem:[%s198_s0] sm:$0x1]  ;;  %s156_s0 = smov 112  }
   0x3   :  { %136 = vmatprep.subr.bf16.mxu0 %v154_v0  ;;  %v128_v11 = vld [vmem:[%s199_s2] ss:$0 sm:$0xff] }
   0x6   :  { %137 = vmatpush3.bf16.msra.mxu0 %v148_v2 }
   0x7   :  { %138 = vmatprep.subr.bf16.mxu0 %v154_v0 }
   0x8   :  { %v21_v5 = vld [vmem:[#allocation2] sm:$0x3] }
   0xa   :  { %139 = vmatpush3.bf16.msra.mxu0 %v149_v3 }
   0xd   :  { %141 = vmatmul.mubr.msk.bf16.vlgmr.msra.gmra.mxu0 %vm47_vm2, %v22_v4 }
  0xcd   :  { %v85_v6 = vpop.f32.mrf.mxu0 }
  0xce   :  { %v91_v7 = vadd.f32 %v85_v6, %v21_v5 }
  0xcf   :  { %v142_v8 = vpop.f32.mrf.mxu0 }
  0xd0   :  { %93 = vst.msk [vmem:[#allocation2] sm:$0x3] %vm19_vm0, %v91_v7 }
  0xd1   :  { %v88_v9 = vpop.f32.mrf.mxu0 }
  0xd3   :  { %v143_v10 = vpop.f32.mrf.mxu0 }
  0xd7   :  { %v97_v12 = vld [vmem:[#allocation2] sm:$0x3] }
  0xd8   :  { %v105_v13 = vadd.f32 %v128_v11, %v97_v12 }
  0xda   :  { %v129_v14 = vmul.f32 -1.442695, %v105_v13 }
  0xdc   :  { %150 = vpow2.f32 %v129_v14 }
  0xe9   :  { %v151_v15 = vpop.eup %150 }
  0xea   :  { %v109_v16 = vadd.f32 1.0, %v151_v15 }
  0xec   :  { %152 = vrcp.f32 %v109_v16 }
  0xf9   :  { %v153_v17 = vpop.eup %152 }
  0xfa   :  { %113 = vrot.lane.b32.xlu0 %v153_v17, %s156_s0 }
 0x16c   :  { %v114_v18 = vpop.permute.xlu0 %113 }
 0x16d   :  { %v116_v19 = vmul.f32 %v114_v18, %v105_v13 }
 0x16f   :  { %v117_v20 = vpack.c.bf16 %v116_v19, %v116_v19 }
 0x171   :  { %119 = vst.msk [vmem:[%s200_s3] sm:$0x1] %vm118_vm3, %v117_v20 }

// kernel: _lambda_.30
= control target key start
LH: loop header
LB: loop body
LE: loop exit
PB: predicated region body
PF: predicated region fallthrough
CT: control target
= control target key end

     0   :  { %vm34_vm0 = vcmask 60416   ;;  %s77_s0 = inlined_call_operand.vmem [shape: bf16[16,8], index: 0, kind: input, shape index: {}]   ;;  %s78_s1 = inlined_call_operand.vmem [shape: f32[1,8], index: 1, kind: input, shape index: {}]   ;;  %s79_s2 = inlined_call_operand.vmem [shape: bf16[16,8], index: 2, kind: output, shape index: {}]  }
   0x1   :  { %v47_v0 = vld [vmem:[%s77_s0] sm:$0xff]  }
   0x2   :  { %v41_v1 = vld [vmem:[%s78_s1] ss:$0 sm:$0xff]  ;;  %v48_v2 = vunpack.c.l.bf16 %v47_v0  ;;  %v49_v3 = vunpack.c.h.bf16 %v47_v0 }
   0x4   :  { %v22_v4 = vadd.f32 %v48_v2, %v41_v1  ;;  %v23_v5 = vadd.f32 %v49_v3, %v41_v1 }
   0x6   :  { %v24_v6 = vmax.f32 %v22_v4, 0.0  ;;  %v25_v7 = vmax.f32 %v23_v5, 0.0 }
   0x8   :  { %v44_v8 = vpack.c.bf16 %v24_v6, %v24_v6  ;;  %v45_v9 = vpack.c.bf16 %v25_v7, %v25_v7 }
   0xa   :  { %35 = vst.msk [vmem:[%s79_s2] sm:$0xf] %vm34_vm0, %v44_v8  ;;  %36 = vst.msk [vmem:[%s79_s2 + $0x4] sm:$0xf] %vm34_vm0, %v45_v9 }

// kernel: _lambda_.24
= control target key start
LH: loop header
LB: loop body
LE: loop exit
PB: predicated region body
PF: predicated region fallthrough
CT: control target
= control target key end

     0   :  { %vm55_vm0 = vcmask 123904   ;;  %v2320_v0 = vmov 0.0   ;;  %vm2321_vm1 = vmmov 0   ;;  %vm71_vm2 = vcmask 130048   ;;  %s2322_s19 = smov 16   ;;  %s2323_s24 = smov 96   ;;  %s2851_s2 = inlined_call_operand.vmem [shape: bf16[2,16,64], index: 2, kind: input, shape index: {}]   ;;  %s2852_s0 = inlined_call_operand.vmem [shape: f32[8,2,64], index: 0, kind: input, shape index: {}]   ;;  %s2853_s1 = inlined_call_operand.vmem [shape: f32[8,2,64], index: 1, kind: input, shape index: {}]   ;;  %s2854_s3 = inlined_call_operand.vmem [shape: bf16[8,2,16], index: 3, kind: output, shape index: {0}]   ;;  %s2855_s4 = inlined_call_operand.vmem [shape: bf16[8,2,16], index: 4, kind: output, shape index: {1}]  }
   0x1   :  { %2072 = vmatprep.subr.bf16.mxu0 %v2320_v0  ;;  %2078 = vmatprep.subr.bf16.mxu1 %v2320_v0  ;;  %v2176_v1 = vld [vmem:[%s2851_s2] sm:$0xff]   ;;  %56 = vst.msk [vmem:[#allocation2] sm:$0x3] %vm55_vm0, %v2320_v0  ;;  %57 = vst.msk [vmem:[#allocation2 + $0x2] sm:$0x3] %vm55_vm0, %v2320_v0  ;;  %v2177_v2 = vld [vmem:[%s2851_s2 + $0x8] sm:$0xff]  }
   0x2   :  { %58 = vst.msk [vmem:[#allocation3] sm:$0x3] %vm55_vm0, %v2320_v0  ;;  %59 = vst.msk [vmem:[#allocation3 + $0x2] sm:$0x3] %vm55_vm0, %v2320_v0  ;;  %2074 = vmatprep.mubr.msk.bf16.mxu0 %vm2321_vm1, %v2320_v0  ;;  %2080 = vmatprep.mubr.msk.bf16.mxu1 %vm2321_vm1, %v2320_v0  ;;  %v60_v9 = vld [vmem:[%s2852_s0] sm:$0x3] }
   0x3   :  { %2073 = vmatpush3.bf16.msra.mxu0 %v2176_v1  ;;  %2079 = vmatpush3.bf16.msra.mxu1 %v2177_v2  ;;  %v1951_v10 = vld [vmem:[%s2853_s1 + $0xe] sm:$0x3]  ;;  %s2324_s25 = smov 32   ;;  %v2178_v45 = vld [vmem:[%s2851_s2] sm:$0xff]   ;;  %s2325_s30 = smov 80   ;;  %vm175_vm3 = vcmask 122880  }
   0x4   :  { %2084 = vmatprep.subr.bf16.mxu0 %v2320_v0  ;;  %2090 = vmatprep.subr.bf16.mxu1 %v2320_v0  ;;  %v2179_v46 = vld [vmem:[%s2851_s2 + $0x8] sm:$0xff]   ;;  %s2326_s5 = smov 112   ;;  %v1958_v59 = vld [vmem:[%s2852_s0 + $0x2] sm:$0x3] }
   0x5   :  { %v1963_v63 = vld [vmem:[%s2853_s1 + $0xc] sm:$0x3] }
   0x8   :  { %v61_v3 = vld [vmem:[#allocation2] sm:$0x3]  ;;  %v180_v4 = vld [vmem:[#allocation2 + $0x2] sm:$0x3] }
   0x9   :  { %v123_v5 = vld [vmem:[#allocation3] sm:$0x3]  ;;  %v62_v6 = vpack.c.bf16 %v61_v3, %v61_v3  ;;  %v181_v7 = vpack.c.bf16 %v180_v4, %v180_v4  ;;  %v243_v8 = vld [vmem:[#allocation3 + $0x2] sm:$0x3] }
   0xa   :  { %125 = vrot.lane.b32.xlu1 %v123_v5, %s2322_s19 }
   0xb   :  { %2075 = vmatmul.mubr.msk.bf16.vlgmr.msra.gmra.mxu0 %vm71_vm2, %v62_v6  ;;  %2081 = vmatmul.mubr.msk.bf16.vlgmr.msra.gmra.mxu1 %vm71_vm2, %v181_v7 }
   0xc   :  { %2086 = vmatprep.mubr.msk.bf16.mxu0 %vm2321_vm1, %v2320_v0  ;;  %2092 = vmatprep.mubr.msk.bf16.mxu1 %vm2321_vm1, %v2320_v0 }
   0xd   :  { %2085 = vmatpush3.bf16.msra.mxu0 %v2178_v45  ;;  %2091 = vmatpush3.bf16.msra.mxu1 %v2179_v46 }
   0xe   :  { %245 = vrot.lane.b32.xlu1 %v243_v8, %s2322_s19  ;;  %2096 = vmatprep.subr.bf16.mxu0 %v2320_v0 }
   0xf   :  { %2102 = vmatprep.subr.bf16.mxu1 %v2320_v0 }
  0x7c   :  { %v126_v35 = vpop.permute.xlu1 %125 }
  0x80   :  { %v246_v37 = vpop.permute.xlu1 %245 }
  0xcb   :  { %v109_v11 = vpop.f32.mrf.mxu0  ;;  %v228_v12 = vpop.f32.mrf.mxu1 }
  0xcc   :  { %v115_v13 = vadd.f32 %v109_v11, %v60_v9  ;;  %v234_v14 = vadd.f32 %v1951_v10, %v228_v12 }
  0xcd   :  { %v2076_v15 = vpop.f32.mrf.mxu0  ;;  %v2082_v16 = vpop.f32.mrf.mxu1 }
  0xce   :  { %2192 = vtanh.f32 %v115_v13  ;;  %v1950_v23 = vmul.f32 -1.442695, %v115_v13  ;;  %v1956_v24 = vmul.f32 -1.442695, %v234_v14 }
  0xcf   :  { %v112_v17 = vpop.f32.mrf.mxu0  ;;  %v231_v18 = vpop.f32.mrf.mxu1  ;;  %2194 = vtanh.f32 %v234_v14 }
  0xd0   :  { %2196 = vpow2.f32 %v1950_v23 }
  0xd1   :  { %v2077_v19 = vpop.f32.mrf.mxu0  ;;  %v2083_v20 = vpop.f32.mrf.mxu1  ;;  %2198 = vpow2.f32 %v1956_v24 }
  0xdb   :  { %v2193_v21 = vpop.eup %2192 }
  0xdc   :  { %130 = vrot.lane.b32.xlu0 %v2193_v21, %s2323_s24  ;;  %v2195_v22 = vpop.eup %2194 }
  0xdd   :  { %v2197_v25 = vpop.eup %2196 }
  0xde   :  { %v119_v26 = vadd.f32 1.0, %v2197_v25  ;;  %v2199_v27 = vpop.eup %2198 }
  0xdf   :  { %v238_v28 = vadd.f32 1.0, %v2199_v27 }
  0xe0   :  { %250 = vrot.lane.b32.xlu0 %v2195_v22, %s2323_s24  ;;  %2200 = vrcp.f32 %v119_v26 }
  0xe1   :  { %2202 = vrcp.f32 %v238_v28 }
  0xed   :  { %v2201_v29 = vpop.eup %2200 }
  0xee   :  { %v2203_v32 = vpop.eup %2202  ;;  %v128_v36 = vmul.f32 %v2201_v29, %v126_v35  ;;  %v2181_v35 = vld [vmem:[%s2851_s2 + $0x8] sm:$0xff]  }
  0xef   :  { %v248_v40 = vmul.f32 %v2203_v32, %v246_v37 }
 0x14e   :  { %v131_v30 = vpop.permute.xlu0 %130 }
 0x14f   :  { %v133_v31 = vmul.f32 %v2201_v29, %v131_v30 }
 0x151   :  { %135 = vrot.lane.b32.xlu0 %v133_v31, %s2322_s19 }
 0x152   :  { %v251_v33 = vpop.permute.xlu0 %250 }
 0x153   :  { %v253_v34 = vmul.f32 %v2203_v32, %v251_v33 }
 0x155   :  { %255 = vrot.lane.b32.xlu1 %v253_v34, %s2322_s19  ;;  %v2180_v34 = vld [vmem:[%s2851_s2] sm:$0xff]  }
 0x1c3   :  { %v136_v38 = vpop.permute.xlu0 %135 }
 0x1c4   :  { %v138_v39 = vadd.f32 %v136_v38, %v128_v36 }
 0x1c6   :  { %2204 = vtanh.f32 %v138_v39 }
 0x1c7   :  { %v256_v41 = vpop.permute.xlu1 %255 }
 0x1c8   :  { %v258_v42 = vadd.f32 %v256_v41, %v248_v40 }
 0x1ca   :  { %2206 = vtanh.f32 %v258_v42 }
 0x1d3   :  { %v2205_v43 = vpop.eup %2204 }
 0x1d4   :  { %141 = vrot.lane.b32.xlu0 %v2205_v43, %s2324_s25 }
 0x1d7   :  { %v2207_v44 = vpop.eup %2206 }
 0x1d8   :  { %261 = vrot.lane.b32.xlu1 %v2207_v44, %s2324_s25 }
 0x246   :  { %v142_v47 = vpop.permute.xlu0 %141 }
 0x247   :  { %v2403_v48 = vmul.f32 %v2201_v29, %v142_v47 }
 0x249   :  { %146 = vrot.lane.b32.xlu0 %v2403_v48, %s2325_s30 }
 0x24a   :  { %v262_v49 = vpop.permute.xlu1 %261 }
 0x24b   :  { %v2407_v50 = vmul.f32 %v2203_v32, %v262_v49  ;;  %v1970_v49 = vld [vmem:[%s2852_s0 + $0x4] sm:$0x3] }
 0x24d   :  { %266 = vrot.lane.b32.xlu1 %v2407_v50, %s2325_s30  ;;  %152 = vrot.lane.b32.xlu0 %v138_v39, %s2326_s5 }
 0x251   :  { %271 = vrot.lane.b32.xlu1 %v258_v42, %s2326_s5 }
 0x2bb   :  { %v147_v51 = vpop.permute.xlu0 %146 }
 0x2bc   :  { %150 = vst.msk [vmem:[#allocation2] sm:$0x3] %vm55_vm0, %v147_v51 }
 0x2bf   :  { %v267_v52 = vpop.permute.xlu1 %266  ;;  %v153_v53 = vpop.permute.xlu0 %152 }
 0x2c0   :  { %269 = vst.msk [vmem:[#allocation2 + $0x2] sm:$0x3] %vm55_vm0, %v267_v52  ;;  %155 = vst.msk [vmem:[#allocation3] sm:$0x3] %vm55_vm0, %v153_v53 }
 0x2c3   :  { %v272_v54 = vpop.permute.xlu1 %271  ;;  %v298_v55 = vld [vmem:[#allocation2] sm:$0x3] }
 0x2c4   :  { %274 = vst.msk [vmem:[#allocation3 + $0x2] sm:$0x3] %vm55_vm0, %v272_v54  ;;  %v299_v56 = vpack.c.bf16 %v298_v55, %v298_v55  ;;  %v1975_v54 = vld [vmem:[%s2853_s1 + $0xa] sm:$0x3] }
 0x2c6   :  { %2087 = vmatmul.mubr.msk.bf16.vlgmr.msra.gmra.mxu0 %vm71_vm2, %v299_v56 }
 0x2c7   :  { %v414_v57 = vld [vmem:[#allocation2 + $0x2] sm:$0x3]  ;;  %2098 = vmatprep.mubr.msk.bf16.mxu0 %vm2321_vm1, %v2320_v0  ;;  %v359_v10 = vld [vmem:[#allocation3] sm:$0x3]  ;;  %2097 = vmatpush3.bf16.msra.mxu0 %v2180_v34 }
 0x2c8   :  { %v415_v58 = vpack.c.bf16 %v414_v57, %v414_v57  ;;  %2108 = vmatprep.subr.bf16.mxu0 %v2320_v0 }
 0x2ca   :  { %2093 = vmatmul.mubr.msk.bf16.vlgmr.msra.gmra.mxu1 %vm71_vm2, %v415_v58 }
 0x2cb   :  { %2104 = vmatprep.mubr.msk.bf16.mxu1 %vm2321_vm1, %v2320_v0  ;;  %v475_v11 = vld [vmem:[#allocation3 + $0x2] sm:$0x3]  ;;  %2103 = vmatpush3.bf16.msra.mxu1 %v2181_v35 }
 0x2cc   :  { %2114 = vmatprep.subr.bf16.mxu1 %v2320_v0 }
 0x386   :  { %v345_v60 = vpop.f32.mrf.mxu0 }
 0x387   :  { %v351_v61 = vadd.f32 %v1958_v59, %v345_v60 }
 0x388   :  { %v2088_v62 = vpop.f32.mrf.mxu0 }
 0x389   :  { %2208 = vtanh.f32 %v351_v61  ;;  %v1961_v12 = vmul.f32 -1.442695, %v351_v61 }
 0x38a   :  { %v348_v1 = vpop.f32.mrf.mxu0  ;;  %v461_v2 = vpop.f32.mrf.mxu1 }
 0x38b   :  { %v467_v3 = vadd.f32 %v1963_v63, %v461_v2 }
 0x38c   :  { %v2089_v4 = vpop.f32.mrf.mxu0  ;;  %v2094_v5 = vpop.f32.mrf.mxu1 }
 0x38d   :  { %2210 = vtanh.f32 %v467_v3  ;;  %v1968_v13 = vmul.f32 -1.442695, %v467_v3 }
 0x38e   :  { %v464_v6 = vpop.f32.mrf.mxu1  ;;  %2212 = vpow2.f32 %v1961_v12 }
 0x38f   :  { %2214 = vpow2.f32 %v1968_v13 }
 0x390   :  { %v2095_v7 = vpop.f32.mrf.mxu1 }
 0x396   :  { %v2209_v8 = vpop.eup %2208 }
 0x397   :  { %366 = vrot.lane.b32.xlu0 %v2209_v8, %s2323_s24 }
 0x39a   :  { %v2211_v9 = vpop.eup %2210 }
 0x39b   :  { %482 = vrot.lane.b32.xlu1 %v2211_v9, %s2323_s24  ;;  %361 = vrot.lane.b32.xlu0 %v359_v10, %s2322_s19  ;;  %v2213_v14 = vpop.eup %2212 }
 0x39c   :  { %v355_v15 = vadd.f32 1.0, %v2213_v14  ;;  %v2215_v16 = vpop.eup %2214 }
 0x39d   :  { %v471_v17 = vadd.f32 1.0, %v2215_v16 }
 0x39e   :  { %2216 = vrcp.f32 %v355_v15 }
 0x39f   :  { %477 = vrot.lane.b32.xlu1 %v475_v11, %s2322_s19  ;;  %2218 = vrcp.f32 %v471_v17 }
 0x3ab   :  { %v2217_v18 = vpop.eup %2216 }
 0x3ac   :  { %v2219_v21 = vpop.eup %2218 }
 0x409   :  { %v367_v19 = vpop.permute.xlu0 %366 }
 0x40a   :  { %v369_v20 = vmul.f32 %v2217_v18, %v367_v19 }
 0x40c   :  { %371 = vrot.lane.b32.xlu0 %v369_v20, %s2322_s19 }
 0x40d   :  { %v483_v22 = vpop.permute.xlu1 %482  ;;  %v362_v24 = vpop.permute.xlu0 %361 }
 0x40e   :  { %v485_v23 = vmul.f32 %v2219_v21, %v483_v22  ;;  %v364_v25 = vmul.f32 %v2217_v18, %v362_v24 }
 0x410   :  { %487 = vrot.lane.b32.xlu1 %v485_v23, %s2322_s19 }
 0x411   :  { %v478_v26 = vpop.permute.xlu1 %477 }
 0x412   :  { %v480_v29 = vmul.f32 %v2219_v21, %v478_v26  ;;  %v2183_v26 = vld [vmem:[%s2851_s2 + $0x8] sm:$0xff]  }
 0x47e   :  { %v372_v27 = vpop.permute.xlu0 %371 }
 0x47f   :  { %v374_v28 = vadd.f32 %v372_v27, %v364_v25  ;;  %v2182_v25 = vld [vmem:[%s2851_s2] sm:$0xff]  }
 0x481   :  { %2220 = vtanh.f32 %v374_v28 }
 0x482   :  { %v488_v30 = vpop.permute.xlu1 %487 }
 0x483   :  { %v490_v31 = vadd.f32 %v488_v30, %v480_v29 }
 0x485   :  { %2222 = vtanh.f32 %v490_v31 }
 0x48e   :  { %v2221_v32 = vpop.eup %2220 }
 0x48f   :  { %377 = vrot.lane.b32.xlu0 %v2221_v32, %s2324_s25 }
 0x492   :  { %v2223_v33 = vpop.eup %2222 }
 0x493   :  { %493 = vrot.lane.b32.xlu1 %v2223_v33, %s2324_s25 }
 0x501   :  { %v378_v36 = vpop.permute.xlu0 %377 }
 0x502   :  { %v2445_v37 = vmul.f32 %v2217_v18, %v378_v36 }
 0x504   :  { %382 = vrot.lane.b32.xlu0 %v2445_v37, %s2325_s30 }
 0x505   :  { %v494_v38 = vpop.permute.xlu1 %493 }
 0x506   :  { %v2449_v39 = vmul.f32 %v2219_v21, %v494_v38 }
 0x508   :  { %498 = vrot.lane.b32.xlu1 %v2449_v39, %s2325_s30  ;;  %387 = vrot.lane.b32.xlu0 %v374_v28, %s2326_s5 }
 0x50c   :  { %503 = vrot.lane.b32.xlu1 %v490_v31, %s2326_s5 }
 0x576   :  { %v383_v40 = vpop.permute.xlu0 %382 }
 0x577   :  { %385 = vst.msk [vmem:[#allocation2] sm:$0x3] %vm55_vm0, %v383_v40 }
 0x57a   :  { %v499_v41 = vpop.permute.xlu1 %498  ;;  %v388_v42 = vpop.permute.xlu0 %387 }
 0x57b   :  { %501 = vst.msk [vmem:[#allocation2 + $0x2] sm:$0x3] %vm55_vm0, %v499_v41  ;;  %390 = vst.msk [vmem:[#allocation3] sm:$0x3] %vm55_vm0, %v388_v42  ;;  %v1982_v41 = vld [vmem:[%s2852_s0 + $0x6] sm:$0x3] }
 0x57e   :  { %v504_v43 = vpop.permute.xlu1 %503  ;;  %v530_v44 = vld [vmem:[#allocation2] sm:$0x3] }
 0x57f   :  { %506 = vst.msk [vmem:[#allocation3 + $0x2] sm:$0x3] %vm55_vm0, %v504_v43  ;;  %v531_v45 = vpack.c.bf16 %v530_v44, %v530_v44 }
 0x581   :  { %2099 = vmatmul.mubr.msk.bf16.vlgmr.msra.gmra.mxu0 %vm71_vm2, %v531_v45  ;;  %v1987_v45 = vld [vmem:[%s2853_s1 + $0x8] sm:$0x3] }
 0x582   :  { %v646_v46 = vld [vmem:[#allocation2 + $0x2] sm:$0x3]  ;;  %2110 = vmatprep.mubr.msk.bf16.mxu0 %vm2321_vm1, %v2320_v0  ;;  %v591_v1 = vld [vmem:[#allocation3] sm:$0x3]  ;;  %2109 = vmatpush3.bf16.msra.mxu0 %v2182_v25 }
 0x583   :  { %v647_v47 = vpack.c.bf16 %v646_v46, %v646_v46  ;;  %2120 = vmatprep.subr.bf16.mxu0 %v2320_v0 }
 0x585   :  { %2105 = vmatmul.mubr.msk.bf16.vlgmr.msra.gmra.mxu1 %vm71_vm2, %v647_v47 }
 0x586   :  { %2116 = vmatprep.mubr.msk.bf16.mxu1 %vm2321_vm1, %v2320_v0  ;;  %v707_v2 = vld [vmem:[#allocation3 + $0x2] sm:$0x3]  ;;  %2115 = vmatpush3.bf16.msra.mxu1 %v2183_v26 }
 0x587   :  { %2126 = vmatprep.subr.bf16.mxu1 %v2320_v0 }
 0x641   :  { %v577_v51 = vpop.f32.mrf.mxu0 }
 0x642   :  { %v583_v52 = vadd.f32 %v1970_v49, %v577_v51 }
 0x643   :  { %v2100_v53 = vpop.f32.mrf.mxu0 }
 0x644   :  { %2224 = vtanh.f32 %v583_v52  ;;  %v1973_v3 = vmul.f32 -1.442695, %v583_v52 }
 0x645   :  { %v580_v55 = vpop.f32.mrf.mxu0  ;;  %v693_v56 = vpop.f32.mrf.mxu1 }
 0x646   :  { %v699_v57 = vadd.f32 %v1975_v54, %v693_v56 }
 0x647   :  { %v2101_v58 = vpop.f32.mrf.mxu0  ;;  %v2106_v59 = vpop.f32.mrf.mxu1 }
 0x648   :  { %2226 = vtanh.f32 %v699_v57  ;;  %v1980_v4 = vmul.f32 -1.442695, %v699_v57 }
 0x649   :  { %v696_v60 = vpop.f32.mrf.mxu1  ;;  %2228 = vpow2.f32 %v1973_v3 }
 0x64a   :  { %2230 = vpow2.f32 %v1980_v4 }
 0x64b   :  { %v2107_v61 = vpop.f32.mrf.mxu1 }
 0x651   :  { %v2225_v62 = vpop.eup %2224 }
 0x652   :  { %598 = vrot.lane.b32.xlu0 %v2225_v62, %s2323_s24 }
 0x655   :  { %v2227_v63 = vpop.eup %2226 }
 0x656   :  { %714 = vrot.lane.b32.xlu1 %v2227_v63, %s2323_s24  ;;  %593 = vrot.lane.b32.xlu0 %v591_v1, %s2322_s19  ;;  %v2229_v5 = vpop.eup %2228 }
 0x657   :  { %v587_v6 = vadd.f32 1.0, %v2229_v5  ;;  %v2231_v7 = vpop.eup %2230 }
 0x658   :  { %v703_v8 = vadd.f32 1.0, %v2231_v7 }
 0x659   :  { %2232 = vrcp.f32 %v587_v6 }
 0x65a   :  { %709 = vrot.lane.b32.xlu1 %v707_v2, %s2322_s19  ;;  %2234 = vrcp.f32 %v703_v8 }
 0x666   :  { %v2233_v9 = vpop.eup %2232 }
 0x667   :  { %v2235_v12 = vpop.eup %2234 }
 0x6c4   :  { %v599_v10 = vpop.permute.xlu0 %598 }
 0x6c5   :  { %v601_v11 = vmul.f32 %v2233_v9, %v599_v10 }
 0x6c7   :  { %603 = vrot.lane.b32.xlu0 %v601_v11, %s2322_s19 }
 0x6c8   :  { %v715_v13 = vpop.permute.xlu1 %714  ;;  %v594_v15 = vpop.permute.xlu0 %593 }
 0x6c9   :  { %v717_v14 = vmul.f32 %v2235_v12, %v715_v13  ;;  %v596_v16 = vmul.f32 %v2233_v9, %v594_v15 }
 0x6cb   :  { %719 = vrot.lane.b32.xlu1 %v717_v14, %s2322_s19 }
 0x6cc   :  { %v710_v17 = vpop.permute.xlu1 %709 }
 0x6cd   :  { %v712_v20 = vmul.f32 %v2235_v12, %v710_v17 }
 0x739   :  { %v604_v18 = vpop.permute.xlu0 %603 }
 0x73a   :  { %v606_v19 = vadd.f32 %v604_v18, %v596_v16  ;;  %v2184_v18 = vld [vmem:[%s2851_s2] sm:$0xff]  }
 0x73c   :  { %2236 = vtanh.f32 %v606_v19 }
 0x73d   :  { %v720_v21 = vpop.permute.xlu1 %719 }
 0x73e   :  { %v722_v22 = vadd.f32 %v720_v21, %v712_v20 }
 0x740   :  { %2238 = vtanh.f32 %v722_v22 }
 0x749   :  { %v2237_v23 = vpop.eup %2236 }
 0x74a   :  { %609 = vrot.lane.b32.xlu0 %v2237_v23, %s2324_s25 }
 0x74d   :  { %v2239_v24 = vpop.eup %2238 }
 0x74e   :  { %725 = vrot.lane.b32.xlu1 %v2239_v24, %s2324_s25 }
 0x7bc   :  { %v610_v27 = vpop.permute.xlu0 %609 }
 0x7bd   :  { %v2487_v28 = vmul.f32 %v2233_v9, %v610_v27 }
 0x7bf   :  { %614 = vrot.lane.b32.xlu0 %v2487_v28, %s2325_s30 }
 0x7c0   :  { %v726_v29 = vpop.permute.xlu1 %725 }
 0x7c1   :  { %v2491_v30 = vmul.f32 %v2235_v12, %v726_v29 }
 0x7c3   :  { %730 = vrot.lane.b32.xlu1 %v2491_v30, %s2325_s30  ;;  %619 = vrot.lane.b32.xlu0 %v606_v19, %s2326_s5  ;;  %v2185_v19 = vld [vmem:[%s2851_s2 + $0x8] sm:$0xff]  }
 0x7c7   :  { %735 = vrot.lane.b32.xlu1 %v722_v22, %s2326_s5 }
 0x831   :  { %v615_v31 = vpop.permute.xlu0 %614 }
 0x832   :  { %617 = vst.msk [vmem:[#allocation2] sm:$0x3] %vm55_vm0, %v615_v31 }
 0x835   :  { %v731_v32 = vpop.permute.xlu1 %730  ;;  %v620_v33 = vpop.permute.xlu0 %619 }
 0x836   :  { %733 = vst.msk [vmem:[#allocation2 + $0x2] sm:$0x3] %vm55_vm0, %v731_v32  ;;  %622 = vst.msk [vmem:[#allocation3] sm:$0x3] %vm55_vm0, %v620_v33 }
 0x839   :  { %v736_v34 = vpop.permute.xlu1 %735  ;;  %v762_v35 = vld [vmem:[#allocation2] sm:$0x3] }
 0x83a   :  { %738 = vst.msk [vmem:[#allocation3 + $0x2] sm:$0x3] %vm55_vm0, %v736_v34  ;;  %v763_v36 = vpack.c.bf16 %v762_v35, %v762_v35  ;;  %v1994_v34 = vld [vmem:[%s2852_s0 + $0x8] sm:$0x3] }
 0x83c   :  { %2111 = vmatmul.mubr.msk.bf16.vlgmr.msra.gmra.mxu0 %vm71_vm2, %v763_v36 }
 0x83d   :  { %v878_v38 = vld [vmem:[#allocation2 + $0x2] sm:$0x3]  ;;  %2122 = vmatprep.mubr.msk.bf16.mxu0 %vm2321_vm1, %v2320_v0  ;;  %v823_v57 = vld [vmem:[#allocation3] sm:$0x3]  ;;  %2121 = vmatpush3.bf16.msra.mxu0 %v2184_v18 }
 0x83e   :  { %v879_v40 = vpack.c.bf16 %v878_v38, %v878_v38  ;;  %2132 = vmatprep.subr.bf16.mxu0 %v2320_v0 }
 0x840   :  { %2117 = vmatmul.mubr.msk.bf16.vlgmr.msra.gmra.mxu1 %vm71_vm2, %v879_v40  ;;  %v1999_v40 = vld [vmem:[%s2853_s1 + $0x6] sm:$0x3] }
 0x841   :  { %2128 = vmatprep.mubr.msk.bf16.mxu1 %vm2321_vm1, %v2320_v0  ;;  %v939_v58 = vld [vmem:[#allocation3 + $0x2] sm:$0x3]  ;;  %2127 = vmatpush3.bf16.msra.mxu1 %v2185_v19 }
 0x842   :  { %2138 = vmatprep.subr.bf16.mxu1 %v2320_v0 }
 0x8fc   :  { %v809_v42 = vpop.f32.mrf.mxu0 }
 0x8fd   :  { %v815_v43 = vadd.f32 %v1982_v41, %v809_v42 }
 0x8fe   :  { %v2112_v44 = vpop.f32.mrf.mxu0 }
 0x8ff   :  { %2240 = vtanh.f32 %v815_v43  ;;  %v1985_v59 = vmul.f32 -1.442695, %v815_v43 }
 0x900   :  { %v812_v46 = vpop.f32.mrf.mxu0  ;;  %v925_v47 = vpop.f32.mrf.mxu1 }
 0x901   :  { %v931_v49 = vadd.f32 %v1987_v45, %v925_v47 }
 0x902   :  { %v2113_v51 = vpop.f32.mrf.mxu0  ;;  %v2118_v52 = vpop.f32.mrf.mxu1 }
 0x903   :  { %2242 = vtanh.f32 %v931_v49  ;;  %v1992_v60 = vmul.f32 -1.442695, %v931_v49 }
 0x904   :  { %v928_v53 = vpop.f32.mrf.mxu1  ;;  %2244 = vpow2.f32 %v1985_v59 }
 0x905   :  { %2246 = vpow2.f32 %v1992_v60 }
 0x906   :  { %v2119_v54 = vpop.f32.mrf.mxu1 }
 0x90c   :  { %v2241_v55 = vpop.eup %2240 }
 0x90d   :  { %830 = vrot.lane.b32.xlu0 %v2241_v55, %s2323_s24 }
 0x910   :  { %v2243_v56 = vpop.eup %2242 }
 0x911   :  { %946 = vrot.lane.b32.xlu1 %v2243_v56, %s2323_s24  ;;  %825 = vrot.lane.b32.xlu0 %v823_v57, %s2322_s19  ;;  %v2245_v61 = vpop.eup %2244 }
 0x912   :  { %v819_v62 = vadd.f32 1.0, %v2245_v61  ;;  %v2247_v63 = vpop.eup %2246 }
 0x913   :  { %v935_v1 = vadd.f32 1.0, %v2247_v63 }
 0x914   :  { %2248 = vrcp.f32 %v819_v62 }
 0x915   :  { %941 = vrot.lane.b32.xlu1 %v939_v58, %s2322_s19  ;;  %2250 = vrcp.f32 %v935_v1 }
 0x921   :  { %v2249_v2 = vpop.eup %2248 }
 0x922   :  { %v2251_v5 = vpop.eup %2250 }
 0x97f   :  { %v831_v3 = vpop.permute.xlu0 %830 }
 0x980   :  { %v833_v4 = vmul.f32 %v2249_v2, %v831_v3 }
 0x982   :  { %835 = vrot.lane.b32.xlu0 %v833_v4, %s2322_s19 }
 0x983   :  { %v947_v6 = vpop.permute.xlu1 %946  ;;  %v826_v8 = vpop.permute.xlu0 %825 }
 0x984   :  { %v949_v7 = vmul.f32 %v2251_v5, %v947_v6  ;;  %v828_v9 = vmul.f32 %v2249_v2, %v826_v8 }
 0x986   :  { %951 = vrot.lane.b32.xlu1 %v949_v7, %s2322_s19 }
 0x987   :  { %v942_v10 = vpop.permute.xlu1 %941 }
 0x988   :  { %v944_v13 = vmul.f32 %v2251_v5, %v942_v10 }
 0x9f4   :  { %v836_v11 = vpop.permute.xlu0 %835 }
 0x9f5   :  { %v838_v12 = vadd.f32 %v836_v11, %v828_v9 }
 0x9f7   :  { %2252 = vtanh.f32 %v838_v12 }
 0x9f8   :  { %v952_v14 = vpop.permute.xlu1 %951 }
 0x9f9   :  { %v954_v15 = vadd.f32 %v952_v14, %v944_v13  ;;  %v2186_v13 = vld [vmem:[%s2851_s2] sm:$0xff]   ;;  %v2187_v14 = vld [vmem:[%s2851_s2 + $0x8] sm:$0xff]  }
 0x9fb   :  { %2254 = vtanh.f32 %v954_v15 }
 0xa04   :  { %v2253_v16 = vpop.eup %2252 }
 0xa05   :  { %841 = vrot.lane.b32.xlu0 %v2253_v16, %s2324_s25 }
 0xa08   :  { %v2255_v17 = vpop.eup %2254 }
 0xa09   :  { %957 = vrot.lane.b32.xlu1 %v2255_v17, %s2324_s25 }
 0xa77   :  { %v842_v20 = vpop.permute.xlu0 %841 }
 0xa78   :  { %v2529_v21 = vmul.f32 %v2249_v2, %v842_v20 }
 0xa7a   :  { %846 = vrot.lane.b32.xlu0 %v2529_v21, %s2325_s30 }
 0xa7b   :  { %v958_v22 = vpop.permute.xlu1 %957 }
 0xa7c   :  { %v2533_v23 = vmul.f32 %v2251_v5, %v958_v22 }
 0xa7e   :  { %962 = vrot.lane.b32.xlu1 %v2533_v23, %s2325_s30  ;;  %851 = vrot.lane.b32.xlu0 %v838_v12, %s2326_s5 }
 0xa82   :  { %967 = vrot.lane.b32.xlu1 %v954_v15, %s2326_s5 }
 0xaec   :  { %v847_v24 = vpop.permute.xlu0 %846 }
 0xaed   :  { %849 = vst.msk [vmem:[#allocation2] sm:$0x3] %vm55_vm0, %v847_v24 }
 0xaf0   :  { %v963_v25 = vpop.permute.xlu1 %962  ;;  %v852_v26 = vpop.permute.xlu0 %851 }
 0xaf1   :  { %965 = vst.msk [vmem:[#allocation2 + $0x2] sm:$0x3] %vm55_vm0, %v963_v25  ;;  %854 = vst.msk [vmem:[#allocation3] sm:$0x3] %vm55_vm0, %v852_v26 }
 0xaf4   :  { %v968_v27 = vpop.permute.xlu1 %967  ;;  %v994_v29 = vld [vmem:[#allocation2] sm:$0x3] }
 0xaf5   :  { %970 = vst.msk [vmem:[#allocation3 + $0x2] sm:$0x3] %vm55_vm0, %v968_v27  ;;  %v995_v31 = vpack.c.bf16 %v994_v29, %v994_v29 }
 0xaf7   :  { %2123 = vmatmul.mubr.msk.bf16.vlgmr.msra.gmra.mxu0 %vm71_vm2, %v995_v31  ;;  %v2006_v31 = vld [vmem:[%s2852_s0 + $0xa] sm:$0x3] }
 0xaf8   :  { %v1110_v32 = vld [vmem:[#allocation2 + $0x2] sm:$0x3]  ;;  %2134 = vmatprep.mubr.msk.bf16.mxu0 %vm2321_vm1, %v2320_v0  ;;  %v1055_v52 = vld [vmem:[#allocation3] sm:$0x3]  ;;  %2133 = vmatpush3.bf16.msra.mxu0 %v2186_v13 }
 0xaf9   :  { %v1111_v33 = vpack.c.bf16 %v1110_v32, %v1110_v32  ;;  %2144 = vmatprep.subr.bf16.mxu0 %v2320_v0 }
 0xafb   :  { %2129 = vmatmul.mubr.msk.bf16.vlgmr.msra.gmra.mxu1 %vm71_vm2, %v1111_v33 }
 0xafc   :  { %2140 = vmatprep.mubr.msk.bf16.mxu1 %vm2321_vm1, %v2320_v0  ;;  %v1171_v53 = vld [vmem:[#allocation3 + $0x2] sm:$0x3]  ;;  %2139 = vmatpush3.bf16.msra.mxu1 %v2187_v14 }
 0xafd   :  { %2150 = vmatprep.subr.bf16.mxu1 %v2320_v0 }
 0xbb7   :  { %v1041_v35 = vpop.f32.mrf.mxu0 }
 0xbb8   :  { %v1047_v36 = vadd.f32 %v1994_v34, %v1041_v35  ;;  %v2011_v35 = vld [vmem:[%s2853_s1 + $0x4] sm:$0x3] }
 0xbb9   :  { %v2124_v38 = vpop.f32.mrf.mxu0 }
 0xbba   :  { %2256 = vtanh.f32 %v1047_v36  ;;  %v1997_v54 = vmul.f32 -1.442695, %v1047_v36 }
 0xbbb   :  { %v1044_v41 = vpop.f32.mrf.mxu0  ;;  %v1157_v42 = vpop.f32.mrf.mxu1 }
 0xbbc   :  { %v1163_v43 = vadd.f32 %v1999_v40, %v1157_v42 }
 0xbbd   :  { %v2125_v44 = vpop.f32.mrf.mxu0  ;;  %v2130_v45 = vpop.f32.mrf.mxu1 }
 0xbbe   :  { %2258 = vtanh.f32 %v1163_v43  ;;  %v2004_v55 = vmul.f32 -1.442695, %v1163_v43 }
 0xbbf   :  { %v1160_v46 = vpop.f32.mrf.mxu1  ;;  %2260 = vpow2.f32 %v1997_v54 }
 0xbc0   :  { %2262 = vpow2.f32 %v2004_v55 }
 0xbc1   :  { %v2131_v47 = vpop.f32.mrf.mxu1 }
 0xbc7   :  { %v2257_v49 = vpop.eup %2256 }
 0xbc8   :  { %1062 = vrot.lane.b32.xlu0 %v2257_v49, %s2323_s24 }
 0xbcb   :  { %v2259_v51 = vpop.eup %2258 }
 0xbcc   :  { %1178 = vrot.lane.b32.xlu1 %v2259_v51, %s2323_s24  ;;  %1057 = vrot.lane.b32.xlu0 %v1055_v52, %s2322_s19  ;;  %v2261_v56 = vpop.eup %2260 }
 0xbcd   :  { %v1051_v57 = vadd.f32 1.0, %v2261_v56  ;;  %v2263_v58 = vpop.eup %2262 }
 0xbce   :  { %v1167_v59 = vadd.f32 1.0, %v2263_v58 }
 0xbcf   :  { %2264 = vrcp.f32 %v1051_v57 }
 0xbd0   :  { %1173 = vrot.lane.b32.xlu1 %v1171_v53, %s2322_s19  ;;  %2266 = vrcp.f32 %v1167_v59 }
 0xbdc   :  { %v2265_v60 = vpop.eup %2264 }
 0xbdd   :  { %v2267_v63 = vpop.eup %2266 }
 0xc3a   :  { %v1063_v61 = vpop.permute.xlu0 %1062 }
 0xc3b   :  { %v1065_v62 = vmul.f32 %v2265_v60, %v1063_v61 }
 0xc3d   :  { %1067 = vrot.lane.b32.xlu0 %v1065_v62, %s2322_s19 }
 0xc3e   :  { %v1179_v1 = vpop.permute.xlu1 %1178  ;;  %v1058_v3 = vpop.permute.xlu0 %1057 }
 0xc3f   :  { %v1181_v2 = vmul.f32 %v2267_v63, %v1179_v1  ;;  %v1060_v4 = vmul.f32 %v2265_v60, %v1058_v3 }
 0xc41   :  { %1183 = vrot.lane.b32.xlu1 %v1181_v2, %s2322_s19 }
 0xc42   :  { %v1174_v5 = vpop.permute.xlu1 %1173 }
 0xc43   :  { %v1176_v8 = vmul.f32 %v2267_v63, %v1174_v5 }
 0xcaf   :  { %v1068_v6 = vpop.permute.xlu0 %1067 }
 0xcb0   :  { %v1070_v7 = vadd.f32 %v1068_v6, %v1060_v4 }
 0xcb2   :  { %2268 = vtanh.f32 %v1070_v7 }
 0xcb3   :  { %v1184_v9 = vpop.permute.xlu1 %1183 }
 0xcb4   :  { %v1186_v10 = vadd.f32 %v1184_v9, %v1176_v8 }
 0xcb6   :  { %2270 = vtanh.f32 %v1186_v10 }
 0xcbf   :  { %v2269_v11 = vpop.eup %2268 }
 0xcc0   :  { %1073 = vrot.lane.b32.xlu0 %v2269_v11, %s2324_s25  ;;  %v2189_v11 = vld [vmem:[%s2851_s2 + $0x8] sm:$0xff]  }
 0xcc3   :  { %v2271_v12 = vpop.eup %2270 }
 0xcc4   :  { %1189 = vrot.lane.b32.xlu1 %v2271_v12, %s2324_s25 }
 0xd32   :  { %v1074_v15 = vpop.permute.xlu0 %1073 }
 0xd33   :  { %v2571_v16 = vmul.f32 %v2265_v60, %v1074_v15 }
 0xd35   :  { %1078 = vrot.lane.b32.xlu0 %v2571_v16, %s2325_s30 }
 0xd36   :  { %v1190_v17 = vpop.permute.xlu1 %1189 }
 0xd37   :  { %v2575_v18 = vmul.f32 %v2267_v63, %v1190_v17 }
 0xd39   :  { %1194 = vrot.lane.b32.xlu1 %v2575_v18, %s2325_s30  ;;  %1083 = vrot.lane.b32.xlu0 %v1070_v7, %s2326_s5 }
 0xd3d   :  { %1199 = vrot.lane.b32.xlu1 %v1186_v10, %s2326_s5  ;;  %v2188_v10 = vld [vmem:[%s2851_s2] sm:$0xff]  }
 0xda7   :  { %v1079_v19 = vpop.permute.xlu0 %1078 }
 0xda8   :  { %1081 = vst.msk [vmem:[#allocation2] sm:$0x3] %vm55_vm0, %v1079_v19 }
 0xdab   :  { %v1195_v20 = vpop.permute.xlu1 %1194  ;;  %v1084_v22 = vpop.permute.xlu0 %1083 }
 0xdac   :  { %1197 = vst.msk [vmem:[#allocation2 + $0x2] sm:$0x3] %vm55_vm0, %v1195_v20  ;;  %1086 = vst.msk [vmem:[#allocation3] sm:$0x3] %vm55_vm0, %v1084_v22 }
 0xdaf   :  { %v1200_v24 = vpop.permute.xlu1 %1199  ;;  %v1226_v25 = vld [vmem:[#allocation2] sm:$0x3] }
 0xdb0   :  { %1202 = vst.msk [vmem:[#allocation3 + $0x2] sm:$0x3] %vm55_vm0, %v1200_v24  ;;  %v1227_v26 = vpack.c.bf16 %v1226_v25, %v1226_v25 }
 0xdb2   :  { %2135 = vmatmul.mubr.msk.bf16.vlgmr.msra.gmra.mxu0 %vm71_vm2, %v1227_v26 }
 0xdb3   :  { %v1342_v27 = vld [vmem:[#allocation2 + $0x2] sm:$0x3]  ;;  %2146 = vmatprep.mubr.msk.bf16.mxu0 %vm2321_vm1, %v2320_v0  ;;  %v1287_v47 = vld [vmem:[#allocation3] sm:$0x3]  ;;  %2145 = vmatpush3.bf16.msra.mxu0 %v2188_v10 }
 0xdb4   :  { %v1343_v29 = vpack.c.bf16 %v1342_v27, %v1342_v27  ;;  %2156 = vmatprep.subr.bf16.mxu0 %v2320_v0 }
 0xdb6   :  { %2141 = vmatmul.mubr.msk.bf16.vlgmr.msra.gmra.mxu1 %vm71_vm2, %v1343_v29  ;;  %v2018_v29 = vld [vmem:[%s2852_s0 + $0xc] sm:$0x3] }
 0xdb7   :  { %2152 = vmatprep.mubr.msk.bf16.mxu1 %vm2321_vm1, %v2320_v0  ;;  %v1403_v49 = vld [vmem:[#allocation3 + $0x2] sm:$0x3]  ;;  %2151 = vmatpush3.bf16.msra.mxu1 %v2189_v11 }
 0xdb8   :  { %2162 = vmatprep.subr.bf16.mxu1 %v2320_v0 }
 0xe72   :  { %v1273_v32 = vpop.f32.mrf.mxu0 }
 0xe73   :  { %v1279_v33 = vadd.f32 %v2006_v31, %v1273_v32 }
 0xe74   :  { %v2136_v34 = vpop.f32.mrf.mxu0 }
 0xe75   :  { %2272 = vtanh.f32 %v1279_v33  ;;  %v2009_v51 = vmul.f32 -1.442695, %v1279_v33  ;;  %v2023_v34 = vld [vmem:[%s2853_s1 + $0x2] sm:$0x3] }
 0xe76   :  { %v1276_v36 = vpop.f32.mrf.mxu0  ;;  %v1389_v38 = vpop.f32.mrf.mxu1 }
 0xe77   :  { %v1395_v40 = vadd.f32 %v2011_v35, %v1389_v38 }
 0xe78   :  { %v2137_v41 = vpop.f32.mrf.mxu0  ;;  %v2142_v42 = vpop.f32.mrf.mxu1 }
 0xe79   :  { %2274 = vtanh.f32 %v1395_v40  ;;  %v2016_v52 = vmul.f32 -1.442695, %v1395_v40 }
 0xe7a   :  { %v1392_v43 = vpop.f32.mrf.mxu1  ;;  %2276 = vpow2.f32 %v2009_v51 }
 0xe7b   :  { %2278 = vpow2.f32 %v2016_v52 }
 0xe7c   :  { %v2143_v44 = vpop.f32.mrf.mxu1 }
 0xe82   :  { %v2273_v45 = vpop.eup %2272 }
 0xe83   :  { %1294 = vrot.lane.b32.xlu0 %v2273_v45, %s2323_s24 }
 0xe86   :  { %v2275_v46 = vpop.eup %2274 }
 0xe87   :  { %1410 = vrot.lane.b32.xlu1 %v2275_v46, %s2323_s24  ;;  %1289 = vrot.lane.b32.xlu0 %v1287_v47, %s2322_s19  ;;  %v2277_v53 = vpop.eup %2276 }
 0xe88   :  { %v1283_v54 = vadd.f32 1.0, %v2277_v53  ;;  %v2279_v55 = vpop.eup %2278 }
 0xe89   :  { %v1399_v56 = vadd.f32 1.0, %v2279_v55 }
 0xe8a   :  { %2280 = vrcp.f32 %v1283_v54 }
 0xe8b   :  { %1405 = vrot.lane.b32.xlu1 %v1403_v49, %s2322_s19  ;;  %2282 = vrcp.f32 %v1399_v56 }
 0xe97   :  { %v2281_v57 = vpop.eup %2280 }
 0xe98   :  { %v2283_v60 = vpop.eup %2282 }
 0xef5   :  { %v1295_v58 = vpop.permute.xlu0 %1294 }
 0xef6   :  { %v1297_v59 = vmul.f32 %v2281_v57, %v1295_v58 }
 0xef8   :  { %1299 = vrot.lane.b32.xlu0 %v1297_v59, %s2322_s19 }
 0xef9   :  { %v1411_v61 = vpop.permute.xlu1 %1410  ;;  %v1290_v63 = vpop.permute.xlu0 %1289 }
 0xefa   :  { %v1413_v62 = vmul.f32 %v2283_v60, %v1411_v61  ;;  %v1292_v1 = vmul.f32 %v2281_v57, %v1290_v63 }
 0xefc   :  { %1415 = vrot.lane.b32.xlu1 %v1413_v62, %s2322_s19 }
 0xefd   :  { %v1406_v2 = vpop.permute.xlu1 %1405 }
 0xefe   :  { %v1408_v5 = vmul.f32 %v2283_v60, %v1406_v2 }
 0xf6a   :  { %v1300_v3 = vpop.permute.xlu0 %1299 }
 0xf6b   :  { %v1302_v4 = vadd.f32 %v1300_v3, %v1292_v1 }
 0xf6d   :  { %2284 = vtanh.f32 %v1302_v4 }
 0xf6e   :  { %v1416_v6 = vpop.permute.xlu1 %1415 }
 0xf6f   :  { %v1418_v7 = vadd.f32 %v1416_v6, %v1408_v5 }
 0xf71   :  { %2286 = vtanh.f32 %v1418_v7 }
 0xf7a   :  { %v2285_v8 = vpop.eup %2284 }
 0xf7b   :  { %1305 = vrot.lane.b32.xlu0 %v2285_v8, %s2324_s25  ;;  %v2190_v8 = vld [vmem:[%s2851_s2] sm:$0xff]  }
 0xf7e   :  { %v2287_v9 = vpop.eup %2286 }
 0xf7f   :  { %1421 = vrot.lane.b32.xlu1 %v2287_v9, %s2324_s25  ;;  %v2191_v9 = vld [vmem:[%s2851_s2 + $0x8] sm:$0xff]  }
 0xfed   :  { %v1306_v12 = vpop.permute.xlu0 %1305 }
 0xfee   :  { %v2613_v13 = vmul.f32 %v2281_v57, %v1306_v12 }
 0xff0   :  { %1310 = vrot.lane.b32.xlu0 %v2613_v13, %s2325_s30 }
 0xff1   :  { %v1422_v14 = vpop.permute.xlu1 %1421 }
 0xff2   :  { %v2617_v15 = vmul.f32 %v2283_v60, %v1422_v14 }
 0xff4   :  { %1426 = vrot.lane.b32.xlu1 %v2617_v15, %s2325_s30  ;;  %1315 = vrot.lane.b32.xlu0 %v1302_v4, %s2326_s5 }
 0xff8   :  { %1431 = vrot.lane.b32.xlu1 %v1418_v7, %s2326_s5 }
0x1062   :  { %v1311_v17 = vpop.permute.xlu0 %1310 }
0x1063   :  { %1313 = vst.msk [vmem:[#allocation2] sm:$0x3] %vm55_vm0, %v1311_v17 }
0x1066   :  { %v1427_v19 = vpop.permute.xlu1 %1426  ;;  %v1316_v20 = vpop.permute.xlu0 %1315 }
0x1067   :  { %1429 = vst.msk [vmem:[#allocation2 + $0x2] sm:$0x3] %vm55_vm0, %v1427_v19  ;;  %1318 = vst.msk [vmem:[#allocation3] sm:$0x3] %vm55_vm0, %v1316_v20 }
0x106a   :  { %v1432_v22 = vpop.permute.xlu1 %1431  ;;  %v1458_v24 = vld [vmem:[#allocation2] sm:$0x3] }
0x106b   :  { %1434 = vst.msk [vmem:[#allocation3 + $0x2] sm:$0x3] %vm55_vm0, %v1432_v22  ;;  %v1459_v25 = vpack.c.bf16 %v1458_v24, %v1458_v24 }
0x106d   :  { %2147 = vmatmul.mubr.msk.bf16.vlgmr.msra.gmra.mxu0 %vm71_vm2, %v1459_v25 }
0x106e   :  { %v1574_v26 = vld [vmem:[#allocation2 + $0x2] sm:$0x3]  ;;  %2158 = vmatprep.mubr.msk.bf16.mxu0 %vm2321_vm1, %v2320_v0  ;;  %v1519_v45 = vld [vmem:[#allocation3] sm:$0x3]  ;;  %2157 = vmatpush3.bf16.msra.mxu0 %v2190_v8 }
0x106f   :  { %v1575_v27 = vpack.c.bf16 %v1574_v26, %v1574_v26 }
0x1071   :  { %2153 = vmatmul.mubr.msk.bf16.vlgmr.msra.gmra.mxu1 %vm71_vm2, %v1575_v27 }
0x1072   :  { %2164 = vmatprep.mubr.msk.bf16.mxu1 %vm2321_vm1, %v2320_v0  ;;  %v1635_v46 = vld [vmem:[#allocation3 + $0x2] sm:$0x3]  ;;  %2163 = vmatpush3.bf16.msra.mxu1 %v2191_v9 }
0x112d   :  { %v1505_v31 = vpop.f32.mrf.mxu0 }
0x112e   :  { %v1511_v32 = vadd.f32 %v2018_v29, %v1505_v31  ;;  %v2030_v29 = vld [vmem:[%s2852_s0 + $0xe] sm:$0x3] }
0x112f   :  { %v2148_v33 = vpop.f32.mrf.mxu0 }
0x1130   :  { %2288 = vtanh.f32 %v1511_v32  ;;  %v2021_v47 = vmul.f32 -1.442695, %v1511_v32 }
0x1131   :  { %v1508_v35 = vpop.f32.mrf.mxu0  ;;  %v1621_v36 = vpop.f32.mrf.mxu1 }
0x1132   :  { %v1627_v38 = vadd.f32 %v2023_v34, %v1621_v36  ;;  %v1804_v34 = vld [vmem:[%s2853_s1] sm:$0x3] }
0x1133   :  { %v2149_v40 = vpop.f32.mrf.mxu0  ;;  %v2154_v41 = vpop.f32.mrf.mxu1 }
0x1134   :  { %2290 = vtanh.f32 %v1627_v38  ;;  %v2028_v49 = vmul.f32 -1.442695, %v1627_v38 }
0x1135   :  { %v1624_v42 = vpop.f32.mrf.mxu1  ;;  %2292 = vpow2.f32 %v2021_v47 }
0x1136   :  { %2294 = vpow2.f32 %v2028_v49 }
0x1137   :  { %v2155_v0 = vpop.f32.mrf.mxu1 }
0x113d   :  { %v2289_v43 = vpop.eup %2288 }
0x113e   :  { %1526 = vrot.lane.b32.xlu0 %v2289_v43, %s2323_s24 }
0x1141   :  { %v2291_v44 = vpop.eup %2290 }
0x1142   :  { %1642 = vrot.lane.b32.xlu1 %v2291_v44, %s2323_s24  ;;  %1521 = vrot.lane.b32.xlu0 %v1519_v45, %s2322_s19  ;;  %v2293_v51 = vpop.eup %2292 }
0x1143   :  { %v1515_v52 = vadd.f32 1.0, %v2293_v51  ;;  %v2295_v53 = vpop.eup %2294 }
0x1144   :  { %v1631_v54 = vadd.f32 1.0, %v2295_v53 }
0x1145   :  { %2296 = vrcp.f32 %v1515_v52 }
0x1146   :  { %1637 = vrot.lane.b32.xlu1 %v1635_v46, %s2322_s19  ;;  %2298 = vrcp.f32 %v1631_v54 }
0x1152   :  { %v2297_v55 = vpop.eup %2296 }
0x1153   :  { %v2299_v58 = vpop.eup %2298 }
0x11b0   :  { %v1527_v56 = vpop.permute.xlu0 %1526 }
0x11b1   :  { %v1529_v57 = vmul.f32 %v2297_v55, %v1527_v56 }
0x11b3   :  { %1531 = vrot.lane.b32.xlu0 %v1529_v57, %s2322_s19 }
0x11b4   :  { %v1643_v59 = vpop.permute.xlu1 %1642  ;;  %v1522_v61 = vpop.permute.xlu0 %1521 }
0x11b5   :  { %v1645_v60 = vmul.f32 %v2299_v58, %v1643_v59  ;;  %v1524_v62 = vmul.f32 %v2297_v55, %v1522_v61 }
0x11b7   :  { %1647 = vrot.lane.b32.xlu1 %v1645_v60, %s2322_s19 }
0x11b8   :  { %v1638_v63 = vpop.permute.xlu1 %1637 }
0x11b9   :  { %v1640_v3 = vmul.f32 %v2299_v58, %v1638_v63 }
0x1225   :  { %v1532_v1 = vpop.permute.xlu0 %1531 }
0x1226   :  { %v1534_v2 = vadd.f32 %v1532_v1, %v1524_v62 }
0x1228   :  { %2300 = vtanh.f32 %v1534_v2 }
0x1229   :  { %v1648_v4 = vpop.permute.xlu1 %1647 }
0x122a   :  { %v1650_v5 = vadd.f32 %v1648_v4, %v1640_v3  ;;  %v2327_v3 = vmov 1966171168  }
0x122b   :  { %v159_v4 = vunpack.c.l.s4 %v2327_v3 }
0x122c   :  { %2302 = vtanh.f32 %v1650_v5 }
0x122d   :  { %v160_v9 = vunpack.c.0.s8 %v159_v4 }
0x1235   :  { %v2301_v6 = vpop.eup %2300 }
0x1236   :  { %1537 = vrot.lane.b32.xlu0 %v2301_v6, %s2324_s25 }
0x1239   :  { %v2303_v7 = vpop.eup %2302 }
0x123a   :  { %1653 = vrot.lane.b32.xlu1 %v2303_v7, %s2324_s25 }
0x12a8   :  { %v1538_v10 = vpop.permute.xlu0 %1537 }
0x12a9   :  { %v2653_v11 = vmul.f32 %v2297_v55, %v1538_v10 }
0x12ab   :  { %1542 = vrot.lane.b32.xlu0 %v2653_v11, %s2325_s30 }
0x12ac   :  { %v1654_v12 = vpop.permute.xlu1 %1653 }
0x12ad   :  { %v2657_v14 = vmul.f32 %v2299_v58, %v1654_v12 }
0x12af   :  { %1658 = vrot.lane.b32.xlu1 %v2657_v14, %s2325_s30  ;;  %1547 = vrot.lane.b32.xlu0 %v1534_v2, %s2326_s5 }
0x12b3   :  { %1663 = vrot.lane.b32.xlu1 %v1650_v5, %s2326_s5  ;;  %v161_v5 = vlaneseq }
0x12b5   :  { %v162_v10 = vshrl.u32 %v161_v5, 7 }
0x12b7   :  { %v2695_v12 = vsub.s32 %v160_v9, %v162_v10 }
0x131d   :  { %v1543_v17 = vpop.permute.xlu0 %1542 }
0x131e   :  { %1545 = vst.msk [vmem:[#allocation2] sm:$0x3] %vm55_vm0, %v1543_v17  ;;  %v156_v17 = vpack.c.bf16 %v2403_v48, %v2403_v48  ;;  %v623_v48 = vpack.c.bf16 %v2487_v28, %v2487_v28 }
0x1321   :  { %v1659_v19 = vpop.permute.xlu1 %1658  ;;  %v1548_v20 = vpop.permute.xlu0 %1547 }
0x1322   :  { %1661 = vst.msk [vmem:[#allocation2 + $0x2] sm:$0x3] %vm55_vm0, %v1659_v19  ;;  %1550 = vst.msk [vmem:[#allocation3] sm:$0x3] %vm55_vm0, %v1548_v20  ;;  %v275_v19 = vpack.c.bf16 %v2407_v50, %v2407_v50  ;;  %v164_v20 = vrot.slane %v156_v17, %v2695_v12 }
0x1324   :  { %v171_v50 = vrot.slane %v164_v20, %v2695_v12 }
0x1325   :  { %v1664_v22 = vpop.permute.xlu1 %1663  ;;  %v1690_v24 = vld [vmem:[#allocation2] sm:$0x3] }
0x1326   :  { %1666 = vst.msk [vmem:[#allocation3 + $0x2] sm:$0x3] %vm55_vm0, %v1664_v22  ;;  %v1691_v25 = vpack.c.bf16 %v1690_v24, %v1690_v24  ;;  %v391_v22 = vpack.c.bf16 %v2445_v37, %v2445_v37 }
0x1328   :  { %2159 = vmatmul.mubr.msk.bf16.vlgmr.msra.gmra.mxu0 %vm71_vm2, %v1691_v25  ;;  %v283_v25 = vrot.slane %v275_v19, %v2695_v12 }
0x1329   :  { %v1805_v26 = vld [vmem:[#allocation2 + $0x2] sm:$0x3]  ;;  %v1751_v45 = vld [vmem:[#allocation3] sm:$0x3] }
0x132a   :  { %v1806_v27 = vpack.c.bf16 %v1805_v26, %v1805_v26  ;;  %v507_v26 = vpack.c.bf16 %v2449_v39, %v2449_v39  ;;  %v739_v39 = vpack.c.bf16 %v2491_v30, %v2491_v30  ;;  %v1087_v30 = vpack.c.bf16 %v2571_v16, %v2571_v16 }
0x132c   :  { %2165 = vmatmul.mubr.msk.bf16.vlgmr.msra.gmra.mxu1 %vm71_vm2, %v1806_v27  ;;  %v399_v27 = vrot.slane %v391_v22, %v2695_v12  ;;  %v515_v37 = vrot.slane %v507_v26, %v2695_v12 }
0x132d   :  { %v1866_v46 = vld [vmem:[#allocation3 + $0x2] sm:$0x3] }
0x132e   :  { %v406_v28 = vrot.slane %v399_v27, %v2695_v12 }
0x13e8   :  { %v1737_v31 = vpop.f32.mrf.mxu0 }
0x13e9   :  { %v1743_v32 = vadd.f32 %v2030_v29, %v1737_v31  ;;  %v290_v31 = vrot.slane %v283_v25, %v2695_v12 }
0x13ea   :  { %v2160_v33 = vpop.f32.mrf.mxu0 }
0x13eb   :  { %2304 = vtanh.f32 %v1743_v32  ;;  %v2033_v47 = vmul.f32 -1.442695, %v1743_v32  ;;  %v631_v32 = vrot.slane %v623_v48, %v2695_v12  ;;  %v855_v33 = vpack.c.bf16 %v2529_v21, %v2529_v21 }
0x13ec   :  { %v1740_v35 = vpop.f32.mrf.mxu0  ;;  %v1852_v36 = vpop.f32.mrf.mxu1 }
0x13ed   :  { %v1858_v38 = vadd.f32 %v1852_v36, %v1804_v34  ;;  %v971_v34 = vpack.c.bf16 %v2533_v23, %v2533_v23  ;;  %v522_v35 = vrot.slane %v515_v37, %v2695_v12  ;;  %v747_v36 = vrot.slane %v739_v39, %v2695_v12 }
0x13ee   :  { %v2161_v40 = vpop.f32.mrf.mxu0  ;;  %v2166_v41 = vpop.f32.mrf.mxu1  ;;  %v638_v21 = vrot.slane %v631_v32, %v2695_v12  ;;  %v1203_v23 = vpack.c.bf16 %v2575_v18, %v2575_v18 }
0x13ef   :  { %2306 = vtanh.f32 %v1858_v38  ;;  %v2039_v49 = vmul.f32 -1.442695, %v1858_v38  ;;  %v863_v38 = vrot.slane %v855_v33, %v2695_v12  ;;  %v979_v40 = vrot.slane %v971_v34, %v2695_v12 }
0x13f0   :  { %v1855_v42 = vpop.f32.mrf.mxu1  ;;  %2308 = vpow2.f32 %v2033_v47  ;;  %v754_v16 = vrot.slane %v747_v36, %v2695_v12 }
0x13f1   :  { %2310 = vpow2.f32 %v2039_v49  ;;  %v870_v41 = vrot.slane %v863_v38, %v2695_v12  ;;  %v1095_v42 = vrot.slane %v1087_v30, %v2695_v12 }
0x13f2   :  { %v2167_v0 = vpop.f32.mrf.mxu1 }
0x13f3   :  { %v1319_v0 = vpack.c.bf16 %v2613_v13, %v2613_v13  ;;  %v1551_v13 = vpack.c.bf16 %v2653_v11, %v2653_v11 }
0x13f5   :  { %v1327_v18 = vrot.slane %v1319_v0, %v2695_v12 }
0x13f7   :  { %v1334_v49 = vrot.slane %v1327_v18, %v2695_v12 }
0x13f8   :  { %v2305_v43 = vpop.eup %2304 }
0x13f9   :  { %1758 = vrot.lane.b32.xlu0 %v2305_v43, %s2323_s24  ;;  %v986_v43 = vrot.slane %v979_v40, %v2695_v12 }
0x13fc   :  { %v2307_v44 = vpop.eup %2306 }
0x13fd   :  { %1873 = vrot.lane.b32.xlu1 %v2307_v44, %s2323_s24  ;;  %1753 = vrot.lane.b32.xlu0 %v1751_v45, %s2322_s19  ;;  %v2309_v51 = vpop.eup %2308  ;;  %v1211_v44 = vrot.slane %v1203_v23, %v2695_v12  ;;  %v1102_v45 = vrot.slane %v1095_v42, %v2695_v12 }
0x13fe   :  { %v1747_v52 = vadd.f32 1.0, %v2309_v51  ;;  %v2311_v53 = vpop.eup %2310 }
0x13ff   :  { %v1862_v54 = vadd.f32 1.0, %v2311_v53  ;;  %v1218_v47 = vrot.slane %v1211_v44, %v2695_v12  ;;  %v1667_v53 = vpack.c.bf16 %v2657_v14, %v2657_v14 }
0x1400   :  { %2312 = vrcp.f32 %v1747_v52  ;;  %v1559_v52 = vrot.slane %v1551_v13, %v2695_v12 }
0x1401   :  { %1868 = vrot.lane.b32.xlu1 %v1866_v46, %s2322_s19  ;;  %2314 = vrcp.f32 %v1862_v54  ;;  %v1435_v46 = vpack.c.bf16 %v2617_v15, %v2617_v15  ;;  %v1675_v54 = vrot.slane %v1667_v53, %v2695_v12 }
0x1402   :  { %v1566_v11 = vrot.slane %v1559_v52, %v2695_v12 }
0x1403   :  { %v1443_v51 = vrot.slane %v1435_v46, %v2695_v12 }
0x1405   :  { %v1450_v15 = vrot.slane %v1443_v51, %v2695_v12 }
0x140d   :  { %v2679_v55 = vpop.eup %2312 }
0x140e   :  { %v2683_v58 = vpop.eup %2314 }
0x146b   :  { %v1759_v56 = vpop.permute.xlu0 %1758 }
0x146c   :  { %v1761_v57 = vmul.f32 %v2679_v55, %v1759_v56  ;;  %v1682_v56 = vrot.slane %v1675_v54, %v2695_v12 }
0x146e   :  { %1763 = vrot.lane.b32.xlu0 %v1761_v57, %s2322_s19 }
0x146f   :  { %v1874_v59 = vpop.permute.xlu1 %1873  ;;  %v1754_v61 = vpop.permute.xlu0 %1753 }
0x1470   :  { %v1876_v60 = vmul.f32 %v2683_v58, %v1874_v59  ;;  %v1756_v62 = vmul.f32 %v2679_v55, %v1754_v61 }
0x1472   :  { %1878 = vrot.lane.b32.xlu1 %v1876_v60, %s2322_s19 }
0x1473   :  { %v1869_v63 = vpop.permute.xlu1 %1868 }
0x1474   :  { %v1871_v6 = vmul.f32 %v2683_v58, %v1869_v63 }
0x14e0   :  { %v1764_v1 = vpop.permute.xlu0 %1763 }
0x14e1   :  { %v2688_v2 = vadd.f32 %v1764_v1, %v1756_v62 }
0x14e3   :  { %2316 = vtanh.f32 %v2688_v2 }
0x14e4   :  { %v1879_v7 = vpop.permute.xlu1 %1878 }
0x14e5   :  { %v2692_v8 = vadd.f32 %v1879_v7, %v1871_v6 }
0x14e7   :  { %2318 = vtanh.f32 %v2692_v8 }
0x14f0   :  { %v2317_v24 = vpop.eup %2316 }
0x14f1   :  { %1769 = vrot.lane.b32.xlu0 %v2317_v24, %s2324_s25 }
0x14f4   :  { %v2319_v29 = vpop.eup %2318 }
0x14f5   :  { %1884 = vrot.lane.b32.xlu1 %v2319_v29, %s2324_s25  ;;  %172 = vrot.lane.b32.xlu0 %v171_v50, %s2325_s30 }
0x14f9   :  { %291 = vrot.lane.b32.xlu1 %v290_v31, %s2325_s30  ;;  %407 = vrot.lane.b32.xlu0 %v406_v28, %s2325_s30 }
0x14fd   :  { %523 = vrot.lane.b32.xlu1 %v522_v35, %s2325_s30  ;;  %639 = vrot.lane.b32.xlu0 %v638_v21, %s2325_s30 }
0x1501   :  { %755 = vrot.lane.b32.xlu1 %v754_v16, %s2325_s30  ;;  %871 = vrot.lane.b32.xlu0 %v870_v41, %s2325_s30 }
0x1505   :  { %987 = vrot.lane.b32.xlu1 %v986_v43, %s2325_s30  ;;  %1103 = vrot.lane.b32.xlu0 %v1102_v45, %s2325_s30 }
0x1509   :  { %1219 = vrot.lane.b32.xlu1 %v1218_v47, %s2325_s30  ;;  %1335 = vrot.lane.b32.xlu0 %v1334_v49, %s2325_s30 }
0x150d   :  { %1451 = vrot.lane.b32.xlu1 %v1450_v15, %s2325_s30  ;;  %1567 = vrot.lane.b32.xlu0 %v1566_v11, %s2325_s30 }
0x1511   :  { %1683 = vrot.lane.b32.xlu1 %v1682_v56, %s2325_s30 }
0x1515   :  { %1779 = vrot.lane.b32.xlu1 %v2688_v2, %s2326_s5 }
0x1563   :  { %v1770_v14 = vpop.permute.xlu0 %1769 }
0x1564   :  { %v1772_v57 = vmul.f32 %v2679_v55, %v1770_v14 }
0x1566   :  { %v1783_v59 = vpack.c.bf16 %v1772_v57, %v1772_v57  ;;  %1774 = vrot.lane.b32.xlu0 %v1772_v57, %s2325_s30 }
0x1567   :  { %v1885_v60 = vpop.permute.xlu1 %1884  ;;  %v173_v61 = vpop.permute.xlu0 %172 }
0x1568   :  { %v1791_v62 = vrot.slane %v1783_v59, %v2695_v12  ;;  %v1887_v63 = vmul.f32 %v2683_v58, %v1885_v60  ;;  %176 = vst.msk [vmem:[%s2854_s3] sm:$0x1] %vm175_vm3, %v173_v61 }
0x156a   :  { %v1798_v1 = vrot.slane %v1791_v62, %v2695_v12  ;;  %v1898_v2 = vpack.c.bf16 %v1887_v63, %v1887_v63  ;;  %1889 = vrot.lane.b32.xlu1 %v1887_v63, %s2325_s30 }
0x156b   :  { %v292_v55 = vpop.permute.xlu1 %291  ;;  %v408_v3 = vpop.permute.xlu0 %407 }
0x156c   :  { %v1906_v4 = vrot.slane %v1898_v2, %v2695_v12  ;;  %1957 = vst.msk [vmem:[%s2855_s4 + $0x7] sm:$0x1] %vm175_vm3, %v292_v55  ;;  %1962 = vst.msk [vmem:[%s2854_s3 + $0x1] sm:$0x1] %vm175_vm3, %v408_v3  ;;  %1799 = vrot.lane.b32.xlu0 %v1798_v1, %s2325_s30 }
0x156e   :  { %v1913_v58 = vrot.slane %v1906_v4, %v2695_v12 }
0x156f   :  { %v524_v5 = vpop.permute.xlu1 %523  ;;  %v640_v6 = vpop.permute.xlu0 %639 }
0x1570   :  { %1969 = vst.msk [vmem:[%s2855_s4 + $0x6] sm:$0x1] %vm175_vm3, %v524_v5  ;;  %1974 = vst.msk [vmem:[%s2854_s3 + $0x2] sm:$0x1] %vm175_vm3, %v640_v6  ;;  %1914 = vrot.lane.b32.xlu1 %v1913_v58, %s2325_s30  ;;  %1894 = vrot.lane.b32.xlu0 %v2692_v8, %s2326_s5 }
0x1573   :  { %v756_v7 = vpop.permute.xlu1 %755  ;;  %v872_v9 = vpop.permute.xlu0 %871 }
0x1574   :  { %1981 = vst.msk [vmem:[%s2855_s4 + $0x5] sm:$0x1] %vm175_vm3, %v756_v7  ;;  %1986 = vst.msk [vmem:[%s2854_s3 + $0x3] sm:$0x1] %vm175_vm3, %v872_v9 }
0x1577   :  { %v988_v10 = vpop.permute.xlu1 %987  ;;  %v1104_v12 = vpop.permute.xlu0 %1103 }
0x1578   :  { %1993 = vst.msk [vmem:[%s2855_s4 + $0x4] sm:$0x1] %vm175_vm3, %v988_v10  ;;  %1998 = vst.msk [vmem:[%s2854_s3 + $0x4] sm:$0x1] %vm175_vm3, %v1104_v12 }
0x157b   :  { %v1220_v8 = vpop.permute.xlu1 %1219  ;;  %v1336_v17 = vpop.permute.xlu0 %1335 }
0x157c   :  { %2005 = vst.msk [vmem:[%s2855_s4 + $0x3] sm:$0x1] %vm175_vm3, %v1220_v8  ;;  %2010 = vst.msk [vmem:[%s2854_s3 + $0x5] sm:$0x1] %vm175_vm3, %v1336_v17 }
0x157f   :  { %v1452_v19 = vpop.permute.xlu1 %1451  ;;  %v1568_v20 = vpop.permute.xlu0 %1567 }
0x1580   :  { %2017 = vst.msk [vmem:[%s2855_s4 + $0x2] sm:$0x1] %vm175_vm3, %v1452_v19  ;;  %2022 = vst.msk [vmem:[%s2854_s3 + $0x6] sm:$0x1] %vm175_vm3, %v1568_v20 }
0x1583   :  { %v1684_v22 = vpop.permute.xlu1 %1683 }
0x1584   :  { %2029 = vst.msk [vmem:[%s2855_s4 + $0x1] sm:$0x1] %vm175_vm3, %v1684_v22 }
0x1587   :  { %v1780_v24 = vpop.permute.xlu1 %1779 }
0x1588   :  { %1782 = vst.msk [vmem:[#allocation3] sm:$0x3] %vm55_vm0, %v1780_v24 }
0x15d8   :  { %v1775_v25 = vpop.permute.xlu0 %1774 }
0x15d9   :  { %1777 = vst.msk [vmem:[#allocation2] sm:$0x3] %vm55_vm0, %v1775_v25 }
0x15dc   :  { %v1890_v26 = vpop.permute.xlu1 %1889 }
0x15dd   :  { %1892 = vst.msk [vmem:[#allocation2 + $0x2] sm:$0x3] %vm55_vm0, %v1890_v26 }
0x15de   :  { %v1800_v27 = vpop.permute.xlu0 %1799 }
0x15df   :  { %2034 = vst.msk [vmem:[%s2854_s3 + $0x7] sm:$0x1] %vm175_vm3, %v1800_v27 }
0x15e2   :  { %v1915_v48 = vpop.permute.xlu1 %1914  ;;  %v1895_v50 = vpop.permute.xlu0 %1894 }
0x15e3   :  { %1917 = vst.msk [vmem:[%s2855_s4] sm:$0x1] %vm175_vm3, %v1915_v48 }
0x15e4   :  { %1897 = vst.msk [vmem:[#allocation3 + $0x2] sm:$0x3] %vm55_vm0, %v1895_v50 }

// kernel: _lambda_.31
= control target key start
LH: loop header
LB: loop body
LE: loop exit
PB: predicated region body
PF: predicated region fallthrough
CT: control target
= control target key end

     0   :  { %vm48_vm0 = vcmask 1043456   ;;  %v187_v0 = vmov 0.0   ;;  %vm188_vm1 = vmmov 0   ;;  %vm19_vm2 = vcmask 130048   ;;  %s230_s1 = inlined_call_operand.vmem [shape: bf16[24,16], index: 1, kind: input, shape index: {}]   ;;  %s231_s0 = inlined_call_operand.vmem [shape: bf16[12,24], index: 0, kind: input, shape index: {}]   ;;  %s232_s2 = inlined_call_operand.vmem [shape: f32[1,16], index: 2, kind: input, shape index: {}]   ;;  %s233_s3 = inlined_call_operand.vmem [shape: bf16[12,8], index: 3, kind: output, shape index: {}]  }
   0x1   :  { %165 = vmatprep.subr.bf16.mxu0 %v187_v0  ;;  %v176_v1 = vld [vmem:[%s230_s1 + $0x8] ss:$0 sps:$4 sm:$0xff]   ;;  %169 = vmatprep.mubr.msk.bf16.mxu0 %vm188_vm1, %v187_v0  ;;  %20 = vst.msk [vmem:[#allocation2] sm:$0xff] %vm19_vm2, %v187_v0  ;;  %v177_v3 = vld [vmem:[%s230_s1] sm:$0xff]   ;;  %vm44_vm3 = vcmask 195584   ;;  %vm21_vm4 = vcmask 125952  }
   0x2   :  { %v50_v2 = vsel %vm48_vm0, %v176_v1, 0  ;;  %v178_v4 = vld [vmem:[%s231_s0] sm:$0x3f]   ;;  %22 = vst.msk [vmem:[#allocation2 + $0x8] sm:$0xf] %vm21_vm4, %v187_v0  ;;  %s189_s0 = smov 120  }
   0x3   :  { %166 = vmatpush3.bf16.msra.mxu0 %v50_v2  ;;  %v155_v13 = vld [vmem:[%s232_s2] ss:$0 sm:$0xff]  ;;  %vm143_vm5 = vcmask 60416   ;;  %vm145_vm6 = vcmask 58368  }
   0x4   :  { %167 = vmatprep.subr.bf16.mxu0 %v187_v0 }
   0x7   :  { %168 = vmatpush3.bf16.msra.mxu0 %v177_v3 }
   0x8   :  { %v23_v5 = vld [vmem:[#allocation2] sm:$0xff] }
   0x9   :  { %v24_v9 = vld [vmem:[#allocation2 + $0x8] sm:$0xf] }
   0xa   :  { %170 = vmatmul.mubr.msk.bf16.vlgmr.msra.gmra.mxu0 %vm44_vm3, %v178_v4 }
  0xca   :  { %v86_v6 = vpop.f32.mrf.mxu0 }
  0xcb   :  { %v93_v7 = vadd.f32 %v86_v6, %v23_v5 }
  0xcc   :  { %v171_v8 = vpop.f32.mrf.mxu0 }
  0xcd   :  { %96 = vst.msk [vmem:[#allocation2] sm:$0xff] %vm19_vm2, %v93_v7 }
  0xce   :  { %v89_v10 = vpop.f32.mrf.mxu0 }
  0xcf   :  { %v94_v11 = vadd.f32 %v89_v10, %v24_v9 }
  0xd0   :  { %v172_v12 = vpop.f32.mrf.mxu0 }
  0xd1   :  { %98 = vst.msk [vmem:[#allocation2 + $0x8] sm:$0xf] %vm21_vm4, %v94_v11 }
  0xd4   :  { %v102_v14 = vld [vmem:[#allocation2] sm:$0xff] }
  0xd5   :  { %v111_v15 = vadd.f32 %v155_v13, %v102_v14 }
  0xd7   :  { %v156_v16 = vmul.f32 -1.442695, %v111_v15 }
  0xd8   :  { %v103_v17 = vld [vmem:[#allocation2 + $0x8] sm:$0xf] }
  0xd9   :  { %179 = vpow2.f32 %v156_v16  ;;  %v112_v18 = vadd.f32 %v155_v13, %v103_v17 }
  0xdb   :  { %v157_v19 = vmul.f32 -1.442695, %v112_v18 }
  0xdd   :  { %181 = vpow2.f32 %v157_v19 }
  0xe6   :  { %v180_v20 = vpop.eup %179 }
  0xe7   :  { %v119_v21 = vadd.f32 1.0, %v180_v20 }
  0xe9   :  { %183 = vrcp.f32 %v119_v21 }
  0xea   :  { %v182_v22 = vpop.eup %181 }
  0xeb   :  { %v120_v23 = vadd.f32 1.0, %v182_v22 }
  0xed   :  { %185 = vrcp.f32 %v120_v23 }
  0xf6   :  { %v184_v24 = vpop.eup %183 }
  0xf7   :  { %127 = vrot.lane.b32.xlu0 %v184_v24, %s189_s0 }
  0xfa   :  { %v186_v25 = vpop.eup %185 }
  0xfb   :  { %129 = vrot.lane.b32.xlu0 %v186_v25, %s189_s0 }
 0x169   :  { %v128_v26 = vpop.permute.xlu0 %127 }
 0x16a   :  { %v133_v27 = vmul.f32 %v128_v26, %v111_v15 }
 0x16c   :  { %v160_v28 = vpack.c.bf16 %v133_v27, %v133_v27 }
 0x16d   :  { %v130_v29 = vpop.permute.xlu0 %129 }
 0x16e   :  { %144 = vst.msk [vmem:[%s233_s3] sm:$0xf] %vm143_vm5, %v160_v28  ;;  %v134_v30 = vmul.f32 %v130_v29, %v112_v18 }
 0x170   :  { %v161_v31 = vpack.c.bf16 %v134_v30, %v134_v30 }
 0x172   :  { %146 = vst.msk [vmem:[%s233_s3 + $0x4] sm:$0x3] %vm145_vm6, %v161_v31 }

// kernel: _lambda_.32
= control target key start
LH: loop header
LB: loop body
LE: loop exit
PB: predicated region body
PF: predicated region fallthrough
CT: control target
= control target key end

     0   :  { %vm16_vm0 = vcmask 261120   ;;  %vm18_vm1 = vcmask 257024   ;;  %vm34_vm2 = vcmask 1043456   ;;  %v122_v0 = vmov 0.0   ;;  %s156_s1 = inlined_call_operand.vmem [shape: bf16[8,32], index: 1, kind: input, shape index: {}]   ;;  %s157_s0 = inlined_call_operand.vmem [shape: bf16[12,8], index: 0, kind: input, shape index: {}]   ;;  %s158_s2 = inlined_call_operand.vmem [shape: bf16[12,32], index: 2, kind: output, shape index: {}]  }
   0x1   :  { %17 = vst.msk [vmem:[#allocation2] sm:$0xff] %vm16_vm0, %v122_v0  ;;  %113 = vmatprep.subr.bf16.mxu0 %v122_v0  ;;  %v24_v1 = vld [vmem:[%s156_s1] sm:$0xf]  ;;  %vm123_vm3 = vmmov 0   ;;  %vm30_vm4 = vcmask 64512   ;;  %vm99_vm5 = vcmask 254976  }
   0x2   :  { %19 = vst.msk [vmem:[#allocation2 + $0x8] sm:$0xf] %vm18_vm1, %v122_v0  ;;  %v36_v2 = vsel %vm34_vm2, %v24_v1, 0  ;;  %115 = vmatprep.mubr.msk.bf16.mxu0 %vm123_vm3, %v122_v0  ;;  %v121_v3 = vld [vmem:[%s157_s0] sm:$0x3f]  }
   0x3   :  { %114 = vmatpush3.bf16.msra.mxu0 %v36_v2 }
   0x6   :  { %116 = vmatmul.mubr.msk.bf16.vlgmr.msra.gmra.mxu0 %vm30_vm4, %v121_v3 }
   0x8   :  { %v20_v4 = vld [vmem:[#allocation2] sm:$0xff] }
   0x9   :  { %v21_v8 = vld [vmem:[#allocation2 + $0x8] sm:$0xf] }
  0xc6   :  { %v72_v5 = vpop.f32.mrf.mxu0 }
  0xc7   :  { %v79_v6 = vadd.f32 %v72_v5, %v20_v4 }
  0xc8   :  { %v117_v7 = vpop.f32.mrf.mxu0 }
  0xc9   :  { %82 = vst.msk [vmem:[#allocation2] sm:$0xff] %vm16_vm0, %v79_v6 }
  0xca   :  { %v75_v9 = vpop.f32.mrf.mxu0 }
  0xcb   :  { %v80_v10 = vadd.f32 %v75_v9, %v21_v8 }
  0xcc   :  { %v118_v11 = vpop.f32.mrf.mxu0 }
  0xcd   :  { %84 = vst.msk [vmem:[#allocation2 + $0x8] sm:$0xf] %vm18_vm1, %v80_v10 }
  0xd0   :  { %v88_v12 = vld [vmem:[#allocation2] sm:$0xff] }
  0xd1   :  { %v109_v13 = vpack.c.bf16 %v88_v12, %v88_v12 }
  0xd3   :  { %98 = vst.msk [vmem:[%s158_s2] sm:$0xf] %vm18_vm1, %v109_v13 }
  0xd4   :  { %v89_v14 = vld [vmem:[#allocation2 + $0x8] sm:$0xf] }
  0xd5   :  { %v110_v15 = vpack.c.bf16 %v89_v14, %v89_v14 }
  0xd7   :  { %100 = vst.msk [vmem:[%s158_s2 + $0x4] sm:$0x3] %vm99_vm5, %v110_v15 }

// kernel: _lambda_.33
= control target key start
LH: loop header
LB: loop body
LE: loop exit
PB: predicated region body
PF: predicated region fallthrough
CT: control target
= control target key end

     0   :  { %vm68_vm0 = vcmask 27648   ;;  %s167_s0 = inlined_call_operand.vmem [shape: bf16[56,4], index: 0, kind: input, shape index: {}]   ;;  %s168_s1 = inlined_call_operand.vmem [shape: f32[1,4], index: 1, kind: input, shape index: {}]   ;;  %s169_s2 = inlined_call_operand.vmem [shape: bf16[56,4], index: 2, kind: output, shape index: {}]  }
   0x1   :  { %v96_v0 = vld [vmem:[%s167_s0] sm:$0xff]   ;;  %v107_v2 = vld [vmem:[%s167_s0 + $0x8] sm:$0xff]   ;;  %v108_v7 = vld [vmem:[%s167_s0 + $0x10] sm:$0xff]  }
   0x2   :  { %v80_v1 = vld [vmem:[%s168_s1] ss:$0 sm:$0xff]  ;;  %v97_v3 = vunpack.c.l.bf16 %v96_v0  ;;  %v98_v4 = vunpack.c.h.bf16 %v96_v0  ;;  %v101_v5 = vunpack.c.l.bf16 %v107_v2  ;;  %v102_v6 = vunpack.c.h.bf16 %v107_v2  ;;  %v17_v8 = vld [vmem:[%s167_s0 + $0x18] sm:$0xf] }
   0x3   :  { %v105_v9 = vunpack.c.l.bf16 %v108_v7  ;;  %v106_v10 = vunpack.c.h.bf16 %v108_v7  ;;  %v24_v11 = vunpack.c.l.bf16 %v17_v8 }
   0x4   :  { %v32_v12 = vadd.f32 %v97_v3, %v80_v1  ;;  %v33_v13 = vadd.f32 %v98_v4, %v80_v1  ;;  %v34_v14 = vadd.f32 %v101_v5, %v80_v1  ;;  %v35_v15 = vadd.f32 %v102_v6, %v80_v1 }
   0x5   :  { %v36_v16 = vadd.f32 %v105_v9, %v80_v1  ;;  %v37_v17 = vadd.f32 %v106_v10, %v80_v1  ;;  %v38_v18 = vadd.f32 %v80_v1, %v24_v11 }
   0x6   :  { %v88_v19 = vpack.c.bf16 %v32_v12, %v32_v12  ;;  %v89_v20 = vpack.c.bf16 %v33_v13, %v33_v13  ;;  %v90_v21 = vpack.c.bf16 %v34_v14, %v34_v14  ;;  %v91_v22 = vpack.c.bf16 %v35_v15, %v35_v15 }
   0x7   :  { %v92_v23 = vpack.c.bf16 %v36_v16, %v36_v16  ;;  %v93_v24 = vpack.c.bf16 %v37_v17, %v37_v17  ;;  %v94_v25 = vpack.c.bf16 %v38_v18, %v38_v18 }
   0x8   :  { %69 = vst.msk [vmem:[%s169_s2] sm:$0xf] %vm68_vm0, %v88_v19  ;;  %70 = vst.msk [vmem:[%s169_s2 + $0x4] sm:$0xf] %vm68_vm0, %v89_v20 }
   0x9   :  { %71 = vst.msk [vmem:[%s169_s2 + $0x8] sm:$0xf] %vm68_vm0, %v90_v21  ;;  %72 = vst.msk [vmem:[%s169_s2 + $0xc] sm:$0xf] %vm68_vm0, %v91_v22 }
   0xa   :  { %73 = vst.msk [vmem:[%s169_s2 + $0x10] sm:$0xf] %vm68_vm0, %v92_v23  ;;  %74 = vst.msk [vmem:[%s169_s2 + $0x14] sm:$0xf] %vm68_vm0, %v93_v24 }
   0xb   :  { %75 = vst.msk [vmem:[%s169_s2 + $0x18] sm:$0xf] %vm68_vm0, %v94_v25 }

// kernel: _lambda_.34
= control target key start
LH: loop header
LB: loop body
LE: loop exit
PB: predicated region body
PF: predicated region fallthrough
CT: control target
= control target key end

     0   :  { %vm16_vm0 = vcmask 193536   ;;  %vm25_vm1 = vcmask 1040384   ;;  %vm26_vm2 = vcmask 1041408   ;;  %v98_v0 = vmov 0.0   ;;  %s127_s1 = inlined_call_operand.vmem [shape: bf16[3,24], index: 1, kind: input, shape index: {}]   ;;  %s128_s0 = inlined_call_operand.vmem [shape: bf16[6,3], index: 0, kind: input, shape index: {}]   ;;  %s129_s2 = inlined_call_operand.vmem [shape: bf16[6,24], index: 2, kind: output, shape index: {}]  }
   0x1   :  { %17 = vst.msk [vmem:[#allocation2] sm:$0x3f] %vm16_vm0, %v98_v0  ;;  %89 = vmatprep.subr.bf16.mxu0 %v98_v0  ;;  %v20_v1 = vld [vmem:[%s127_s1] sm:$0x3]  ;;  %v99_v2 = vmov 65535   ;;  %vm100_vm3 = vmmov 0  }
   0x2   :  { %v27_v3 = vsel %vm25_vm1, 4294967295, %v99_v2  ;;  %91 = vmatprep.mubr.msk.bf16.mxu0 %vm100_vm3, %v98_v0  ;;  %v19_v6 = vld [vmem:[%s128_s0] sm:$0x7]  ;;  %vm21_vm4 = vcmask 23552   ;;  %vm80_vm5 = vcmask 190464  }
   0x3   :  { %v28_v4 = vsel %vm26_vm2, %v27_v3, 0 }
   0x4   :  { %v30_v5 = vand.u32 %v28_v4, %v20_v1 }
   0x6   :  { %90 = vmatpush3.bf16.msra.mxu0 %v30_v5 }
   0x8   :  { %v18_v7 = vld [vmem:[#allocation2] sm:$0x3f] }
   0x9   :  { %92 = vmatmul.mubr.msk.bf16.vlgmr.msra.gmra.mxu0 %vm21_vm4, %v19_v6 }
  0xc9   :  { %v66_v8 = vpop.f32.mrf.mxu0 }
  0xca   :  { %v72_v9 = vadd.f32 %v66_v8, %v18_v7 }
  0xcb   :  { %v93_v10 = vpop.f32.mrf.mxu0 }
  0xcc   :  { %74 = vst.msk [vmem:[#allocation2] sm:$0x3f] %vm16_vm0, %v72_v9 }
  0xcd   :  { %v69_v11 = vpop.f32.mrf.mxu0 }
  0xcf   :  { %v94_v12 = vpop.f32.mrf.mxu0 }
  0xd3   :  { %v78_v13 = vld [vmem:[#allocation2] sm:$0x3f] }
  0xd4   :  { %v79_v14 = vpack.c.bf16 %v78_v13, %v78_v13 }
  0xd6   :  { %81 = vst.msk [vmem:[%s129_s2] sm:$0x7] %vm80_vm5, %v79_v14 }

// kernel: _lambda_.36
= control target key start
LH: loop header
LB: loop body
LE: loop exit
PB: predicated region body
PF: predicated region fallthrough
CT: control target
= control target key end

     0   :  { %vm47_vm0 = vcmask 1040384   ;;  %vm48_vm1 = vcmask 1041408   ;;  %vm40_vm2 = vcmask 23552   ;;  %v169_v1 = vmov 65535   ;;  %s217_s1 = inlined_call_operand.vmem [shape: bf16[3,48], index: 1, kind: input, shape index: {}]   ;;  %s218_s0 = inlined_call_operand.vmem [shape: bf16[32,3], index: 0, kind: input, shape index: {}]   ;;  %s219_s2 = inlined_call_operand.vmem [shape: bf16[32,48], index: 2, kind: output, shape index: {}]  }
   0x1   :  { %v29_v0 = vld [vmem:[%s217_s1] sm:$0x3]  ;;  %v49_v2 = vsel %vm47_vm0, 4294967295, %v169_v1  ;;  %vm16_vm3 = vcmask 392192   ;;  %v170_v6 = vmov 0.0   ;;  %v168_v7 = vld [vmem:[%s218_s0 + $0x8] sm:$0xff]  }
   0x2   :  { %v167_v3 = vld [vmem:[%s218_s0] sm:$0xff]   ;;  %v50_v4 = vsel %vm48_vm1, %v49_v2, 0  ;;  %19 = vst.msk [vmem:[#allocation2 + $0x10] sm:$0xff] %vm16_vm3, %v170_v6  ;;  %17 = vst.msk [vmem:[#allocation2] sm:$0xff] %vm16_vm3, %v170_v6  ;;  %vm135_vm4 = vcmask 388096  }
   0x3   :  { %v52_v5 = vand.u32 %v50_v4, %v29_v0  ;;  %161 = vmatprep.mubr.msk.bf16.mxu0 %vm40_vm2, %v167_v3  ;;  %18 = vst.msk [vmem:[#allocation2 + $0x8] sm:$0xff] %vm16_vm3, %v170_v6  ;;  %20 = vst.msk [vmem:[#allocation2 + $0x18] sm:$0xff] %vm16_vm3, %v170_v6 }
   0x5   :  { %159 = vmatprep.subr.bf16.mxu0 %v52_v5 }
   0x6   :  { %160 = vmatpush3.bf16.msra.mxu0 %v52_v5 }
   0x9   :  { %162 = vmatmul.mubr.msk.bf16.vlgmr.msra.gmra.mxu0 %vm40_vm2, %v168_v7  ;;  %v23_v8 = vld [vmem:[#allocation2 + $0x10] sm:$0xff]  ;;  %v21_v10 = vld [vmem:[#allocation2] sm:$0xff] }
   0xa   :  { %v24_v13 = vld [vmem:[#allocation2 + $0x18] sm:$0xff]  ;;  %v22_v16 = vld [vmem:[#allocation2 + $0x8] sm:$0xff] }
  0xc9   :  { %v163_v9 = vpop.f32.mrf.mxu0 }
  0xca   :  { %v105_v11 = vadd.f32 %v163_v9, %v23_v8 }
  0xcb   :  { %v88_v12 = vpop.f32.mrf.mxu0 }
  0xcc   :  { %110 = vst.msk [vmem:[#allocation2 + $0x10] sm:$0xff] %vm16_vm3, %v105_v11  ;;  %v103_v14 = vadd.f32 %v88_v12, %v21_v10 }
  0xcd   :  { %v164_v15 = vpop.f32.mrf.mxu0 }
  0xce   :  { %108 = vst.msk [vmem:[#allocation2] sm:$0xff] %vm16_vm3, %v103_v14  ;;  %v106_v17 = vadd.f32 %v164_v15, %v24_v13 }
  0xcf   :  { %v91_v18 = vpop.f32.mrf.mxu0 }
  0xd0   :  { %111 = vst.msk [vmem:[#allocation2 + $0x18] sm:$0xff] %vm16_vm3, %v106_v17  ;;  %v104_v19 = vadd.f32 %v91_v18, %v22_v16 }
  0xd2   :  { %109 = vst.msk [vmem:[#allocation2 + $0x8] sm:$0xff] %vm16_vm3, %v104_v19 }
  0xd3   :  { %v117_v20 = vld [vmem:[#allocation2 + $0x10] sm:$0xff] }
  0xd4   :  { %v154_v21 = vpack.c.bf16 %v117_v20, %v117_v20 }
  0xd5   :  { %v115_v22 = vld [vmem:[#allocation2] sm:$0xff] }
  0xd6   :  { %138 = vst.msk [vmem:[%s219_s2 + $0x8] sm:$0xf] %vm135_vm4, %v154_v21  ;;  %v152_v23 = vpack.c.bf16 %v115_v22, %v115_v22 }
  0xd7   :  { %v118_v24 = vld [vmem:[#allocation2 + $0x18] sm:$0xff] }
  0xd8   :  { %136 = vst.msk [vmem:[%s219_s2] sm:$0xf] %vm135_vm4, %v152_v23  ;;  %v155_v25 = vpack.c.bf16 %v118_v24, %v118_v24 }
  0xd9   :  { %v116_v26 = vld [vmem:[#allocation2 + $0x8] sm:$0xff] }
  0xda   :  { %139 = vst.msk [vmem:[%s219_s2 + $0xc] sm:$0xf] %vm135_vm4, %v155_v25  ;;  %v153_v27 = vpack.c.bf16 %v116_v26, %v116_v26 }
  0xdc   :  { %137 = vst.msk [vmem:[%s219_s2 + $0x4] sm:$0xf] %vm135_vm4, %v153_v27 }

// kernel: _lambda_.35
= control target key start
LH: loop header
LB: loop body
LE: loop exit
PB: predicated region body
PF: predicated region fallthrough
CT: control target
= control target key end

     0   :  { %vm50_vm0 = vcmask 19456   ;;  %s113_s0 = inlined_call_operand.vmem [shape: bf16[32,3], index: 0, kind: input, shape index: {}]   ;;  %s114_s1 = inlined_call_operand.vmem [shape: f32[1,3], index: 1, kind: input, shape index: {}]   ;;  %s115_s2 = inlined_call_operand.vmem [shape: bf16[32,3], index: 2, kind: output, shape index: {}]  }
   0x1   :  { %v69_v0 = vld [vmem:[%s113_s0] sm:$0xff]   ;;  %v76_v2 = vld [vmem:[%s113_s0 + $0x8] sm:$0xff]  }
   0x2   :  { %v59_v1 = vld [vmem:[%s114_s1] ss:$0 sm:$0xff]  ;;  %v70_v3 = vunpack.c.l.bf16 %v69_v0  ;;  %v71_v4 = vunpack.c.h.bf16 %v69_v0  ;;  %v74_v5 = vunpack.c.l.bf16 %v76_v2  ;;  %v75_v6 = vunpack.c.h.bf16 %v76_v2 }
   0x4   :  { %v26_v7 = vadd.f32 %v70_v3, %v59_v1  ;;  %v27_v8 = vadd.f32 %v71_v4, %v59_v1  ;;  %v28_v9 = vadd.f32 %v74_v5, %v59_v1  ;;  %v29_v10 = vadd.f32 %v75_v6, %v59_v1 }
   0x6   :  { %v30_v11 = vmax.f32 %v26_v7, 0.0  ;;  %v31_v12 = vmax.f32 %v27_v8, 0.0  ;;  %v32_v13 = vmax.f32 %v28_v9, 0.0  ;;  %v33_v14 = vmax.f32 %v29_v10, 0.0 }
   0x8   :  { %v64_v15 = vpack.c.bf16 %v30_v11, %v30_v11  ;;  %v65_v16 = vpack.c.bf16 %v31_v12, %v31_v12  ;;  %v66_v17 = vpack.c.bf16 %v32_v13, %v32_v13  ;;  %v67_v18 = vpack.c.bf16 %v33_v14, %v33_v14 }
   0xa   :  { %51 = vst.msk [vmem:[%s115_s2] sm:$0xf] %vm50_vm0, %v64_v15  ;;  %52 = vst.msk [vmem:[%s115_s2 + $0x4] sm:$0xf] %vm50_vm0, %v65_v16 }
   0xb   :  { %53 = vst.msk [vmem:[%s115_s2 + $0x8] sm:$0xf] %vm50_vm0, %v66_v17  ;;  %54 = vst.msk [vmem:[%s115_s2 + $0xc] sm:$0xf] %vm50_vm0, %v67_v18 }

// kernel: _lambda_.37
= control target key start
LH: loop header
LB: loop body
LE: loop exit
PB: predicated region body
PF: predicated region fallthrough
CT: control target
= control target key end

     0   :  { %vm138_vm0 = vcmask 44032   ;;  %s366_s0 = inlined_call_operand.vmem [shape: bf16[136,6], index: 0, kind: input, shape index: {}]   ;;  %s367_s1 = inlined_call_operand.vmem [shape: f32[1,6], index: 1, kind: input, shape index: {}]   ;;  %s368_s2 = inlined_call_operand.vmem [shape: bf16[136,6], index: 2, kind: output, shape index: {}]  }
   0x1   :  { %v196_v0 = vld [vmem:[%s366_s0] sm:$0xff]   ;;  %v227_v2 = vld [vmem:[%s366_s0 + $0x8] sm:$0xff]   ;;  %v228_v7 = vld [vmem:[%s366_s0 + $0x10] sm:$0xff]  }
   0x2   :  { %v255_v1 = vld [vmem:[%s367_s1] ss:$0 sm:$0xff]  ;;  %v197_v3 = vunpack.c.l.bf16 %v196_v0  ;;  %v198_v4 = vunpack.c.h.bf16 %v196_v0  ;;  %v201_v5 = vunpack.c.l.bf16 %v227_v2  ;;  %v202_v6 = vunpack.c.h.bf16 %v227_v2  ;;  %v229_v8 = vld [vmem:[%s366_s0 + $0x18] sm:$0xff]   ;;  %v231_v22 = vld [vmem:[%s366_s0 + $0x28] sm:$0xff]  }
   0x3   :  { %v205_v9 = vunpack.c.l.bf16 %v228_v7  ;;  %v206_v10 = vunpack.c.h.bf16 %v228_v7  ;;  %v209_v11 = vunpack.c.l.bf16 %v229_v8  ;;  %v210_v12 = vunpack.c.h.bf16 %v229_v8  ;;  %v230_v21 = vld [vmem:[%s366_s0 + $0x20] sm:$0xff]   ;;  %v232_v27 = vld [vmem:[%s366_s0 + $0x30] sm:$0xff]   ;;  %v233_v28 = vld [vmem:[%s366_s0 + $0x38] sm:$0xff]  }
   0x4   :  { %v52_v13 = vadd.f32 %v197_v3, %v255_v1  ;;  %v53_v14 = vadd.f32 %v198_v4, %v255_v1  ;;  %v54_v15 = vadd.f32 %v201_v5, %v255_v1  ;;  %v55_v16 = vadd.f32 %v202_v6, %v255_v1  ;;  %v27_v49 = vld [vmem:[%s366_s0 + $0x40] sm:$0xf] }
   0x5   :  { %v56_v17 = vadd.f32 %v205_v9, %v255_v1  ;;  %v57_v18 = vadd.f32 %v206_v10, %v255_v1  ;;  %v58_v19 = vadd.f32 %v209_v11, %v255_v1  ;;  %v59_v20 = vadd.f32 %v210_v12, %v255_v1 }
   0x6   :  { %v178_v23 = vpack.c.bf16 %v52_v13, %v52_v13  ;;  %v179_v24 = vpack.c.bf16 %v53_v14, %v53_v14  ;;  %v180_v25 = vpack.c.bf16 %v54_v15, %v54_v15  ;;  %v181_v26 = vpack.c.bf16 %v55_v16, %v55_v16 }
   0x7   :  { %v182_v29 = vpack.c.bf16 %v56_v17, %v56_v17  ;;  %v183_v30 = vpack.c.bf16 %v57_v18, %v57_v18  ;;  %v184_v31 = vpack.c.bf16 %v58_v19, %v58_v19  ;;  %v185_v32 = vpack.c.bf16 %v59_v20, %v59_v20 }
   0x8   :  { %139 = vst.msk [vmem:[%s368_s2] sm:$0xf] %vm138_vm0, %v178_v23  ;;  %140 = vst.msk [vmem:[%s368_s2 + $0x4] sm:$0xf] %vm138_vm0, %v179_v24  ;;  %v213_v33 = vunpack.c.l.bf16 %v230_v21  ;;  %v214_v34 = vunpack.c.h.bf16 %v230_v21  ;;  %v217_v35 = vunpack.c.l.bf16 %v231_v22  ;;  %v218_v36 = vunpack.c.h.bf16 %v231_v22 }
   0x9   :  { %141 = vst.msk [vmem:[%s368_s2 + $0x8] sm:$0xf] %vm138_vm0, %v180_v25  ;;  %142 = vst.msk [vmem:[%s368_s2 + $0xc] sm:$0xf] %vm138_vm0, %v181_v26  ;;  %v221_v37 = vunpack.c.l.bf16 %v232_v27  ;;  %v222_v38 = vunpack.c.h.bf16 %v232_v27  ;;  %v225_v39 = vunpack.c.l.bf16 %v233_v28  ;;  %v226_v40 = vunpack.c.h.bf16 %v233_v28 }
   0xa   :  { %143 = vst.msk [vmem:[%s368_s2 + $0x10] sm:$0xf] %vm138_vm0, %v182_v29  ;;  %144 = vst.msk [vmem:[%s368_s2 + $0x14] sm:$0xf] %vm138_vm0, %v183_v30  ;;  %v60_v41 = vadd.f32 %v213_v33, %v255_v1  ;;  %v61_v42 = vadd.f32 %v214_v34, %v255_v1  ;;  %v62_v43 = vadd.f32 %v217_v35, %v255_v1  ;;  %v44_v58 = vunpack.c.l.bf16 %v27_v49 }
   0xb   :  { %145 = vst.msk [vmem:[%s368_s2 + $0x18] sm:$0xf] %vm138_vm0, %v184_v31  ;;  %146 = vst.msk [vmem:[%s368_s2 + $0x1c] sm:$0xf] %vm138_vm0, %v185_v32  ;;  %v63_v44 = vadd.f32 %v218_v36, %v255_v1  ;;  %v64_v45 = vadd.f32 %v221_v37, %v255_v1  ;;  %v65_v46 = vadd.f32 %v222_v38, %v255_v1 }
   0xc   :  { %v66_v47 = vadd.f32 %v225_v39, %v255_v1  ;;  %v67_v48 = vadd.f32 %v226_v40, %v255_v1  ;;  %v186_v50 = vpack.c.bf16 %v60_v41, %v60_v41  ;;  %v187_v51 = vpack.c.bf16 %v61_v42, %v61_v42 }
   0xd   :  { %v188_v52 = vpack.c.bf16 %v62_v43, %v62_v43  ;;  %v189_v53 = vpack.c.bf16 %v63_v44, %v63_v44  ;;  %v190_v54 = vpack.c.bf16 %v64_v45, %v64_v45  ;;  %v191_v55 = vpack.c.bf16 %v65_v46, %v65_v46 }
   0xe   :  { %v192_v56 = vpack.c.bf16 %v66_v47, %v66_v47  ;;  %v193_v57 = vpack.c.bf16 %v67_v48, %v67_v48  ;;  %147 = vst.msk [vmem:[%s368_s2 + $0x20] sm:$0xf] %vm138_vm0, %v186_v50  ;;  %148 = vst.msk [vmem:[%s368_s2 + $0x24] sm:$0xf] %vm138_vm0, %v187_v51  ;;  %v68_v59 = vadd.f32 %v255_v1, %v44_v58 }
   0xf   :  { %149 = vst.msk [vmem:[%s368_s2 + $0x28] sm:$0xf] %vm138_vm0, %v188_v52  ;;  %150 = vst.msk [vmem:[%s368_s2 + $0x2c] sm:$0xf] %vm138_vm0, %v189_v53 }
  0x10   :  { %151 = vst.msk [vmem:[%s368_s2 + $0x30] sm:$0xf] %vm138_vm0, %v190_v54  ;;  %152 = vst.msk [vmem:[%s368_s2 + $0x34] sm:$0xf] %vm138_vm0, %v191_v55  ;;  %v194_v60 = vpack.c.bf16 %v68_v59, %v68_v59 }
  0x11   :  { %153 = vst.msk [vmem:[%s368_s2 + $0x38] sm:$0xf] %vm138_vm0, %v192_v56  ;;  %154 = vst.msk [vmem:[%s368_s2 + $0x3c] sm:$0xf] %vm138_vm0, %v193_v57 }
  0x12   :  { %155 = vst.msk [vmem:[%s368_s2 + $0x40] sm:$0xf] %vm138_vm0, %v194_v60 }

</bundles_post_ra>
